<compile_context>
chip_gen: v7x
topology: tpu7x:2x2x1
jax: 0.10.0
libtpu: 0.0.40
codegen_flags: <defaults>
</compile_context>

<pallas_src>
import jax
import jax.numpy as jnp
from jax.experimental import pallas as pl
from jax.experimental.pallas import tpu as pltpu

NUM_CLASSES = 10
OUT_PAD = 128          # lane-dense padded class dimension
H0, H1 = 512, 128      # hidden sizes of the MLP
NEG_BIG = -1e30        # finite sentinel baked into the padded bias columns


def _round_up(x, m):
    return (x + m - 1) // m * m


def mlp_kernel(x_ref, w0_ref, b0_ref, w1_ref, b1_ref, w2_ref, b2_ref, o_ref):
    """One batch tile of the fused MLP forward.

    x_ref : (TILE_B, F)   f32  (cast to bf16 in-kernel)
    w*_ref: (in, out)     bf16 (resident across the whole grid)
    b*_ref: (1, out)      f32  (b2's padded columns are -1e30)
    o_ref : (TILE_B, 128) f32  log-probabilities (columns >= 10 are padding)
    """
    x = x_ref[...].astype(jnp.bfloat16)

    # linear0 + sigmoid (bf16 MXU matmul, f32 accumulate, f32 elementwise)
    h0 = jnp.dot(x, w0_ref[...], preferred_element_type=jnp.float32) + b0_ref[...]
    h0 = jax.nn.sigmoid(h0)

    # linear1 + sigmoid
    h1 = jnp.dot(h0.astype(jnp.bfloat16), w1_ref[...],
                 preferred_element_type=jnp.float32) + b1_ref[...]
    h1 = jax.nn.sigmoid(h1)

    # linear2 into the 128-wide padded class dimension.
    # Padded W2 columns are zero and padded b2 columns are -1e30, so padded logits
    # are exactly -1e30 and vanish in the softmax -> no mask needed here.
    logits = jnp.dot(h1.astype(jnp.bfloat16), w2_ref[...],
                     preferred_element_type=jnp.float32) + b2_ref[...]

    # log_softmax along the class axis (EUP/XLU work; free under the MXU)
    m = jnp.max(logits, axis=-1, keepdims=True)
    shifted = logits - m
    lse = jnp.log(jnp.sum(jnp.exp(shifted), axis=-1, keepdims=True))
    o_ref[...] = shifted - lse


def prepare_params(params):
    """One-time cast/pad of raw f32 (in, out) params into kernel-ready operands.

    Call once and reuse the result across forward calls, so no per-call
    cast/pad HBM round trips remain.
    """
    w0, b0, w1, b1, w2, b2 = params
    w0b = w0.astype(jnp.bfloat16)
    w1b = w1.astype(jnp.bfloat16)
    w2b = jnp.pad(w2, ((0, 0), (0, OUT_PAD - w2.shape[1]))).astype(jnp.bfloat16)
    b0f = b0.reshape(1, -1).astype(jnp.float32)
    b1f = b1.reshape(1, -1).astype(jnp.float32)
    b2f = jnp.concatenate(
        [b2.reshape(1, -1).astype(jnp.float32),
         jnp.full((1, OUT_PAD - b2.shape[-1]), NEG_BIG, jnp.float32)], axis=1)
    return (w0b, b0f, w1b, b1f, w2b, b2f)


def _choose_tile_b(batch, tile_b_max):
    """Pick a batch tile: big (amortizes per-step overhead), f32-sublane aligned,
    and giving >=2 grid steps when cheaply possible (keeps both v7x TCs busy)."""
    tile_b_max = max(8, tile_b_max - tile_b_max % 8)
    if batch > tile_b_max:
        return tile_b_max              # cdiv grid; ragged last block is masked on write
    half = batch // 2
    if half >= 8 and half % 8 == 0:
        return half                    # exact 2-way split -> grid of 2, no padding
    return batch                       # single full-extent block (always a legal block)


def _build_call(batch, feat, tile_b, single_buffer_weights):
    grid = (pl.cdiv(batch, tile_b),)

    def const_spec(shape):
        # Weights/biases have a constant index_map (fetched once, stay resident).
        if single_buffer_weights:
            return pl.BlockSpec(shape, lambda i: (0, 0),
                                pipeline_mode=pl.Buffered(1))
        return pl.BlockSpec(shape, lambda i: (0, 0))

    # advisory cost estimate so XLA schedules surrounding ops sensibly
    flops = 2 * batch * (feat * H0 + H0 * H1 + H1 * OUT_PAD)
    transcendentals = batch * (H0 + H1 + OUT_PAD)
    bytes_accessed = (
        batch * feat * 4                                  # x (f32, streamed)
        + (feat * H0 + H0 * H1 + H1 * OUT_PAD) * 2        # weights (bf16, once)
        + (H0 + H1 + OUT_PAD) * 4                         # biases (f32)
        + batch * OUT_PAD * 4                             # output (f32)
    )

    # Real VMEM footprint (double-buffered x/out, resident weights, f32 temporaries),
    # with headroom, capped comfortably below v7x's 64 MiB physical VMEM.
    weight_bufs = 1 if single_buffer_weights else 2
    footprint = (
        tile_b * feat * 4 * 2                              # x tile, 2 buffers
        + tile_b * OUT_PAD * 4 * 2                         # out tile, 2 buffers
        + ((feat * H0 + H0 * H1 + H1 * OUT_PAD) * 2
           + (H0 + H1 + OUT_PAD) * 4) * weight_bufs        # weights + biases
        + tile_b * (H0 + H1 + OUT_PAD) * 6                 # f32 activations + bf16 copies
    )
    vmem_limit = int(min(max(footprint + (8 << 20), 32 << 20), 56 << 20))

    return pl.pallas_call(
        mlp_kernel,
        out_shape=jax.ShapeDtypeStruct((batch, OUT_PAD), jnp.float32),
        grid_spec=pltpu.PrefetchScalarGridSpec(
            num_scalar_prefetch=0,
            grid=grid,
            in_specs=[
                pl.BlockSpec((tile_b, feat), lambda i: (i, 0)),   # x tile (pipelined)
                const_spec((feat, H0)),
                const_spec((1, H0)),
                const_spec((H0, H1)),
                const_spec((1, H1)),
                const_spec((H1, OUT_PAD)),
                const_spec((1, OUT_PAD)),
            ],
            out_specs=pl.BlockSpec((tile_b, OUT_PAD), lambda i: (i, 0)),
        ),
        compiler_params=pltpu.CompilerParams(
            dimension_semantics=("parallel",),   # batch axis shards across v7x's 2 TCs
            vmem_limit_bytes=vmem_limit,
        ),
        cost_estimate=pl.CostEstimate(
            flops=flops,
            transcendentals=transcendentals,
            bytes_accessed=bytes_accessed,
        ),
    )


def mlp_forward(x, prepared_params, tile_b_max=1024):
    """x: (B, C, H, W) float32; prepared_params from prepare_params().
    Returns (B, 10) float32 log-probabilities."""
    B = x.shape[0]
    xf = x.reshape(B, -1).astype(jnp.float32)   # torch.flatten(x, 1); no bf16 HBM copy
    feat = xf.shape[1]
    tile_b = _choose_tile_b(B, tile_b_max)

    try:
        call = _build_call(B, feat, tile_b, single_buffer_weights=True)
        out = jax.block_until_ready(call(xf, *prepared_params))
    except Exception:
        # pipeline_mode=pl.Buffered(1) not supported in this JAX build: fall back to
        # default double-buffered weight specs (~0.6 MiB extra VMEM only).
        call = _build_call(B, feat, tile_b, single_buffer_weights=False)
        out = call(xf, *prepared_params)

    return out[:, :NUM_CLASSES]


def init_params(key, input_features):
    """Deterministic init. Weights stored as (in, out) f32 (transpose of nn.Linear)."""
    dims = [(input_features, H0), (H0, H1), (H1, NUM_CLASSES)]
    params = []
    for i, (fan_in, fan_out) in enumerate(dims):
        kw, kb = jax.random.split(jax.random.fold_in(key, i))
        bound = 1.0 / jnp.sqrt(jnp.float32(fan_in))  # PyTorch Linear default-ish
        w = jax.random.uniform(kw, (fan_in, fan_out), jnp.float32, -bound, bound)
        b = jax.random.uniform(kb, (1, fan_out), jnp.float32, -bound, bound)
        params.extend([w, b])
    return tuple(params)


def reference_forward(x, params):
    """Pure-JAX reference with the same bf16-matmul / f32-accumulate numerics."""
    w0, b0, w1, b1, w2, b2 = params
    xf = x.reshape(x.shape[0], -1).astype(jnp.float32)
    h0 = jax.nn.sigmoid(
        jnp.dot(xf.astype(jnp.bfloat16), w0.astype(jnp.bfloat16),
                preferred_element_type=jnp.float32) + b0)
    h1 = jax.nn.sigmoid(
        jnp.dot(h0.astype(jnp.bfloat16), w1.astype(jnp.bfloat16),
                preferred_element_type=jnp.float32) + b1)
    logits = jnp.dot(h1.astype(jnp.bfloat16), w2.astype(jnp.bfloat16),
                     preferred_element_type=jnp.float32) + b2
    return jax.nn.log_softmax(logits, axis=1)


if __name__ == "__main__":
    key = jax.random.PRNGKey(0)
    kx, kp = jax.random.split(key)

    # Small input consistent with the module: batch=2, C=4, H=W=16 -> 1024 features.
    x = jax.random.normal(kx, (2, 4, 16, 16), dtype=jnp.float32)
    raw_params = init_params(kp, input_features=4 * 16 * 16)
    params = prepare_params(raw_params)   # one-time cast/pad, reused across calls

    out = mlp_forward(x, params)
    out = jax.block_until_ready(out)

    ref = reference_forward(x, raw_params)
    assert out.shape == (2, NUM_CLASSES)
    assert bool(jnp.allclose(out, ref, atol=1e-3, rtol=1e-3)), (
        f"max abs diff {jnp.max(jnp.abs(out - ref))}")

    print("KERNEL_OK")
</pallas_src>

<mosaic_0001>
module attributes {stable_mosaic.version = 11 : i64} {
  func.func @mlp_kernel(%arg0: i32, %arg1: memref<2x1024xf32, #tpu.memory_space<vmem>>, %arg2: memref<1024x512xbf16, #tpu.memory_space<vmem>>, %arg3: memref<1x512xf32, #tpu.memory_space<vmem>>, %arg4: memref<512x128xbf16, #tpu.memory_space<vmem>>, %arg5: memref<1x128xf32, #tpu.memory_space<vmem>>, %arg6: memref<128x128xbf16, #tpu.memory_space<vmem>>, %arg7: memref<1x128xf32, #tpu.memory_space<vmem>>, %arg8: memref<2x128xf32, #tpu.memory_space<vmem>>) attributes {dimension_semantics = [#tpu.dimension_semantics<parallel>], iteration_bounds = array<i64: 1>, scalar_prefetch = 0 : i64, scratch_operands = 0 : i64, tpu.core_type = #tpu.core_type<tc>, window_params = [{transform_indices = @transform_0, window_bounds = array<i64: 2, 1024>}, {pipeline_mode = #tpu.pipeline_mode<synchronous>, transform_indices = @transform_1, window_bounds = array<i64: 1024, 512>}, {pipeline_mode = #tpu.pipeline_mode<synchronous>, transform_indices = @transform_2, window_bounds = array<i64: 1, 512>}, {pipeline_mode = #tpu.pipeline_mode<synchronous>, transform_indices = @transform_3, window_bounds = array<i64: 512, 128>}, {pipeline_mode = #tpu.pipeline_mode<synchronous>, transform_indices = @transform_4, window_bounds = array<i64: 1, 128>}, {pipeline_mode = #tpu.pipeline_mode<synchronous>, transform_indices = @transform_5, window_bounds = array<i64: 128, 128>}, {pipeline_mode = #tpu.pipeline_mode<synchronous>, transform_indices = @transform_6, window_bounds = array<i64: 1, 128>}, {transform_indices = @transform_7, window_bounds = array<i64: 2, 128>}]} {
    %c0 = arith.constant 0 : index
    %c0_0 = arith.constant 0 : index
    %0 = vector.load %arg1[%c0, %c0_0] : memref<2x1024xf32, #tpu.memory_space<vmem>>, vector<2x1024xf32>
    %1 = arith.truncf %0 : vector<2x1024xf32> to vector<2x1024xbf16>
    %c0_1 = arith.constant 0 : index
    %c0_2 = arith.constant 0 : index
    %2 = vector.load %arg2[%c0_1, %c0_2] : memref<1024x512xbf16, #tpu.memory_space<vmem>>, vector<1024x512xbf16>
    %cst = arith.constant dense<0.000000e+00> : vector<2x512xf32>
    %3 = tpu.matmul %1, %2, %cst {dimension_numbers = #tpu.dot_dimension_numbers<[1], [0], [0], [1], [0, 0, 1, 1], [], []>} : vector<2x1024xbf16>, vector<1024x512xbf16>, vector<2x512xf32> -> vector<2x512xf32>
    %c0_3 = arith.constant 0 : index
    %c0_4 = arith.constant 0 : index
    %4 = vector.load %arg3[%c0_3, %c0_4] : memref<1x512xf32, #tpu.memory_space<vmem>>, vector<1x512xf32>
    %5 = vector.broadcast %4 : vector<1x512xf32> to vector<2x512xf32>
    %6 = arith.addf %3, %5 : vector<2x512xf32>
    %7 = arith.negf %6 : vector<2x512xf32>
    %8 = math.exp %7 : vector<2x512xf32>
    %cst_5 = arith.constant 1.000000e+00 : f32
    %9 = vector.broadcast %cst_5 : f32 to vector<2x512xf32>
    %10 = arith.addf %9, %8 : vector<2x512xf32>
    %11 = arith.divf %9, %10 : vector<2x512xf32>
    %12 = arith.truncf %11 : vector<2x512xf32> to vector<2x512xbf16>
    %c0_6 = arith.constant 0 : index
    %c0_7 = arith.constant 0 : index
    %13 = vector.load %arg4[%c0_6, %c0_7] : memref<512x128xbf16, #tpu.memory_space<vmem>>, vector<512x128xbf16>
    %cst_8 = arith.constant dense<0.000000e+00> : vector<2x128xf32>
    %14 = tpu.matmul %12, %13, %cst_8 {dimension_numbers = #tpu.dot_dimension_numbers<[1], [0], [0], [1], [0, 0, 1, 1], [], []>} : vector<2x512xbf16>, vector<512x128xbf16>, vector<2x128xf32> -> vector<2x128xf32>
    %c0_9 = arith.constant 0 : index
    %c0_10 = arith.constant 0 : index
    %15 = vector.load %arg5[%c0_9, %c0_10] : memref<1x128xf32, #tpu.memory_space<vmem>>, vector<1x128xf32>
    %16 = vector.broadcast %15 : vector<1x128xf32> to vector<2x128xf32>
    %17 = arith.addf %14, %16 : vector<2x128xf32>
    %18 = arith.negf %17 : vector<2x128xf32>
    %19 = math.exp %18 : vector<2x128xf32>
    %cst_11 = arith.constant 1.000000e+00 : f32
    %20 = vector.broadcast %cst_11 : f32 to vector<2x128xf32>
    %21 = arith.addf %20, %19 : vector<2x128xf32>
    %22 = arith.divf %20, %21 : vector<2x128xf32>
    %23 = arith.truncf %22 : vector<2x128xf32> to vector<2x128xbf16>
    %c0_12 = arith.constant 0 : index
    %c0_13 = arith.constant 0 : index
    %24 = vector.load %arg6[%c0_12, %c0_13] : memref<128x128xbf16, #tpu.memory_space<vmem>>, vector<128x128xbf16>
    %cst_14 = arith.constant dense<0.000000e+00> : vector<2x128xf32>
    %25 = tpu.matmul %23, %24, %cst_14 {dimension_numbers = #tpu.dot_dimension_numbers<[1], [0], [0], [1], [0, 0, 1, 1], [], []>} : vector<2x128xbf16>, vector<128x128xbf16>, vector<2x128xf32> -> vector<2x128xf32>
    %c0_15 = arith.constant 0 : index
    %c0_16 = arith.constant 0 : index
    %26 = vector.load %arg7[%c0_15, %c0_16] : memref<1x128xf32, #tpu.memory_space<vmem>>, vector<1x128xf32>
    %27 = vector.broadcast %26 : vector<1x128xf32> to vector<2x128xf32>
    %28 = arith.addf %25, %27 : vector<2x128xf32>
    %cst_17 = arith.constant dense<0xFF800000> : vector<2xf32>
    %29 = vector.multi_reduction <maximumf>, %28, %cst_17 [1] : vector<2x128xf32> to vector<2xf32>
    %30 = vector.shape_cast %29 : vector<2xf32> to vector<2x1xf32>
    %31 = vector.broadcast %30 : vector<2x1xf32> to vector<2x128xf32>
    %32 = arith.subf %28, %31 : vector<2x128xf32>
    %33 = math.exp %32 : vector<2x128xf32>
    %cst_18 = arith.constant dense<0.000000e+00> : vector<2xf32>
    %34 = vector.multi_reduction <add>, %33, %cst_18 [1] : vector<2x128xf32> to vector<2xf32>
    %35 = vector.shape_cast %34 : vector<2xf32> to vector<2x1xf32>
    %36 = math.log %35 : vector<2x1xf32>
    %37 = vector.broadcast %36 : vector<2x1xf32> to vector<2x128xf32>
    %38 = arith.subf %32, %37 : vector<2x128xf32>
    %c0_19 = arith.constant 0 : index
    %c0_20 = arith.constant 0 : index
    %39 = vector.load %arg8[%c0_19, %c0_20] : memref<2x128xf32, #tpu.memory_space<vmem>>, vector<2x128xf32>
    tpu.vector_store %arg8[%c0_19, %c0_20], %38 {strides = array<i32>} : memref<2x128xf32, #tpu.memory_space<vmem>>, vector<2x128xf32>,
    return
  }
  func.func @transform_0(%arg0: i32) -> (i32, i32) {
    %c0_i32 = arith.constant 0 : i32
    %c0_i32_0 = arith.constant 0 : i32
    return %arg0, %c0_i32 : i32, i32
  }
  func.func @transform_1(%arg0: i32) -> (i32, i32) {
    %c0_i32 = arith.constant 0 : i32
    %c0_i32_0 = arith.constant 0 : i32
    %c0_i32_1 = arith.constant 0 : i32
    return %c0_i32, %c0_i32_0 : i32, i32
  }
  func.func @transform_2(%arg0: i32) -> (i32, i32) {
    %c0_i32 = arith.constant 0 : i32
    %c0_i32_0 = arith.constant 0 : i32
    %c0_i32_1 = arith.constant 0 : i32
    return %c0_i32, %c0_i32_0 : i32, i32
  }
  func.func @transform_3(%arg0: i32) -> (i32, i32) {
    %c0_i32 = arith.constant 0 : i32
    %c0_i32_0 = arith.constant 0 : i32
    %c0_i32_1 = arith.constant 0 : i32
    return %c0_i32, %c0_i32_0 : i32, i32
  }
  func.func @transform_4(%arg0: i32) -> (i32, i32) {
    %c0_i32 = arith.constant 0 : i32
    %c0_i32_0 = arith.constant 0 : i32
    %c0_i32_1 = arith.constant 0 : i32
    return %c0_i32, %c0_i32_0 : i32, i32
  }
  func.func @transform_5(%arg0: i32) -> (i32, i32) {
    %c0_i32 = arith.constant 0 : i32
    %c0_i32_0 = arith.constant 0 : i32
    %c0_i32_1 = arith.constant 0 : i32
    return %c0_i32, %c0_i32_0 : i32, i32
  }
  func.func @transform_6(%arg0: i32) -> (i32, i32) {
    %c0_i32 = arith.constant 0 : i32
    %c0_i32_0 = arith.constant 0 : i32
    %c0_i32_1 = arith.constant 0 : i32
    return %c0_i32, %c0_i32_0 : i32, i32
  }
  func.func @transform_7(%arg0: i32) -> (i32, i32) {
    %c0_i32 = arith.constant 0 : i32
    %c0_i32_0 = arith.constant 0 : i32
    return %arg0, %c0_i32 : i32, i32
  }
}

module attributes {stable_mosaic.version = 11 : i64} {
  func.func @mlp_kernel(%arg0: i32, %arg1: memref<2x1024xf32, #tpu.memory_space<vmem>>, %arg2: memref<1024x512xbf16, #tpu.memory_space<vmem>>, %arg3: memref<1x512xf32, #tpu.memory_space<vmem>>, %arg4: memref<512x128xbf16, #tpu.memory_space<vmem>>, %arg5: memref<1x128xf32, #tpu.memory_space<vmem>>, %arg6: memref<128x128xbf16, #tpu.memory_space<vmem>>, %arg7: memref<1x128xf32, #tpu.memory_space<vmem>>, %arg8: memref<2x128xf32, #tpu.memory_space<vmem>>) attributes {dimension_semantics = [#tpu.dimension_semantics<parallel>], iteration_bounds = array<i64: 1>, scalar_prefetch = 0 : i64, scratch_operands = 0 : i64, tpu.core_type = #tpu.core_type<tc>, window_params = [{transform_indices = @transform_0, window_bounds = array<i64: 2, 1024>}, {pipeline_mode = #tpu.pipeline_mode<synchronous>, transform_indices = @transform_1, window_bounds = array<i64: 1024, 512>}, {pipeline_mode = #tpu.pipeline_mode<synchronous>, transform_indices = @transform_2, window_bounds = array<i64: 1, 512>}, {pipeline_mode = #tpu.pipeline_mode<synchronous>, transform_indices = @transform_3, window_bounds = array<i64: 512, 128>}, {pipeline_mode = #tpu.pipeline_mode<synchronous>, transform_indices = @transform_4, window_bounds = array<i64: 1, 128>}, {pipeline_mode = #tpu.pipeline_mode<synchronous>, transform_indices = @transform_5, window_bounds = array<i64: 128, 128>}, {pipeline_mode = #tpu.pipeline_mode<synchronous>, transform_indices = @transform_6, window_bounds = array<i64: 1, 128>}, {transform_indices = @transform_7, window_bounds = array<i64: 2, 128>}]} {
    %c0 = arith.constant 0 : index
    %c0_0 = arith.constant 0 : index
    %0 = vector.load %arg1[%c0, %c0_0] : memref<2x1024xf32, #tpu.memory_space<vmem>>, vector<2x1024xf32>
    %1 = arith.truncf %0 : vector<2x1024xf32> to vector<2x1024xbf16>
    %c0_1 = arith.constant 0 : index
    %c0_2 = arith.constant 0 : index
    %2 = vector.load %arg2[%c0_1, %c0_2] : memref<1024x512xbf16, #tpu.memory_space<vmem>>, vector<1024x512xbf16>
    %cst = arith.constant dense<0.000000e+00> : vector<2x512xf32>
    %3 = tpu.matmul %1, %2, %cst {dimension_numbers = #tpu.dot_dimension_numbers<[1], [0], [0], [1], [0, 0, 1, 1], [], []>} : vector<2x1024xbf16>, vector<1024x512xbf16>, vector<2x512xf32> -> vector<2x512xf32>
    %c0_3 = arith.constant 0 : index
    %c0_4 = arith.constant 0 : index
    %4 = vector.load %arg3[%c0_3, %c0_4] : memref<1x512xf32, #tpu.memory_space<vmem>>, vector<1x512xf32>
    %5 = vector.broadcast %4 : vector<1x512xf32> to vector<2x512xf32>
    %6 = arith.addf %3, %5 : vector<2x512xf32>
    %7 = arith.negf %6 : vector<2x512xf32>
    %8 = math.exp %7 : vector<2x512xf32>
    %cst_5 = arith.constant 1.000000e+00 : f32
    %9 = vector.broadcast %cst_5 : f32 to vector<2x512xf32>
    %10 = arith.addf %9, %8 : vector<2x512xf32>
    %11 = arith.divf %9, %10 : vector<2x512xf32>
    %12 = arith.truncf %11 : vector<2x512xf32> to vector<2x512xbf16>
    %c0_6 = arith.constant 0 : index
    %c0_7 = arith.constant 0 : index
    %13 = vector.load %arg4[%c0_6, %c0_7] : memref<512x128xbf16, #tpu.memory_space<vmem>>, vector<512x128xbf16>
    %cst_8 = arith.constant dense<0.000000e+00> : vector<2x128xf32>
    %14 = tpu.matmul %12, %13, %cst_8 {dimension_numbers = #tpu.dot_dimension_numbers<[1], [0], [0], [1], [0, 0, 1, 1], [], []>} : vector<2x512xbf16>, vector<512x128xbf16>, vector<2x128xf32> -> vector<2x128xf32>
    %c0_9 = arith.constant 0 : index
    %c0_10 = arith.constant 0 : index
    %15 = vector.load %arg5[%c0_9, %c0_10] : memref<1x128xf32, #tpu.memory_space<vmem>>, vector<1x128xf32>
    %16 = vector.broadcast %15 : vector<1x128xf32> to vector<2x128xf32>
    %17 = arith.addf %14, %16 : vector<2x128xf32>
    %18 = arith.negf %17 : vector<2x128xf32>
    %19 = math.exp %18 : vector<2x128xf32>
    %cst_11 = arith.constant 1.000000e+00 : f32
    %20 = vector.broadcast %cst_11 : f32 to vector<2x128xf32>
    %21 = arith.addf %20, %19 : vector<2x128xf32>
    %22 = arith.divf %20, %21 : vector<2x128xf32>
    %23 = arith.truncf %22 : vector<2x128xf32> to vector<2x128xbf16>
    %c0_12 = arith.constant 0 : index
    %c0_13 = arith.constant 0 : index
    %24 = vector.load %arg6[%c0_12, %c0_13] : memref<128x128xbf16, #tpu.memory_space<vmem>>, vector<128x128xbf16>
    %cst_14 = arith.constant dense<0.000000e+00> : vector<2x128xf32>
    %25 = tpu.matmul %23, %24, %cst_14 {dimension_numbers = #tpu.dot_dimension_numbers<[1], [0], [0], [1], [0, 0, 1, 1], [], []>} : vector<2x128xbf16>, vector<128x128xbf16>, vector<2x128xf32> -> vector<2x128xf32>
    %c0_15 = arith.constant 0 : index
    %c0_16 = arith.constant 0 : index
    %26 = vector.load %arg7[%c0_15, %c0_16] : memref<1x128xf32, #tpu.memory_space<vmem>>, vector<1x128xf32>
    %27 = vector.broadcast %26 : vector<1x128xf32> to vector<2x128xf32>
    %28 = arith.addf %25, %27 : vector<2x128xf32>
    %cst_17 = arith.constant dense<0xFF800000> : vector<2xf32>
    %29 = vector.multi_reduction <maximumf>, %28, %cst_17 [1] : vector<2x128xf32> to vector<2xf32>
    %30 = vector.shape_cast %29 : vector<2xf32> to vector<2x1xf32>
    %31 = vector.broadcast %30 : vector<2x1xf32> to vector<2x128xf32>
    %32 = arith.subf %28, %31 : vector<2x128xf32>
    %33 = math.exp %32 : vector<2x128xf32>
    %cst_18 = arith.constant dense<0.000000e+00> : vector<2xf32>
    %34 = vector.multi_reduction <add>, %33, %cst_18 [1] : vector<2x128xf32> to vector<2xf32>
    %35 = vector.shape_cast %34 : vector<2xf32> to vector<2x1xf32>
    %36 = math.log %35 : vector<2x1xf32>
    %37 = vector.broadcast %36 : vector<2x1xf32> to vector<2x128xf32>
    %38 = arith.subf %32, %37 : vector<2x128xf32>
    %c0_19 = arith.constant 0 : index
    %c0_20 = arith.constant 0 : index
    %39 = vector.load %arg8[%c0_19, %c0_20] : memref<2x128xf32, #tpu.memory_space<vmem>>, vector<2x128xf32>
    tpu.vector_store %arg8[%c0_19, %c0_20], %38 {strides = array<i32>} : memref<2x128xf32, #tpu.memory_space<vmem>>, vector<2x128xf32>,
    return
  }
  func.func @transform_0(%arg0: i32) -> (i32, i32) {
    %c0_i32 = arith.constant 0 : i32
    %c0_i32_0 = arith.constant 0 : i32
    return %arg0, %c0_i32 : i32, i32
  }
  func.func @transform_1(%arg0: i32) -> (i32, i32) {
    %c0_i32 = arith.constant 0 : i32
    %c0_i32_0 = arith.constant 0 : i32
    %c0_i32_1 = arith.constant 0 : i32
    return %c0_i32, %c0_i32_0 : i32, i32
  }
  func.func @transform_2(%arg0: i32) -> (i32, i32) {
    %c0_i32 = arith.constant 0 : i32
    %c0_i32_0 = arith.constant 0 : i32
    %c0_i32_1 = arith.constant 0 : i32
    return %c0_i32, %c0_i32_0 : i32, i32
  }
  func.func @transform_3(%arg0: i32) -> (i32, i32) {
    %c0_i32 = arith.constant 0 : i32
    %c0_i32_0 = arith.constant 0 : i32
    %c0_i32_1 = arith.constant 0 : i32
    return %c0_i32, %c0_i32_0 : i32, i32
  }
  func.func @transform_4(%arg0: i32) -> (i32, i32) {
    %c0_i32 = arith.constant 0 : i32
    %c0_i32_0 = arith.constant 0 : i32
    %c0_i32_1 = arith.constant 0 : i32
    return %c0_i32, %c0_i32_0 : i32, i32
  }
  func.func @transform_5(%arg0: i32) -> (i32, i32) {
    %c0_i32 = arith.constant 0 : i32
    %c0_i32_0 = arith.constant 0 : i32
    %c0_i32_1 = arith.constant 0 : i32
    return %c0_i32, %c0_i32_0 : i32, i32
  }
  func.func @transform_6(%arg0: i32) -> (i32, i32) {
    %c0_i32 = arith.constant 0 : i32
    %c0_i32_0 = arith.constant 0 : i32
    %c0_i32_1 = arith.constant 0 : i32
    return %c0_i32, %c0_i32_0 : i32, i32
  }
  func.func @transform_7(%arg0: i32) -> (i32, i32) {
    %c0_i32 = arith.constant 0 : i32
    %c0_i32_0 = arith.constant 0 : i32
    return %arg0, %c0_i32 : i32, i32
  }
}

</mosaic_0001>

<bundles_post_ra>
// kernel: tpu_custom_call.1
= control target key start
LH: loop header
LB: loop body
LE: loop exit
PB: predicated region body
PF: predicated region fallthrough
CT: control target
= control target key end

     0   :  { %12 = vsyncpa [#allocation3], 0  ;;  %s3682_s0 = inlined_call_operand.hbm [shape: f32[2,1024], index: 0, kind: input, shape index: {}]   ;;  %s3683_s1 = inlined_call_operand.hbm [shape: bf16[1024,512], index: 1, kind: input, shape index: {}]   ;;  %s3684_s2 = inlined_call_operand.vmem [shape: f32[1,512], index: 2, kind: input, shape index: {}]   ;;  %s3685_s3 = inlined_call_operand.hbm [shape: bf16[512,128], index: 3, kind: input, shape index: {}]   ;;  %s3686_s4 = inlined_call_operand.vmem [shape: f32[1,128], index: 4, kind: input, shape index: {}]   ;;  %s3687_s5 = inlined_call_operand.hbm [shape: bf16[128,128], index: 5, kind: input, shape index: {}]   ;;  %s3688_s6 = inlined_call_operand.vmem [shape: f32[1,128], index: 6, kind: input, shape index: {}]   ;;  %s3689_s7 = inlined_call_operand.hbm [shape: f32[2,128], index: 7, kind: output, shape index: {}]  }
   0x1   :  { %13 = vsyncpa [#allocation6], 0 }
   0x2   :  { %14 = vsyncpa [#allocation9], 0 }
   0x3   :  { %15 = vsyncpa [#allocation4], 0  ;;  %s3525_s24 = smov [#allocation5]   ;;  %s3407_s28 = scalar_lea.hbm %s3683_s1, 32768 }
   0x4   :  { %s31_s25 = sshll.u32 %s3525_s24, 4  ;;  %p3408_p0 = scmp.ne.s32.totalorder %s3683_s1, %s3407_s28  ;;  %s32_s25 = int_to_ptr.vmem [resolvable:$true] %s31_s25 }
   0x5   :  { %p3411_p1 = scmp.lt.u32.totalorder %s3407_s28, %s3683_s1 }
   0x7   :  { %p3413_p2 = pnand %p3411_p1, %p3408_p0 }
   0x9   :  { %3416 = shalt.err (!%p3413_p2)
}
   0xa   :  { %s3417_s10 = scalar_lea.vmem %s32_s25, 32768  ;;  %p3422_p4 = scmp.lt.s32.totalorder %s32_s25, %s32_s25 }
   0xb   :  { %p3418_p3 = scmp.ne.s32.totalorder %s32_s25, %s3417_s10  ;;  %p3423_p5 = scmp.lt.s32.totalorder %s3417_s10, %s3417_s10 }
   0xd   :  { %p3424_p6 = por %p3423_p5, %p3422_p4 }
   0xf   :  { %p3425_p7 = pnand %p3424_p6, %p3418_p3 }
  0x11   :  { %3428 = shalt.err (!%p3425_p7)
}
  0x12   :  { %s3526_s11 = smov 256   ;;  %s3527_s12 = smov 16  }
  0x13   :  { %37 = dma.hbm_to_vmem [thread:$0]  %s3683_s1, 32768, %s32_s25, [#allocation6], %s3526_s11, %s3526_s11, %s3527_s12  }
  0x14   :  { %s3528_s15 = smov [#allocation2]   ;;  %s3529_s17 = smov [#allocation7]  }
  0x15   :  { %s22_s16 = sshll.u32 %s3528_s15, 4  ;;  %s45_s18 = sshll.u32 %s3529_s17, 4  ;;  %s23_s16 = int_to_ptr.vmem [resolvable:$true] %s22_s16  ;;  %s46_s18 = int_to_ptr.vmem [resolvable:$true] %s45_s18 }
  0x16   :  { %s3429_s21 = scalar_lea.hbm %s3682_s0, 256 }
  0x17   :  { %p3430_p8 = scmp.ne.s32.totalorder %s3682_s0, %s3429_s21  ;;  %p3433_p9 = scmp.lt.u32.totalorder %s3429_s21, %s3682_s0 }
  0x19   :  { %p3435_p10 = pnand %p3433_p9, %p3430_p8 }
  0x1b   :  { %3438 = shalt.err (!%p3435_p10)
}
  0x1c   :  { %s3439_s1 = scalar_lea.vmem %s23_s16, 256  ;;  %p3444_p12 = scmp.lt.s32.totalorder %s23_s16, %s23_s16 }
  0x1d   :  { %p3440_p11 = scmp.ne.s32.totalorder %s23_s16, %s3439_s1  ;;  %p3445_p13 = scmp.lt.s32.totalorder %s3439_s1, %s3439_s1 }
  0x1f   :  { %p3446_p0 = por %p3445_p13, %p3444_p12 }
  0x21   :  { %p3447_p1 = pnand %p3446_p0, %p3440_p11 }
  0x23   :  { %3450 = shalt.err (!%p3447_p1)
}
  0x24   :  { %25 = dma.hbm_to_vmem [thread:$0]  %s3682_s0, 256, %s23_s16, [#allocation3]  }
  0x25   :  { %s3451_s30 = scalar_lea.hbm %s3685_s3, 4096 }
  0x26   :  { %p3452_p2 = scmp.ne.s32.totalorder %s3685_s3, %s3451_s30  ;;  %p3455_p3 = scmp.lt.u32.totalorder %s3451_s30, %s3685_s3 }
  0x28   :  { %p3457_p4 = pnand %p3455_p3, %p3452_p2 }
  0x2a   :  { %3460 = shalt.err (!%p3457_p4)
}
  0x2b   :  { %s3461_s12 = scalar_lea.vmem %s46_s18, 4096  ;;  %p3466_p6 = scmp.lt.s32.totalorder %s46_s18, %s46_s18 }
  0x2c   :  { %p3462_p5 = scmp.ne.s32.totalorder %s46_s18, %s3461_s12  ;;  %p3467_p7 = scmp.lt.s32.totalorder %s3461_s12, %s3461_s12 }
  0x2e   :  { %p3468_p8 = por %p3467_p7, %p3466_p6 }
  0x30   :  { %p3469_p9 = pnand %p3468_p8, %p3462_p5 }
  0x32   :  { %3472 = shalt.err (!%p3469_p9)
}
  0x33   :  { %s3530_s0 = smov 64   ;;  %s3531_s13 = smov 4  }
  0x34   :  { %51 = dma.hbm_to_vmem [thread:$0]  %s3685_s3, 4096, %s46_s18, [#allocation6], %s3530_s0, %s3530_s0, %s3531_s13  }
  0x35   :  { %s3532_s16 = smov [#allocation8]   ;;  %s3473_s21 = scalar_lea.hbm %s3687_s5, 1024 }
  0x36   :  { %s59_s17 = sshll.u32 %s3532_s16, 4  ;;  %p3474_p10 = scmp.ne.s32.totalorder %s3687_s5, %s3473_s21  ;;  %s60_s17 = int_to_ptr.vmem [resolvable:$true] %s59_s17 }
  0x37   :  { %p3477_p11 = scmp.lt.u32.totalorder %s3473_s21, %s3687_s5 }
  0x39   :  { %p3479_p12 = pnand %p3477_p11, %p3474_p10 }
  0x3b   :  { %3482 = shalt.err (!%p3479_p12)
}
  0x3c   :  { %s3483_s1 = scalar_lea.vmem %s60_s17, 1024  ;;  %p3488_p0 = scmp.lt.s32.totalorder %s60_s17, %s60_s17 }
  0x3d   :  { %p3484_p13 = scmp.ne.s32.totalorder %s60_s17, %s3483_s1  ;;  %p3489_p1 = scmp.lt.s32.totalorder %s3483_s1, %s3483_s1 }
  0x3f   :  { %p3490_p2 = por %p3489_p1, %p3488_p0 }
  0x41   :  { %p3491_p3 = pnand %p3490_p2, %p3484_p13 }
  0x43   :  { %3494 = shalt.err (!%p3491_p3)
}
  0x44   :  { %65 = dma.hbm_to_vmem [thread:$0]  %s3687_s5, 1024, %s60_s17, [#allocation9], %s3530_s0, %s3530_s0, %s3531_s13  }
  0x45   :  { %3517 = dma.done.wait [#allocation3], 256  }
  0x46   :  { %3518 = vsyncadd [#allocation3], 4294967040 }
  0x47   :  { %3519 = dma.done.wait [#allocation6], 36864  }
  0x48   :  { %3520 = vsyncadd [#allocation6], 4294930432 }
  0x49   :  { %3521 = dma.done.wait [#allocation9], 1024  }
  0x4a   :  { %3522 = vsyncadd [#allocation9], 4294966272  ;;  %v2957_v0 = vld [vmem:[#allocation5 + $0x4] ss:$16 sps:$4 sm:$0xff]   ;;  %v2959_v1 = vld [vmem:[#allocation5 + $0xc] ss:$16 sps:$4 sm:$0xff]   ;;  %v89_v38 = vlaneseq }
  0x4b   :  { %1693 = vmatprep.subr.bf16.mxu0 %v2957_v0  ;;  %v2961_v2 = vld [vmem:[#allocation5] ss:$16 sps:$4 sm:$0xff]   ;;  %v2962_v3 = vld [vmem:[#allocation5 + $0x8] ss:$16 sps:$4 sm:$0xff]   ;;  %1857 = vmatprep.subr.bf16.mxu1 %v2959_v1  ;;  %v2963_v4 = vld [vmem:[#allocation5 + $0x24] ss:$16 sps:$4 sm:$0xff]  }
  0x4c   :  { %1694 = vmatpush1.bf16.msra.mxu0 %v2961_v2  ;;  %1858 = vmatpush1.bf16.msra.mxu1 %v2962_v3  ;;  %v2965_v5 = vld [vmem:[#allocation5 + $0x2c] ss:$16 sps:$4 sm:$0xff]   ;;  %v2967_v6 = vld [vmem:[#allocation5 + $0x20] ss:$16 sps:$4 sm:$0xff]   ;;  %v2968_v7 = vld [vmem:[#allocation5 + $0x28] ss:$16 sps:$4 sm:$0xff]  }
  0x4d   :  { %1695 = vmatprep.subr.bf16.mxu0 %v2963_v4  ;;  %1859 = vmatprep.subr.bf16.mxu1 %v2965_v5  ;;  %v2969_v8 = vld [vmem:[#allocation5 + $0x44] ss:$16 sps:$4 sm:$0xff]   ;;  %v2971_v9 = vld [vmem:[#allocation5 + $0x4c] ss:$16 sps:$4 sm:$0xff]   ;;  %v2973_v10 = vld [vmem:[#allocation5 + $0x40] ss:$16 sps:$4 sm:$0xff]  }
  0x4e   :  { %v2974_v11 = vld [vmem:[#allocation5 + $0x48] ss:$16 sps:$4 sm:$0xff]   ;;  %v2975_v12 = vld [vmem:[#allocation5 + $0x64] ss:$16 sps:$4 sm:$0xff]   ;;  %v2977_v13 = vld [vmem:[#allocation5 + $0x6c] ss:$16 sps:$4 sm:$0xff]  }
  0x4f   :  { %v2979_v14 = vld [vmem:[#allocation5 + $0x60] ss:$16 sps:$4 sm:$0xff]   ;;  %v2980_v15 = vld [vmem:[#allocation5 + $0x68] ss:$16 sps:$4 sm:$0xff]   ;;  %v2981_v16 = vld [vmem:[#allocation5 + $0x84] ss:$16 sps:$4 sm:$0xff]  }
  0x50   :  { %1696 = vmatpush1.bf16.msra.mxu0 %v2967_v6  ;;  %1860 = vmatpush1.bf16.msra.mxu1 %v2968_v7  ;;  %v2983_v17 = vld [vmem:[#allocation5 + $0x8c] ss:$16 sps:$4 sm:$0xff]   ;;  %v2985_v18 = vld [vmem:[#allocation5 + $0x80] ss:$16 sps:$4 sm:$0xff]   ;;  %v2986_v19 = vld [vmem:[#allocation5 + $0x88] ss:$16 sps:$4 sm:$0xff]  }
  0x51   :  { %1697 = vmatprep.subr.bf16.mxu0 %v2969_v8  ;;  %1861 = vmatprep.subr.bf16.mxu1 %v2971_v9  ;;  %v2987_v20 = vld [vmem:[#allocation5 + $0xa4] ss:$16 sps:$4 sm:$0xff]   ;;  %v2989_v21 = vld [vmem:[#allocation5 + $0xac] ss:$16 sps:$4 sm:$0xff]   ;;  %v2991_v22 = vld [vmem:[#allocation5 + $0xa0] ss:$16 sps:$4 sm:$0xff]  }
  0x52   :  { %v2992_v23 = vld [vmem:[#allocation5 + $0xa8] ss:$16 sps:$4 sm:$0xff]   ;;  %v2993_v24 = vld [vmem:[#allocation5 + $0xc4] ss:$16 sps:$4 sm:$0xff]   ;;  %v2995_v25 = vld [vmem:[#allocation5 + $0xcc] ss:$16 sps:$4 sm:$0xff]  }
  0x53   :  { %v2997_v26 = vld [vmem:[#allocation5 + $0xc0] ss:$16 sps:$4 sm:$0xff]   ;;  %v2998_v27 = vld [vmem:[#allocation5 + $0xc8] ss:$16 sps:$4 sm:$0xff]   ;;  %v2999_v28 = vld [vmem:[#allocation5 + $0xe4] ss:$16 sps:$4 sm:$0xff]  }
  0x54   :  { %1698 = vmatpush1.bf16.msra.mxu0 %v2973_v10  ;;  %1862 = vmatpush1.bf16.msra.mxu1 %v2974_v11  ;;  %v3001_v29 = vld [vmem:[#allocation5 + $0xec] ss:$16 sps:$4 sm:$0xff]   ;;  %v3003_v30 = vld [vmem:[#allocation5 + $0xe0] ss:$16 sps:$4 sm:$0xff]   ;;  %v3004_v31 = vld [vmem:[#allocation5 + $0xe8] ss:$16 sps:$4 sm:$0xff]  }
  0x55   :  { %1699 = vmatprep.subr.bf16.mxu0 %v2975_v12  ;;  %1863 = vmatprep.subr.bf16.mxu1 %v2977_v13  ;;  %v3005_v32 = vld [vmem:[#allocation5 + $0x104] ss:$16 sps:$4 sm:$0xff]   ;;  %v3007_v33 = vld [vmem:[#allocation5 + $0x10c] ss:$16 sps:$4 sm:$0xff]   ;;  %v3009_v34 = vld [vmem:[#allocation5 + $0x100] ss:$16 sps:$4 sm:$0xff]  }
  0x56   :  { %v3010_v35 = vld [vmem:[#allocation5 + $0x108] ss:$16 sps:$4 sm:$0xff]   ;;  %v3533_v36 = vmov 1983009808   ;;  %v3011_v39 = vld [vmem:[#allocation5 + $0x124] ss:$16 sps:$4 sm:$0xff]  }
  0x57   :  { %v87_v37 = vunpack.c.l.s4 %v3533_v36  ;;  %v3013_v40 = vld [vmem:[#allocation5 + $0x12c] ss:$16 sps:$4 sm:$0xff]   ;;  %v3015_v41 = vld [vmem:[#allocation5 + $0x120] ss:$16 sps:$4 sm:$0xff]   ;;  %v3625_v43 = vshrl.u32 %v89_v38, 7  ;;  %vm3535_vm0 = vmmov 0  }
  0x58   :  { %1700 = vmatpush1.bf16.msra.mxu0 %v2979_v14  ;;  %1864 = vmatpush1.bf16.msra.mxu1 %v2980_v15  ;;  %v3016_v44 = vld [vmem:[#allocation5 + $0x128] ss:$16 sps:$4 sm:$0xff]   ;;  %v3017_v45 = vld [vmem:[#allocation5 + $0x144] ss:$16 sps:$4 sm:$0xff]   ;;  %v3019_v46 = vld [vmem:[#allocation5 + $0x14c] ss:$16 sps:$4 sm:$0xff]  }
  0x59   :  { %1701 = vmatprep.subr.bf16.mxu0 %v2981_v16  ;;  %1865 = vmatprep.subr.bf16.mxu1 %v2983_v17  ;;  %v88_v42 = vunpack.c.0.s8 %v87_v37  ;;  %v3021_v47 = vld [vmem:[#allocation5 + $0x140] ss:$16 sps:$4 sm:$0xff]   ;;  %v3022_v48 = vld [vmem:[#allocation5 + $0x148] ss:$16 sps:$4 sm:$0xff]   ;;  %v3023_v50 = vld [vmem:[#allocation5 + $0x164] ss:$16 sps:$4 sm:$0xff]  }
  0x5a   :  { %v3025_v51 = vld [vmem:[#allocation5 + $0x16c] ss:$16 sps:$4 sm:$0xff]   ;;  %v81_v52 = vld [vmem:[#allocation2] sm:$0xff]  ;;  %v3028_v55 = vld [vmem:[#allocation5 + $0x168] ss:$16 sps:$4 sm:$0xff]   ;;  %vm2510_vm1 = vcmask 1041408  }
  0x5b   :  { %v3628_v49 = vsub.s32 %v88_v42, %v3625_v43  ;;  %v3027_v53 = vld [vmem:[#allocation5 + $0x160] ss:$16 sps:$4 sm:$0xff]   ;;  %v3029_v56 = vld [vmem:[#allocation5 + $0x184] ss:$16 sps:$4 sm:$0xff]   ;;  %v3031_v57 = vld [vmem:[#allocation5 + $0x18c] ss:$16 sps:$4 sm:$0xff]   ;;  %v85_v4 = vcombine.high %v81_v52, %v81_v52 }
  0x5c   :  { %1702 = vmatpush1.bf16.msra.mxu0 %v2985_v18  ;;  %1866 = vmatpush1.bf16.msra.mxu1 %v2986_v19  ;;  %v3033_v59 = vld [vmem:[#allocation5 + $0x180] ss:$16 sps:$4 sm:$0xff]   ;;  %v3034_v61 = vld [vmem:[#allocation5 + $0x188] ss:$16 sps:$4 sm:$0xff]   ;;  %v3035_v62 = vld [vmem:[#allocation5 + $0x1a4] ss:$16 sps:$4 sm:$0xff]  }
  0x5d   :  { %1703 = vmatprep.subr.bf16.mxu0 %v2987_v20  ;;  %1867 = vmatprep.subr.bf16.mxu1 %v2989_v21  ;;  %v92_v54 = vrot.slane %v81_v52, %v3628_v49  ;;  %v3037_v63 = vld [vmem:[#allocation5 + $0x1ac] ss:$16 sps:$4 sm:$0xff]   ;;  %v3039_v0 = vld [vmem:[#allocation5 + $0x1a0] ss:$16 sps:$4 sm:$0xff]   ;;  %v3040_v1 = vld [vmem:[#allocation5 + $0x1a8] ss:$16 sps:$4 sm:$0xff]   ;;  %v3632_v9 = vrot.slane %v85_v4, %v3628_v49 }
  0x5e   :  { %v3041_v2 = vld [vmem:[#allocation5 + $0x1c4] ss:$16 sps:$4 sm:$0xff]   ;;  %v3043_v3 = vld [vmem:[#allocation5 + $0x1cc] ss:$16 sps:$4 sm:$0xff]   ;;  %v3045_v5 = vld [vmem:[#allocation5 + $0x1c0] ss:$16 sps:$4 sm:$0xff]  }
  0x5f   :  { %v100_v58 = vcombine.high %v92_v54, %v92_v54  ;;  %v3046_v6 = vld [vmem:[#allocation5 + $0x1c8] ss:$16 sps:$4 sm:$0xff]   ;;  %v3047_v7 = vld [vmem:[#allocation5 + $0x1e4] ss:$16 sps:$4 sm:$0xff]   ;;  %v3049_v8 = vld [vmem:[#allocation5 + $0x1ec] ss:$16 sps:$4 sm:$0xff]   ;;  %v101_v14 = vcombine.high %v3632_v9, %v3632_v9  ;;  %v127_v16 = vpack.c.bf16 %v92_v54, %v92_v54 }
  0x60   :  { %1704 = vmatpush1.bf16.msra.mxu0 %v2991_v22  ;;  %1868 = vmatpush1.bf16.msra.mxu1 %v2992_v23  ;;  %v3051_v10 = vld [vmem:[#allocation5 + $0x1e0] ss:$16 sps:$4 sm:$0xff]   ;;  %v3052_v11 = vld [vmem:[#allocation5 + $0x1e8] ss:$16 sps:$4 sm:$0xff]   ;;  %v3056_v12 = vld [vmem:[#allocation5 + $0x204] ss:$16 sps:$4 sm:$0xff]  }
  0x61   :  { %1705 = vmatprep.subr.bf16.mxu0 %v2993_v24  ;;  %1869 = vmatprep.subr.bf16.mxu1 %v2995_v25  ;;  %v128_v60 = vpack.c.bf16 %v100_v58, %v100_v58  ;;  %v3059_v13 = vld [vmem:[#allocation5 + $0x20c] ss:$16 sps:$4 sm:$0xff]   ;;  %v3054_v15 = vld [vmem:[#allocation5 + $0x200] ss:$16 sps:$4 sm:$0xff]   ;;  %v3057_v17 = vld [vmem:[#allocation5 + $0x208] ss:$16 sps:$4 sm:$0xff]   ;;  %v130_v20 = vpack.c.bf16 %v101_v14, %v101_v14 }
  0x62   :  { %v3062_v18 = vld [vmem:[#allocation5 + $0x224] ss:$16 sps:$4 sm:$0xff]   ;;  %v3065_v19 = vld [vmem:[#allocation5 + $0x22c] ss:$16 sps:$4 sm:$0xff]   ;;  %v3060_v21 = vld [vmem:[#allocation5 + $0x220] ss:$16 sps:$4 sm:$0xff]  }
  0x63   :  { %1725 = vmatprep.mubr.bf16.mxu0 %v128_v60  ;;  %1889 = vmatprep.mubr.bf16.mxu1 %v128_v60  ;;  %v3063_v22 = vld [vmem:[#allocation5 + $0x228] ss:$16 sps:$4 sm:$0xff]   ;;  %v3068_v23 = vld [vmem:[#allocation5 + $0x244] ss:$16 sps:$4 sm:$0xff]   ;;  %v3071_v24 = vld [vmem:[#allocation5 + $0x24c] ss:$16 sps:$4 sm:$0xff]  }
  0x64   :  { %1706 = vmatpush1.bf16.msra.mxu0 %v2997_v26  ;;  %1870 = vmatpush1.bf16.msra.mxu1 %v2998_v27  ;;  %v3066_v25 = vld [vmem:[#allocation5 + $0x240] ss:$16 sps:$4 sm:$0xff]   ;;  %v3069_v26 = vld [vmem:[#allocation5 + $0x248] ss:$16 sps:$4 sm:$0xff]   ;;  %v3074_v27 = vld [vmem:[#allocation5 + $0x264] ss:$16 sps:$4 sm:$0xff]  }
  0x65   :  { %1707 = vmatprep.subr.bf16.mxu0 %v2999_v28  ;;  %1871 = vmatprep.subr.bf16.mxu1 %v3001_v29  ;;  %v3077_v28 = vld [vmem:[#allocation5 + $0x26c] ss:$16 sps:$4 sm:$0xff]   ;;  %v3072_v29 = vld [vmem:[#allocation5 + $0x260] ss:$16 sps:$4 sm:$0xff]   ;;  %v3087_v38 = vld [vmem:[#allocation5 + $0x2a8] ss:$16 sps:$4 sm:$0xff]  }
  0x66   :  { %v3089_v36 = vld [vmem:[#allocation5 + $0x2ac] ss:$16 sps:$4 sm:$0xff]   ;;  %v3084_v37 = vld [vmem:[#allocation5 + $0x2a0] ss:$16 sps:$4 sm:$0xff]   ;;  %v3093_v42 = vld [vmem:[#allocation5 + $0x2c8] ss:$16 sps:$4 sm:$0xff]  }
  0x67   :  { %v3105_v52 = vld [vmem:[#allocation5 + $0x308] ss:$16 sps:$4 sm:$0xff]   ;;  %v3113_v54 = vld [vmem:[#allocation5 + $0x32c] ss:$16 sps:$4 sm:$0xff]   ;;  %v3146_v14 = vld [vmem:[#allocation5 + $0x3e4] ss:$16 sps:$4 sm:$0xff]  }
  0x68   :  { %1708 = vmatpush1.bf16.msra.mxu0 %v3003_v30  ;;  %1872 = vmatpush1.bf16.msra.mxu1 %v3004_v31  ;;  %v3075_v30 = vld [vmem:[#allocation5 + $0x268] ss:$16 sps:$4 sm:$0xff]   ;;  %v3080_v31 = vld [vmem:[#allocation5 + $0x284] ss:$16 sps:$4 sm:$0xff]   ;;  %v3119_v58 = vld [vmem:[#allocation5 + $0x34c] ss:$16 sps:$4 sm:$0xff]  }
  0x69   :  { %1709 = vmatprep.subr.bf16.mxu0 %v3005_v32  ;;  %1873 = vmatprep.subr.bf16.mxu1 %v3007_v33  ;;  %v3083_v32 = vld [vmem:[#allocation5 + $0x28c] ss:$16 sps:$4 sm:$0xff]   ;;  %v3078_v33 = vld [vmem:[#allocation5 + $0x280] ss:$16 sps:$4 sm:$0xff]   ;;  %v3117_v60 = vld [vmem:[#allocation5 + $0x348] ss:$16 sps:$4 sm:$0xff]  }
  0x6a   :  { %v3129_v4 = vld [vmem:[#allocation5 + $0x388] ss:$16 sps:$4 sm:$0xff]   ;;  %s3536_s29 = smov [#allocation10]  }
  0x6c   :  { %1710 = vmatpush1.bf16.msra.mxu0 %v3009_v34  ;;  %1874 = vmatpush1.bf16.msra.mxu1 %v3010_v35  ;;  %v3081_v34 = vld [vmem:[#allocation5 + $0x288] ss:$16 sps:$4 sm:$0xff]   ;;  %v3086_v35 = vld [vmem:[#allocation5 + $0x2a4] ss:$16 sps:$4 sm:$0xff]  }
  0x6d   :  { %1711 = vmatprep.subr.bf16.mxu0 %v3011_v39  ;;  %1875 = vmatprep.subr.bf16.mxu1 %v3013_v40  ;;  %v3092_v39 = vld [vmem:[#allocation5 + $0x2c4] ss:$16 sps:$4 sm:$0xff]   ;;  %v3095_v40 = vld [vmem:[#allocation5 + $0x2cc] ss:$16 sps:$4 sm:$0xff]  }
  0x70   :  { %1712 = vmatpush1.bf16.msra.mxu0 %v3015_v41  ;;  %1876 = vmatpush1.bf16.msra.mxu1 %v3016_v44  ;;  %v3090_v41 = vld [vmem:[#allocation5 + $0x2c0] ss:$16 sps:$4 sm:$0xff]   ;;  %v3098_v44 = vld [vmem:[#allocation5 + $0x2e4] ss:$16 sps:$4 sm:$0xff]  }
  0x71   :  { %1713 = vmatprep.subr.bf16.mxu0 %v3017_v45  ;;  %1877 = vmatprep.subr.bf16.mxu1 %v3019_v46  ;;  %v3101_v45 = vld [vmem:[#allocation5 + $0x2ec] ss:$16 sps:$4 sm:$0xff]   ;;  %v3096_v46 = vld [vmem:[#allocation5 + $0x2e0] ss:$16 sps:$4 sm:$0xff]  }
  0x74   :  { %1714 = vmatpush1.bf16.msra.mxu0 %v3021_v47  ;;  %1878 = vmatpush1.bf16.msra.mxu1 %v3022_v48  ;;  %v3099_v47 = vld [vmem:[#allocation5 + $0x2e8] ss:$16 sps:$4 sm:$0xff]   ;;  %v3104_v48 = vld [vmem:[#allocation5 + $0x304] ss:$16 sps:$4 sm:$0xff]  }
  0x75   :  { %1715 = vmatprep.subr.bf16.mxu0 %v3023_v50  ;;  %1879 = vmatprep.subr.bf16.mxu1 %v3025_v51  ;;  %v3107_v50 = vld [vmem:[#allocation5 + $0x30c] ss:$16 sps:$4 sm:$0xff]   ;;  %v3102_v51 = vld [vmem:[#allocation5 + $0x300] ss:$16 sps:$4 sm:$0xff]  }
  0x78   :  { %1716 = vmatpush1.bf16.msra.mxu0 %v3027_v53  ;;  %1880 = vmatpush1.bf16.msra.mxu1 %v3028_v55  ;;  %v3110_v53 = vld [vmem:[#allocation5 + $0x324] ss:$16 sps:$4 sm:$0xff]   ;;  %v3108_v55 = vld [vmem:[#allocation5 + $0x320] ss:$16 sps:$4 sm:$0xff]  }
  0x79   :  { %1717 = vmatprep.subr.bf16.mxu0 %v3029_v56  ;;  %1881 = vmatprep.subr.bf16.mxu1 %v3031_v57  ;;  %v3111_v56 = vld [vmem:[#allocation5 + $0x328] ss:$16 sps:$4 sm:$0xff]   ;;  %v3116_v57 = vld [vmem:[#allocation5 + $0x344] ss:$16 sps:$4 sm:$0xff]  }
  0x7c   :  { %1718 = vmatpush1.bf16.msra.mxu0 %v3033_v59  ;;  %1882 = vmatpush1.bf16.msra.mxu1 %v3034_v61  ;;  %v3114_v59 = vld [vmem:[#allocation5 + $0x340] ss:$16 sps:$4 sm:$0xff]   ;;  %v3122_v61 = vld [vmem:[#allocation5 + $0x364] ss:$16 sps:$4 sm:$0xff]  }
  0x7d   :  { %1719 = vmatprep.subr.bf16.mxu0 %v3035_v62  ;;  %1883 = vmatprep.subr.bf16.mxu1 %v3037_v63  ;;  %v3125_v62 = vld [vmem:[#allocation5 + $0x36c] ss:$16 sps:$4 sm:$0xff]   ;;  %v3120_v63 = vld [vmem:[#allocation5 + $0x360] ss:$16 sps:$4 sm:$0xff]  }
  0x80   :  { %1720 = vmatpush1.bf16.msra.mxu0 %v3039_v0  ;;  %1884 = vmatpush1.bf16.msra.mxu1 %v3040_v1  ;;  %v3123_v0 = vld [vmem:[#allocation5 + $0x368] ss:$16 sps:$4 sm:$0xff]   ;;  %v3128_v1 = vld [vmem:[#allocation5 + $0x384] ss:$16 sps:$4 sm:$0xff]  }
  0x81   :  { %1721 = vmatprep.subr.bf16.mxu0 %v3041_v2  ;;  %1885 = vmatprep.subr.bf16.mxu1 %v3043_v3  ;;  %v3131_v2 = vld [vmem:[#allocation5 + $0x38c] ss:$16 sps:$4 sm:$0xff]   ;;  %v3126_v3 = vld [vmem:[#allocation5 + $0x380] ss:$16 sps:$4 sm:$0xff]  }
  0x84   :  { %1722 = vmatpush1.bf16.msra.mxu0 %v3045_v5  ;;  %1886 = vmatpush1.bf16.msra.mxu1 %v3046_v6  ;;  %v3134_v5 = vld [vmem:[#allocation5 + $0x3a4] ss:$16 sps:$4 sm:$0xff]   ;;  %v3137_v6 = vld [vmem:[#allocation5 + $0x3ac] ss:$16 sps:$4 sm:$0xff]  }
  0x85   :  { %1723 = vmatprep.subr.bf16.mxu0 %v3047_v7  ;;  %1887 = vmatprep.subr.bf16.mxu1 %v3049_v8  ;;  %v3132_v7 = vld [vmem:[#allocation5 + $0x3a0] ss:$16 sps:$4 sm:$0xff]   ;;  %v3135_v8 = vld [vmem:[#allocation5 + $0x3a8] ss:$16 sps:$4 sm:$0xff]  }
  0x88   :  { %1724 = vmatpush1.bf16.msra.mxu0 %v3051_v10  ;;  %1888 = vmatpush1.bf16.msra.mxu1 %v3052_v11  ;;  %v3140_v10 = vld [vmem:[#allocation5 + $0x3c4] ss:$16 sps:$4 sm:$0xff]   ;;  %v3143_v11 = vld [vmem:[#allocation5 + $0x3cc] ss:$16 sps:$4 sm:$0xff]  }
  0x89   :  { %1734 = vmatprep.subr.bf16.mxu0 %v3056_v12  ;;  %1898 = vmatprep.subr.bf16.mxu1 %v3059_v13  ;;  %v3138_v12 = vld [vmem:[#allocation5 + $0x3c0] ss:$16 sps:$4 sm:$0xff]   ;;  %v3141_v13 = vld [vmem:[#allocation5 + $0x3c8] ss:$16 sps:$4 sm:$0xff]  }
  0x8b   :  { %1726 = vmatmul.mubr.bf16.vlgmr.msra.gmra.mrb[0].mxu0 %v127_v16  ;;  %1890 = vmatmul.mubr.bf16.vlgmr.msra.gmra.mrb[0].mxu1 %v127_v16  ;;  %v3144_v16 = vld [vmem:[#allocation5 + $0x3e0] ss:$16 sps:$4 sm:$0xff]  }
  0x8c   :  { %1735 = vmatpush1.bf16.msra.mxu0 %v3054_v15  ;;  %1899 = vmatpush1.bf16.msra.mxu1 %v3057_v17  ;;  %v3149_v15 = vld [vmem:[#allocation5 + $0x3ec] ss:$16 sps:$4 sm:$0xff]   ;;  %v3147_v17 = vld [vmem:[#allocation5 + $0x3e8] ss:$16 sps:$4 sm:$0xff]  }
  0x8d   :  { %1736 = vmatprep.subr.bf16.mxu0 %v3062_v18  ;;  %1900 = vmatprep.subr.bf16.mxu1 %v3065_v19  ;;  %v3152_v18 = vld [vmem:[#allocation5 + $0x404] ss:$16 sps:$4 sm:$0xff]   ;;  %v3155_v19 = vld [vmem:[#allocation5 + $0x40c] ss:$16 sps:$4 sm:$0xff]  }
  0x8e   :  { %1766 = vmatprep.mubr.bf16.mxu0 %v130_v20  ;;  %1930 = vmatprep.mubr.bf16.mxu1 %v130_v20  ;;  %v3150_v20 = vld [vmem:[#allocation5 + $0x400] ss:$16 sps:$4 sm:$0xff]  }
  0x90   :  { %1737 = vmatpush1.bf16.msra.mxu0 %v3060_v21  ;;  %1901 = vmatpush1.bf16.msra.mxu1 %v3063_v22  ;;  %v129_v21 = vpack.c.bf16 %v3632_v9, %v3632_v9  ;;  %v3153_v22 = vld [vmem:[#allocation5 + $0x408] ss:$16 sps:$4 sm:$0xff]   ;;  %v3156_v9 = vld [vmem:[#allocation5 + $0x420] ss:$16 sps:$4 sm:$0xff]  }
  0x91   :  { %1738 = vmatprep.subr.bf16.mxu0 %v3068_v23  ;;  %1902 = vmatprep.subr.bf16.mxu1 %v3071_v24  ;;  %v3638_v23 = vld [vmem:[#allocation2 + $0x8] sm:$0xff]  ;;  %v3158_v24 = vld [vmem:[#allocation5 + $0x424] ss:$16 sps:$4 sm:$0xff]  }
  0x94   :  { %1739 = vmatpush1.bf16.msra.mxu0 %v3066_v25  ;;  %1903 = vmatpush1.bf16.msra.mxu1 %v3069_v26  ;;  %v3161_v25 = vld [vmem:[#allocation5 + $0x42c] ss:$16 sps:$4 sm:$0xff]   ;;  %v3642_v26 = vrot.slane %v3638_v23, %v3628_v49 }
  0x95   :  { %1740 = vmatprep.subr.bf16.mxu0 %v3074_v27  ;;  %1904 = vmatprep.subr.bf16.mxu1 %v3077_v28  ;;  %v3159_v28 = vld [vmem:[#allocation5 + $0x428] ss:$16 sps:$4 sm:$0xff]  }
  0x96   :  { %v117_v27 = vcombine.high %v3642_v26, %v3642_v26 }
  0x98   :  { %1741 = vmatpush1.bf16.msra.mxu0 %v3072_v29  ;;  %1905 = vmatpush1.bf16.msra.mxu1 %v3075_v30  ;;  %v3164_v29 = vld [vmem:[#allocation5 + $0x444] ss:$16 sps:$4 sm:$0xff]   ;;  %v3167_v30 = vld [vmem:[#allocation5 + $0x44c] ss:$16 sps:$4 sm:$0xff]  }
  0x99   :  { %1742 = vmatprep.subr.bf16.mxu0 %v3080_v31  ;;  %1906 = vmatprep.subr.bf16.mxu1 %v3083_v32  ;;  %v132_v31 = vpack.c.bf16 %v117_v27, %v117_v27  ;;  %v3162_v32 = vld [vmem:[#allocation5 + $0x440] ss:$16 sps:$4 sm:$0xff]   ;;  %v3243_v27 = vld [vmem:[#allocation5 + $0x5e8] ss:$16 sps:$4 sm:$0xff]  }
  0x9c   :  { %1743 = vmatpush1.bf16.msra.mxu0 %v3078_v33  ;;  %1907 = vmatpush1.bf16.msra.mxu1 %v3081_v34  ;;  %v3165_v33 = vld [vmem:[#allocation5 + $0x448] ss:$16 sps:$4 sm:$0xff]   ;;  %v3170_v34 = vld [vmem:[#allocation5 + $0x464] ss:$16 sps:$4 sm:$0xff]  }
  0x9d   :  { %1744 = vmatprep.subr.bf16.mxu0 %v3086_v35  ;;  %1908 = vmatprep.subr.bf16.mxu1 %v3089_v36  ;;  %v3173_v35 = vld [vmem:[#allocation5 + $0x46c] ss:$16 sps:$4 sm:$0xff]   ;;  %v3168_v36 = vld [vmem:[#allocation5 + $0x460] ss:$16 sps:$4 sm:$0xff]  }
  0xa0   :  { %1745 = vmatpush1.bf16.msra.mxu0 %v3084_v37  ;;  %1909 = vmatpush1.bf16.msra.mxu1 %v3087_v38  ;;  %v3171_v37 = vld [vmem:[#allocation5 + $0x468] ss:$16 sps:$4 sm:$0xff]   ;;  %v3176_v38 = vld [vmem:[#allocation5 + $0x484] ss:$16 sps:$4 sm:$0xff]  }
  0xa1   :  { %1746 = vmatprep.subr.bf16.mxu0 %v3092_v39  ;;  %1910 = vmatprep.subr.bf16.mxu1 %v3095_v40  ;;  %v3179_v39 = vld [vmem:[#allocation5 + $0x48c] ss:$16 sps:$4 sm:$0xff]   ;;  %v3174_v40 = vld [vmem:[#allocation5 + $0x480] ss:$16 sps:$4 sm:$0xff]  }
  0xa4   :  { %1747 = vmatpush1.bf16.msra.mxu0 %v3090_v41  ;;  %1911 = vmatpush1.bf16.msra.mxu1 %v3093_v42  ;;  %v3177_v41 = vld [vmem:[#allocation5 + $0x488] ss:$16 sps:$4 sm:$0xff]   ;;  %v3182_v42 = vld [vmem:[#allocation5 + $0x4a4] ss:$16 sps:$4 sm:$0xff]  }
  0xa5   :  { %1748 = vmatprep.subr.bf16.mxu0 %v3098_v44  ;;  %1912 = vmatprep.subr.bf16.mxu1 %v3101_v45  ;;  %v3185_v44 = vld [vmem:[#allocation5 + $0x4ac] ss:$16 sps:$4 sm:$0xff]   ;;  %v3180_v45 = vld [vmem:[#allocation5 + $0x4a0] ss:$16 sps:$4 sm:$0xff]  }
  0xa8   :  { %1749 = vmatpush1.bf16.msra.mxu0 %v3096_v46  ;;  %1913 = vmatpush1.bf16.msra.mxu1 %v3099_v47  ;;  %v3183_v46 = vld [vmem:[#allocation5 + $0x4a8] ss:$16 sps:$4 sm:$0xff]   ;;  %v3188_v47 = vld [vmem:[#allocation5 + $0x4c4] ss:$16 sps:$4 sm:$0xff]  }
  0xa9   :  { %1750 = vmatprep.subr.bf16.mxu0 %v3104_v48  ;;  %1914 = vmatprep.subr.bf16.mxu1 %v3107_v50  ;;  %v3191_v48 = vld [vmem:[#allocation5 + $0x4cc] ss:$16 sps:$4 sm:$0xff]   ;;  %v3186_v50 = vld [vmem:[#allocation5 + $0x4c0] ss:$16 sps:$4 sm:$0xff]  }
  0xac   :  { %1751 = vmatpush1.bf16.msra.mxu0 %v3102_v51  ;;  %1915 = vmatpush1.bf16.msra.mxu1 %v3105_v52  ;;  %v3189_v51 = vld [vmem:[#allocation5 + $0x4c8] ss:$16 sps:$4 sm:$0xff]   ;;  %v3194_v52 = vld [vmem:[#allocation5 + $0x4e4] ss:$16 sps:$4 sm:$0xff]  }
  0xad   :  { %1752 = vmatprep.subr.bf16.mxu0 %v3110_v53  ;;  %1916 = vmatprep.subr.bf16.mxu1 %v3113_v54  ;;  %v3197_v53 = vld [vmem:[#allocation5 + $0x4ec] ss:$16 sps:$4 sm:$0xff]   ;;  %v3192_v54 = vld [vmem:[#allocation5 + $0x4e0] ss:$16 sps:$4 sm:$0xff]  }
  0xb0   :  { %1753 = vmatpush1.bf16.msra.mxu0 %v3108_v55  ;;  %1917 = vmatpush1.bf16.msra.mxu1 %v3111_v56  ;;  %v3195_v55 = vld [vmem:[#allocation5 + $0x4e8] ss:$16 sps:$4 sm:$0xff]   ;;  %v3200_v56 = vld [vmem:[#allocation5 + $0x504] ss:$16 sps:$4 sm:$0xff]  }
  0xb1   :  { %1754 = vmatprep.subr.bf16.mxu0 %v3116_v57  ;;  %1918 = vmatprep.subr.bf16.mxu1 %v3119_v58  ;;  %v3203_v57 = vld [vmem:[#allocation5 + $0x50c] ss:$16 sps:$4 sm:$0xff]   ;;  %v3198_v58 = vld [vmem:[#allocation5 + $0x500] ss:$16 sps:$4 sm:$0xff]  }
  0xb4   :  { %1755 = vmatpush1.bf16.msra.mxu0 %v3114_v59  ;;  %1919 = vmatpush1.bf16.msra.mxu1 %v3117_v60  ;;  %v3201_v59 = vld [vmem:[#allocation5 + $0x508] ss:$16 sps:$4 sm:$0xff]   ;;  %v3206_v60 = vld [vmem:[#allocation5 + $0x524] ss:$16 sps:$4 sm:$0xff]  }
  0xb5   :  { %1756 = vmatprep.subr.bf16.mxu0 %v3122_v61  ;;  %1920 = vmatprep.subr.bf16.mxu1 %v3125_v62  ;;  %v3209_v61 = vld [vmem:[#allocation5 + $0x52c] ss:$16 sps:$4 sm:$0xff]   ;;  %v3204_v62 = vld [vmem:[#allocation5 + $0x520] ss:$16 sps:$4 sm:$0xff]  }
  0xb8   :  { %1757 = vmatpush1.bf16.msra.mxu0 %v3120_v63  ;;  %1921 = vmatpush1.bf16.msra.mxu1 %v3123_v0  ;;  %v3207_v63 = vld [vmem:[#allocation5 + $0x528] ss:$16 sps:$4 sm:$0xff]   ;;  %v3212_v0 = vld [vmem:[#allocation5 + $0x544] ss:$16 sps:$4 sm:$0xff]  }
  0xb9   :  { %1758 = vmatprep.subr.bf16.mxu0 %v3128_v1  ;;  %1922 = vmatprep.subr.bf16.mxu1 %v3131_v2  ;;  %v3215_v1 = vld [vmem:[#allocation5 + $0x54c] ss:$16 sps:$4 sm:$0xff]   ;;  %v3210_v2 = vld [vmem:[#allocation5 + $0x540] ss:$16 sps:$4 sm:$0xff]  }
  0xbc   :  { %1759 = vmatpush1.bf16.msra.mxu0 %v3126_v3  ;;  %1923 = vmatpush1.bf16.msra.mxu1 %v3129_v4  ;;  %v3213_v3 = vld [vmem:[#allocation5 + $0x548] ss:$16 sps:$4 sm:$0xff]   ;;  %v3218_v4 = vld [vmem:[#allocation5 + $0x564] ss:$16 sps:$4 sm:$0xff]  }
  0xbd   :  { %1760 = vmatprep.subr.bf16.mxu0 %v3134_v5  ;;  %1924 = vmatprep.subr.bf16.mxu1 %v3137_v6  ;;  %v3221_v5 = vld [vmem:[#allocation5 + $0x56c] ss:$16 sps:$4 sm:$0xff]   ;;  %v3216_v6 = vld [vmem:[#allocation5 + $0x560] ss:$16 sps:$4 sm:$0xff]  }
  0xc0   :  { %1761 = vmatpush1.bf16.msra.mxu0 %v3132_v7  ;;  %1925 = vmatpush1.bf16.msra.mxu1 %v3135_v8  ;;  %v3219_v7 = vld [vmem:[#allocation5 + $0x568] ss:$16 sps:$4 sm:$0xff]   ;;  %v3224_v8 = vld [vmem:[#allocation5 + $0x584] ss:$16 sps:$4 sm:$0xff]  }
  0xc1   :  { %1762 = vmatprep.subr.bf16.mxu0 %v3140_v10  ;;  %1926 = vmatprep.subr.bf16.mxu1 %v3143_v11  ;;  %v3227_v10 = vld [vmem:[#allocation5 + $0x58c] ss:$16 sps:$4 sm:$0xff]   ;;  %v3222_v11 = vld [vmem:[#allocation5 + $0x580] ss:$16 sps:$4 sm:$0xff]  }
  0xc4   :  { %1763 = vmatpush1.bf16.msra.mxu0 %v3138_v12  ;;  %1927 = vmatpush1.bf16.msra.mxu1 %v3141_v13  ;;  %v3225_v12 = vld [vmem:[#allocation5 + $0x588] ss:$16 sps:$4 sm:$0xff]   ;;  %v3230_v13 = vld [vmem:[#allocation5 + $0x5a4] ss:$16 sps:$4 sm:$0xff]  }
  0xc5   :  { %1764 = vmatprep.subr.bf16.mxu0 %v3146_v14  ;;  %1928 = vmatprep.subr.bf16.mxu1 %v3149_v15  ;;  %v3233_v14 = vld [vmem:[#allocation5 + $0x5ac] ss:$16 sps:$4 sm:$0xff]   ;;  %v3228_v15 = vld [vmem:[#allocation5 + $0x5a0] ss:$16 sps:$4 sm:$0xff]  }
  0xc8   :  { %1765 = vmatpush1.bf16.msra.mxu0 %v3144_v16  ;;  %1929 = vmatpush1.bf16.msra.mxu1 %v3147_v17  ;;  %v3231_v16 = vld [vmem:[#allocation5 + $0x5a8] ss:$16 sps:$4 sm:$0xff]   ;;  %v3236_v17 = vld [vmem:[#allocation5 + $0x5c4] ss:$16 sps:$4 sm:$0xff]  }
  0xc9   :  { %1775 = vmatprep.subr.bf16.mxu0 %v3152_v18  ;;  %1939 = vmatprep.subr.bf16.mxu1 %v3155_v19  ;;  %v3239_v18 = vld [vmem:[#allocation5 + $0x5cc] ss:$16 sps:$4 sm:$0xff]   ;;  %v3234_v19 = vld [vmem:[#allocation5 + $0x5c0] ss:$16 sps:$4 sm:$0xff]  }
  0xcb   :  { %1767 = vmatmul.mubr.bf16.vlgmr.msra.gmra.mrb[0].mxu0 %v129_v21  ;;  %1931 = vmatmul.mubr.bf16.vlgmr.msra.gmra.mrb[0].mxu1 %v129_v21  ;;  %v102_v21 = vcombine.high %v3638_v23, %v3638_v23 }
  0xcc   :  { %1776 = vmatpush1.bf16.msra.mxu0 %v3150_v20  ;;  %1940 = vmatpush1.bf16.msra.mxu1 %v3153_v22  ;;  %v3237_v20 = vld [vmem:[#allocation5 + $0x5c8] ss:$16 sps:$4 sm:$0xff]   ;;  %v3242_v22 = vld [vmem:[#allocation5 + $0x5e4] ss:$16 sps:$4 sm:$0xff]  }
  0xcd   :  { %1777 = vmatprep.subr.bf16.mxu0 %v3158_v24  ;;  %1941 = vmatprep.subr.bf16.mxu1 %v3161_v25  ;;  %v3245_v24 = vld [vmem:[#allocation5 + $0x5ec] ss:$16 sps:$4 sm:$0xff]   ;;  %v3240_v25 = vld [vmem:[#allocation5 + $0x5e0] ss:$16 sps:$4 sm:$0xff]  }
  0xce   :  { %1807 = vmatprep.mubr.bf16.mxu0 %v132_v31  ;;  %1971 = vmatprep.mubr.bf16.mxu1 %v132_v31  ;;  %v3249_v31 = vld [vmem:[#allocation5 + $0x608] ss:$16 sps:$4 sm:$0xff]  }
  0xd0   :  { %1778 = vmatpush1.bf16.msra.mxu0 %v3156_v9  ;;  %1942 = vmatpush1.bf16.msra.mxu1 %v3159_v28  ;;  %v3649_v9 = vrot.slane %v102_v21, %v3628_v49  ;;  %v3248_v28 = vld [vmem:[#allocation5 + $0x604] ss:$16 sps:$4 sm:$0xff]   ;;  %v3252_v49 = vld [vmem:[#allocation5 + $0x620] ss:$16 sps:$4 sm:$0xff]  }
  0xd1   :  { %1779 = vmatprep.subr.bf16.mxu0 %v3164_v29  ;;  %1943 = vmatprep.subr.bf16.mxu1 %v3167_v30  ;;  %v3251_v29 = vld [vmem:[#allocation5 + $0x60c] ss:$16 sps:$4 sm:$0xff]   ;;  %v3246_v30 = vld [vmem:[#allocation5 + $0x600] ss:$16 sps:$4 sm:$0xff]  }
  0xd2   :  { %v118_v23 = vcombine.high %v3649_v9, %v3649_v9  ;;  %v3324_v21 = vld [vmem:[#allocation5 + $0x7a0] ss:$16 sps:$4 sm:$0xff]  }
  0xd4   :  { %1780 = vmatpush1.bf16.msra.mxu0 %v3162_v32  ;;  %1944 = vmatpush1.bf16.msra.mxu1 %v3165_v33  ;;  %v131_v32 = vpack.c.bf16 %v3642_v26, %v3642_v26  ;;  %v3254_v33 = vld [vmem:[#allocation5 + $0x624] ss:$16 sps:$4 sm:$0xff]   ;;  %v3258_v26 = vld [vmem:[#allocation5 + $0x640] ss:$16 sps:$4 sm:$0xff]  }
  0xd5   :  { %1781 = vmatprep.subr.bf16.mxu0 %v3170_v34  ;;  %1945 = vmatprep.subr.bf16.mxu1 %v3173_v35  ;;  %v3257_v34 = vld [vmem:[#allocation5 + $0x62c] ss:$16 sps:$4 sm:$0xff]   ;;  %v3255_v35 = vld [vmem:[#allocation5 + $0x628] ss:$16 sps:$4 sm:$0xff]  }
  0xd8   :  { %1782 = vmatpush1.bf16.msra.mxu0 %v3168_v36  ;;  %1946 = vmatpush1.bf16.msra.mxu1 %v3171_v37  ;;  %v134_v36 = vpack.c.bf16 %v118_v23, %v118_v23  ;;  %v3260_v37 = vld [vmem:[#allocation5 + $0x644] ss:$16 sps:$4 sm:$0xff]   ;;  %v3339_v23 = vld [vmem:[#allocation5 + $0x7e8] ss:$16 sps:$4 sm:$0xff]  }
  0xd9   :  { %1783 = vmatprep.subr.bf16.mxu0 %v3176_v38  ;;  %1947 = vmatprep.subr.bf16.mxu1 %v3179_v39  ;;  %v3263_v38 = vld [vmem:[#allocation5 + $0x64c] ss:$16 sps:$4 sm:$0xff]   ;;  %v3261_v39 = vld [vmem:[#allocation5 + $0x648] ss:$16 sps:$4 sm:$0xff]  }
  0xdc   :  { %1784 = vmatpush1.bf16.msra.mxu0 %v3174_v40  ;;  %1948 = vmatpush1.bf16.msra.mxu1 %v3177_v41  ;;  %v3266_v40 = vld [vmem:[#allocation5 + $0x664] ss:$16 sps:$4 sm:$0xff]   ;;  %v3269_v41 = vld [vmem:[#allocation5 + $0x66c] ss:$16 sps:$4 sm:$0xff]  }
  0xdd   :  { %1785 = vmatprep.subr.bf16.mxu0 %v3182_v42  ;;  %1949 = vmatprep.subr.bf16.mxu1 %v3185_v44  ;;  %v3264_v42 = vld [vmem:[#allocation5 + $0x660] ss:$16 sps:$4 sm:$0xff]   ;;  %v3267_v44 = vld [vmem:[#allocation5 + $0x668] ss:$16 sps:$4 sm:$0xff]  }
  0xe0   :  { %1786 = vmatpush1.bf16.msra.mxu0 %v3180_v45  ;;  %1950 = vmatpush1.bf16.msra.mxu1 %v3183_v46  ;;  %v3272_v45 = vld [vmem:[#allocation5 + $0x684] ss:$16 sps:$4 sm:$0xff]   ;;  %v3275_v46 = vld [vmem:[#allocation5 + $0x68c] ss:$16 sps:$4 sm:$0xff]  }
  0xe1   :  { %1787 = vmatprep.subr.bf16.mxu0 %v3188_v47  ;;  %1951 = vmatprep.subr.bf16.mxu1 %v3191_v48  ;;  %v3270_v47 = vld [vmem:[#allocation5 + $0x680] ss:$16 sps:$4 sm:$0xff]   ;;  %v3273_v48 = vld [vmem:[#allocation5 + $0x688] ss:$16 sps:$4 sm:$0xff]  }
  0xe4   :  { %1788 = vmatpush1.bf16.msra.mxu0 %v3186_v50  ;;  %1952 = vmatpush1.bf16.msra.mxu1 %v3189_v51  ;;  %v3278_v50 = vld [vmem:[#allocation5 + $0x6a4] ss:$16 sps:$4 sm:$0xff]   ;;  %v3281_v51 = vld [vmem:[#allocation5 + $0x6ac] ss:$16 sps:$4 sm:$0xff]  }
  0xe5   :  { %1789 = vmatprep.subr.bf16.mxu0 %v3194_v52  ;;  %1953 = vmatprep.subr.bf16.mxu1 %v3197_v53  ;;  %v3276_v52 = vld [vmem:[#allocation5 + $0x6a0] ss:$16 sps:$4 sm:$0xff]   ;;  %v3279_v53 = vld [vmem:[#allocation5 + $0x6a8] ss:$16 sps:$4 sm:$0xff]  }
  0xe8   :  { %1790 = vmatpush1.bf16.msra.mxu0 %v3192_v54  ;;  %1954 = vmatpush1.bf16.msra.mxu1 %v3195_v55  ;;  %v3284_v54 = vld [vmem:[#allocation5 + $0x6c4] ss:$16 sps:$4 sm:$0xff]   ;;  %v3287_v55 = vld [vmem:[#allocation5 + $0x6cc] ss:$16 sps:$4 sm:$0xff]  }
  0xe9   :  { %1791 = vmatprep.subr.bf16.mxu0 %v3200_v56  ;;  %1955 = vmatprep.subr.bf16.mxu1 %v3203_v57  ;;  %v3282_v56 = vld [vmem:[#allocation5 + $0x6c0] ss:$16 sps:$4 sm:$0xff]   ;;  %v3285_v57 = vld [vmem:[#allocation5 + $0x6c8] ss:$16 sps:$4 sm:$0xff]  }
  0xec   :  { %1792 = vmatpush1.bf16.msra.mxu0 %v3198_v58  ;;  %1956 = vmatpush1.bf16.msra.mxu1 %v3201_v59  ;;  %v3290_v58 = vld [vmem:[#allocation5 + $0x6e4] ss:$16 sps:$4 sm:$0xff]   ;;  %v3293_v59 = vld [vmem:[#allocation5 + $0x6ec] ss:$16 sps:$4 sm:$0xff]  }
  0xed   :  { %1793 = vmatprep.subr.bf16.mxu0 %v3206_v60  ;;  %1957 = vmatprep.subr.bf16.mxu1 %v3209_v61  ;;  %v3288_v60 = vld [vmem:[#allocation5 + $0x6e0] ss:$16 sps:$4 sm:$0xff]   ;;  %v3291_v61 = vld [vmem:[#allocation5 + $0x6e8] ss:$16 sps:$4 sm:$0xff]  }
  0xf0   :  { %1794 = vmatpush1.bf16.msra.mxu0 %v3204_v62  ;;  %1958 = vmatpush1.bf16.msra.mxu1 %v3207_v63  ;;  %v3296_v62 = vld [vmem:[#allocation5 + $0x704] ss:$16 sps:$4 sm:$0xff]   ;;  %v3299_v63 = vld [vmem:[#allocation5 + $0x70c] ss:$16 sps:$4 sm:$0xff]  }
  0xf1   :  { %1795 = vmatprep.subr.bf16.mxu0 %v3212_v0  ;;  %1959 = vmatprep.subr.bf16.mxu1 %v3215_v1  ;;  %v3294_v0 = vld [vmem:[#allocation5 + $0x700] ss:$16 sps:$4 sm:$0xff]   ;;  %v3297_v1 = vld [vmem:[#allocation5 + $0x708] ss:$16 sps:$4 sm:$0xff]  }
  0xf4   :  { %1796 = vmatpush1.bf16.msra.mxu0 %v3210_v2  ;;  %1960 = vmatpush1.bf16.msra.mxu1 %v3213_v3  ;;  %v3302_v2 = vld [vmem:[#allocation5 + $0x724] ss:$16 sps:$4 sm:$0xff]   ;;  %v3305_v3 = vld [vmem:[#allocation5 + $0x72c] ss:$16 sps:$4 sm:$0xff]  }
  0xf5   :  { %1797 = vmatprep.subr.bf16.mxu0 %v3218_v4  ;;  %1961 = vmatprep.subr.bf16.mxu1 %v3221_v5  ;;  %v3300_v4 = vld [vmem:[#allocation5 + $0x720] ss:$16 sps:$4 sm:$0xff]   ;;  %v3303_v5 = vld [vmem:[#allocation5 + $0x728] ss:$16 sps:$4 sm:$0xff]  }
  0xf8   :  { %1798 = vmatpush1.bf16.msra.mxu0 %v3216_v6  ;;  %1962 = vmatpush1.bf16.msra.mxu1 %v3219_v7  ;;  %v3308_v6 = vld [vmem:[#allocation5 + $0x744] ss:$16 sps:$4 sm:$0xff]   ;;  %v3311_v7 = vld [vmem:[#allocation5 + $0x74c] ss:$16 sps:$4 sm:$0xff]  }
  0xf9   :  { %1799 = vmatprep.subr.bf16.mxu0 %v3224_v8  ;;  %1963 = vmatprep.subr.bf16.mxu1 %v3227_v10  ;;  %v3306_v8 = vld [vmem:[#allocation5 + $0x740] ss:$16 sps:$4 sm:$0xff]   ;;  %v3309_v10 = vld [vmem:[#allocation5 + $0x748] ss:$16 sps:$4 sm:$0xff]  }
  0xfc   :  { %1800 = vmatpush1.bf16.msra.mxu0 %v3222_v11  ;;  %1964 = vmatpush1.bf16.msra.mxu1 %v3225_v12  ;;  %v3314_v11 = vld [vmem:[#allocation5 + $0x764] ss:$16 sps:$4 sm:$0xff]   ;;  %v3317_v12 = vld [vmem:[#allocation5 + $0x76c] ss:$16 sps:$4 sm:$0xff]  }
  0xfd   :  { %1801 = vmatprep.subr.bf16.mxu0 %v3230_v13  ;;  %1965 = vmatprep.subr.bf16.mxu1 %v3233_v14  ;;  %v3312_v13 = vld [vmem:[#allocation5 + $0x760] ss:$16 sps:$4 sm:$0xff]   ;;  %v3315_v14 = vld [vmem:[#allocation5 + $0x768] ss:$16 sps:$4 sm:$0xff]  }
 0x100   :  { %1802 = vmatpush1.bf16.msra.mxu0 %v3228_v15  ;;  %1966 = vmatpush1.bf16.msra.mxu1 %v3231_v16  ;;  %v3320_v15 = vld [vmem:[#allocation5 + $0x784] ss:$16 sps:$4 sm:$0xff]   ;;  %v3323_v16 = vld [vmem:[#allocation5 + $0x78c] ss:$16 sps:$4 sm:$0xff]  }
 0x101   :  { %1803 = vmatprep.subr.bf16.mxu0 %v3236_v17  ;;  %1967 = vmatprep.subr.bf16.mxu1 %v3239_v18  ;;  %v3318_v17 = vld [vmem:[#allocation5 + $0x780] ss:$16 sps:$4 sm:$0xff]   ;;  %v3321_v18 = vld [vmem:[#allocation5 + $0x788] ss:$16 sps:$4 sm:$0xff]  }
 0x104   :  { %1804 = vmatpush1.bf16.msra.mxu0 %v3234_v19  ;;  %1968 = vmatpush1.bf16.msra.mxu1 %v3237_v20  ;;  %v3326_v19 = vld [vmem:[#allocation5 + $0x7a4] ss:$16 sps:$4 sm:$0xff]   ;;  %v3329_v20 = vld [vmem:[#allocation5 + $0x7ac] ss:$16 sps:$4 sm:$0xff]  }
 0x105   :  { %1805 = vmatprep.subr.bf16.mxu0 %v3242_v22  ;;  %1969 = vmatprep.subr.bf16.mxu1 %v3245_v24  ;;  %v3327_v22 = vld [vmem:[#allocation5 + $0x7a8] ss:$16 sps:$4 sm:$0xff]   ;;  %v3332_v24 = vld [vmem:[#allocation5 + $0x7c4] ss:$16 sps:$4 sm:$0xff]  }
 0x108   :  { %1806 = vmatpush1.bf16.msra.mxu0 %v3240_v25  ;;  %1970 = vmatpush1.bf16.msra.mxu1 %v3243_v27  ;;  %v3335_v25 = vld [vmem:[#allocation5 + $0x7cc] ss:$16 sps:$4 sm:$0xff]   ;;  %v3330_v27 = vld [vmem:[#allocation5 + $0x7c0] ss:$16 sps:$4 sm:$0xff]  }
 0x109   :  { %1816 = vmatprep.subr.bf16.mxu0 %v3248_v28  ;;  %1980 = vmatprep.subr.bf16.mxu1 %v3251_v29  ;;  %v3333_v28 = vld [vmem:[#allocation5 + $0x7c8] ss:$16 sps:$4 sm:$0xff]   ;;  %v3338_v29 = vld [vmem:[#allocation5 + $0x7e4] ss:$16 sps:$4 sm:$0xff]  }
 0x10b   :  { %1808 = vmatmul.mubr.bf16.vlgmr.msra.gmra.mrb[0].mxu0 %v131_v32  ;;  %1972 = vmatmul.mubr.bf16.vlgmr.msra.gmra.mrb[0].mxu1 %v131_v32  ;;  %v133_v32 = vpack.c.bf16 %v3649_v9, %v3649_v9  ;;  %v3351_v9 = vld [vmem:[#allocation7 + $0x50] sm:$0xff]  }
 0x10c   :  { %1817 = vmatpush1.bf16.msra.mxu0 %v3246_v30  ;;  %1981 = vmatpush1.bf16.msra.mxu1 %v3249_v31  ;;  %v3341_v30 = vld [vmem:[#allocation5 + $0x7ec] ss:$16 sps:$4 sm:$0xff]   ;;  %v3336_v31 = vld [vmem:[#allocation5 + $0x7e0] ss:$16 sps:$4 sm:$0xff]  }
 0x10d   :  { %1818 = vmatprep.subr.bf16.mxu0 %v3254_v33  ;;  %1982 = vmatprep.subr.bf16.mxu1 %v3257_v34  ;;  %v3343_v33 = vld [vmem:[#allocation7 + $0x40] sm:$0xff]  }
 0x10e   :  { %1848 = vmatprep.mubr.bf16.mxu0 %v134_v36  ;;  %2012 = vmatprep.mubr.bf16.mxu1 %v134_v36  ;;  %v3344_v34 = vld [vmem:[#allocation7 + $0xc0] sm:$0xff]   ;;  %v3347_v36 = vld [vmem:[#allocation7 + $0x48] sm:$0xff]  }
 0x110   :  { %1819 = vmatpush1.bf16.msra.mxu0 %v3252_v49  ;;  %1983 = vmatpush1.bf16.msra.mxu1 %v3255_v35  ;;  %v3345_v49 = vld [vmem:[#allocation7] sm:$0xff]  }
 0x111   :  { %1820 = vmatprep.subr.bf16.mxu0 %v3260_v37  ;;  %1984 = vmatprep.subr.bf16.mxu1 %v3263_v38  ;;  %v3346_v35 = vld [vmem:[#allocation7 + $0x80] sm:$0xff]   ;;  %v3348_v37 = vld [vmem:[#allocation7 + $0xc8] sm:$0xff]  }
 0x112   :  { %v3349_v38 = vld [vmem:[#allocation7 + $0x8] sm:$0xff]  }
 0x114   :  { %1821 = vmatpush1.bf16.msra.mxu0 %v3258_v26  ;;  %1985 = vmatpush1.bf16.msra.mxu1 %v3261_v39  ;;  %v3350_v26 = vld [vmem:[#allocation7 + $0x88] sm:$0xff]   ;;  %v3352_v39 = vld [vmem:[#allocation7 + $0xd0] sm:$0xff]  }
 0x115   :  { %1822 = vmatprep.subr.bf16.mxu0 %v3266_v40  ;;  %1986 = vmatprep.subr.bf16.mxu1 %v3269_v41  ;;  %v3353_v40 = vld [vmem:[#allocation7 + $0x10] sm:$0xff]  }
 0x116   :  { %v3354_v41 = vld [vmem:[#allocation7 + $0x90] sm:$0xff]  }
 0x118   :  { %1823 = vmatpush1.bf16.msra.mxu0 %v3264_v42  ;;  %1987 = vmatpush1.bf16.msra.mxu1 %v3267_v44  ;;  %v3355_v42 = vld [vmem:[#allocation7 + $0x58] sm:$0xff]  }
 0x119   :  { %1824 = vmatprep.subr.bf16.mxu0 %v3272_v45  ;;  %1988 = vmatprep.subr.bf16.mxu1 %v3275_v46  ;;  %v3356_v44 = vld [vmem:[#allocation7 + $0xd8] sm:$0xff]  }
 0x11a   :  { %v3357_v45 = vld [vmem:[#allocation7 + $0x18] sm:$0xff]  }
 0x11b   :  { %v3358_v46 = vld [vmem:[#allocation7 + $0x98] sm:$0xff]  }
 0x11c   :  { %1825 = vmatpush1.bf16.msra.mxu0 %v3270_v47  ;;  %1989 = vmatpush1.bf16.msra.mxu1 %v3273_v48  ;;  %v3359_v47 = vld [vmem:[#allocation7 + $0x60] sm:$0xff]  }
 0x11d   :  { %1826 = vmatprep.subr.bf16.mxu0 %v3278_v50  ;;  %1990 = vmatprep.subr.bf16.mxu1 %v3281_v51  ;;  %v3360_v48 = vld [vmem:[#allocation7 + $0xe0] sm:$0xff]  }
 0x11e   :  { %v3361_v50 = vld [vmem:[#allocation7 + $0x20] sm:$0xff]  }
 0x11f   :  { %v3362_v51 = vld [vmem:[#allocation7 + $0xa0] sm:$0xff]  }
 0x120   :  { %1827 = vmatpush1.bf16.msra.mxu0 %v3276_v52  ;;  %1991 = vmatpush1.bf16.msra.mxu1 %v3279_v53  ;;  %v3363_v52 = vld [vmem:[#allocation7 + $0x68] sm:$0xff]  }
 0x121   :  { %1828 = vmatprep.subr.bf16.mxu0 %v3284_v54  ;;  %1992 = vmatprep.subr.bf16.mxu1 %v3287_v55  ;;  %v3364_v53 = vld [vmem:[#allocation7 + $0xe8] sm:$0xff]  }
 0x122   :  { %v3365_v54 = vld [vmem:[#allocation7 + $0x28] sm:$0xff]  }
 0x123   :  { %v3366_v55 = vld [vmem:[#allocation7 + $0xa8] sm:$0xff]  }
 0x124   :  { %1829 = vmatpush1.bf16.msra.mxu0 %v3282_v56  ;;  %1993 = vmatpush1.bf16.msra.mxu1 %v3285_v57  ;;  %v3367_v56 = vld [vmem:[#allocation7 + $0x70] sm:$0xff]  }
 0x125   :  { %1830 = vmatprep.subr.bf16.mxu0 %v3290_v58  ;;  %1994 = vmatprep.subr.bf16.mxu1 %v3293_v59  ;;  %v3368_v57 = vld [vmem:[#allocation7 + $0xf0] sm:$0xff]  }
 0x126   :  { %v3369_v58 = vld [vmem:[#allocation7 + $0x30] sm:$0xff]  }
 0x127   :  { %v3370_v59 = vld [vmem:[#allocation7 + $0xb0] sm:$0xff]  }
 0x128   :  { %1831 = vmatpush1.bf16.msra.mxu0 %v3288_v60  ;;  %1995 = vmatpush1.bf16.msra.mxu1 %v3291_v61  ;;  %v3371_v60 = vld [vmem:[#allocation7 + $0x78] sm:$0xff]  }
 0x129   :  { %1832 = vmatprep.subr.bf16.mxu0 %v3296_v62  ;;  %1996 = vmatprep.subr.bf16.mxu1 %v3299_v63  ;;  %v3372_v61 = vld [vmem:[#allocation7 + $0xf8] sm:$0xff]  }
 0x12a   :  { %v3373_v62 = vld [vmem:[#allocation7 + $0x38] sm:$0xff]  }
 0x12b   :  { %v3374_v63 = vld [vmem:[#allocation7 + $0xb8] sm:$0xff]  }
 0x12c   :  { %1833 = vmatpush1.bf16.msra.mxu0 %v3294_v0  ;;  %1997 = vmatpush1.bf16.msra.mxu1 %v3297_v1  ;;  %v395_v0 = vsub.s32 0, %v3625_v43  ;;  %v403_v1 = vsub.s32 2, %v3625_v43 }
 0x12d   :  { %1834 = vmatprep.subr.bf16.mxu0 %v3302_v2  ;;  %1998 = vmatprep.subr.bf16.mxu1 %v3305_v3  ;;  %v391_v2 = vld [vmem:[%s3684_s2] sm:$0xf]  ;;  %v399_v3 = vsub.s32 1, %v3625_v43 }
 0x130   :  { %1835 = vmatpush1.bf16.msra.mxu0 %v3300_v4  ;;  %1999 = vmatpush1.bf16.msra.mxu1 %v3303_v5  ;;  %v407_v4 = vsub.s32 3, %v3625_v43  ;;  %v396_v5 = vrot.slane %v391_v2, %v395_v0 }
 0x131   :  { %1836 = vmatprep.subr.bf16.mxu0 %v3308_v6  ;;  %2000 = vmatprep.subr.bf16.mxu1 %v3311_v7  ;;  %v404_v6 = vrot.slane %v391_v2, %v403_v1  ;;  %v400_v7 = vrot.slane %v391_v2, %v399_v3 }
 0x134   :  { %1837 = vmatpush1.bf16.msra.mxu0 %v3306_v8  ;;  %2001 = vmatpush1.bf16.msra.mxu1 %v3309_v10  ;;  %v408_v8 = vrot.slane %v391_v2, %v407_v4  ;;  %v2835_v4 = vld [vmem:[%s3688_s6] ss:$0 sm:$0xff]  ;;  %s2530_s6 = sshll.u32 %s3536_s29, 4  ;;  %s2531_s6 = int_to_ptr.vmem [resolvable:$true] %s2530_s6 }
 0x135   :  { %1838 = vmatprep.subr.bf16.mxu0 %v3314_v11  ;;  %2002 = vmatprep.subr.bf16.mxu1 %v3317_v12  ;;  %s3495_s30 = scalar_lea.vmem %s2531_s6, 32  ;;  %p3500_p5 = scmp.lt.s32.totalorder %s2531_s6, %s2531_s6 }
 0x136   :  { %p3496_p4 = scmp.ne.s32.totalorder %s2531_s6, %s3495_s30  ;;  %p3501_p6 = scmp.lt.s32.totalorder %s3495_s30, %s3495_s30 }
 0x138   :  { %1839 = vmatpush1.bf16.msra.mxu0 %v3312_v13  ;;  %2003 = vmatpush1.bf16.msra.mxu1 %v3315_v14  ;;  %p3502_p7 = por %p3501_p6, %p3500_p5 }
 0x139   :  { %1840 = vmatprep.subr.bf16.mxu0 %v3320_v15  ;;  %2004 = vmatprep.subr.bf16.mxu1 %v3323_v16 }
 0x13a   :  { %p3503_p8 = pnand %p3502_p7, %p3496_p4 }
 0x13c   :  { %1841 = vmatpush1.bf16.msra.mxu0 %v3318_v17  ;;  %2005 = vmatpush1.bf16.msra.mxu1 %v3321_v18 }
 0x13d   :  { %1842 = vmatprep.subr.bf16.mxu0 %v3326_v19  ;;  %2006 = vmatprep.subr.bf16.mxu1 %v3329_v20 }
 0x140   :  { %1843 = vmatpush1.bf16.msra.mxu0 %v3324_v21  ;;  %2007 = vmatpush1.bf16.msra.mxu1 %v3327_v22 }
 0x141   :  { %1844 = vmatprep.subr.bf16.mxu0 %v3332_v24  ;;  %2008 = vmatprep.subr.bf16.mxu1 %v3335_v25 }
 0x144   :  { %1845 = vmatpush1.bf16.msra.mxu0 %v3330_v27  ;;  %2009 = vmatpush1.bf16.msra.mxu1 %v3333_v28 }
 0x145   :  { %1846 = vmatprep.subr.bf16.mxu0 %v3338_v29  ;;  %2010 = vmatprep.subr.bf16.mxu1 %v3341_v30 }
 0x148   :  { %1847 = vmatpush1.bf16.msra.mxu0 %v3336_v31  ;;  %2011 = vmatpush1.bf16.msra.mxu1 %v3339_v23 }
 0x149   :  { %2844 = vmatprep.subr.bf16.mxu0 %v3343_v33  ;;  %2866 = vmatprep.subr.bf16.mxu1 %v3344_v34 }
 0x14b   :  { %1849 = vmatmul.mubr.bf16.vlgmr.msra.gmra.mrb[0].mxu0 %v133_v32  ;;  %2013 = vmatmul.mubr.bf16.vlgmr.msra.gmra.mrb[0].mxu1 %v133_v32 }
 0x14c   :  { %2845 = vmatpush3.bf16.msra.mxu0 %v3345_v49  ;;  %2867 = vmatpush3.bf16.msra.mxu1 %v3346_v35 }
 0x14d   :  { %2846 = vmatprep.subr.bf16.mxu0 %v3347_v36  ;;  %2868 = vmatprep.subr.bf16.mxu1 %v3348_v37 }
 0x150   :  { %2847 = vmatpush3.bf16.msra.mxu0 %v3349_v38  ;;  %2869 = vmatpush3.bf16.msra.mxu1 %v3350_v26 }
 0x151   :  { %2848 = vmatprep.subr.bf16.mxu0 %v3351_v9  ;;  %2870 = vmatprep.subr.bf16.mxu1 %v3352_v39  ;;  %v3375_v39 = vld [vmem:[#allocation8] sm:$0xff]  }
 0x154   :  { %2849 = vmatpush3.bf16.msra.mxu0 %v3353_v40  ;;  %2871 = vmatpush3.bf16.msra.mxu1 %v3354_v41  ;;  %v3534_v40 = vmov 0.0   ;;  %v3376_v41 = vld [vmem:[#allocation8 + $0x8] sm:$0xff]  }
 0x155   :  { %2850 = vmatprep.subr.bf16.mxu0 %v3355_v42  ;;  %2872 = vmatprep.subr.bf16.mxu1 %v3356_v44  ;;  %v3377_v42 = vld [vmem:[#allocation8 + $0x10] sm:$0xff]   ;;  %v3378_v44 = vld [vmem:[#allocation8 + $0x18] sm:$0xff]  }
 0x158   :  { %2851 = vmatpush3.bf16.msra.mxu0 %v3357_v45  ;;  %2873 = vmatpush3.bf16.msra.mxu1 %v3358_v46  ;;  %v3379_v45 = vld [vmem:[#allocation8 + $0x20] sm:$0xff]   ;;  %v3380_v46 = vld [vmem:[#allocation8 + $0x28] sm:$0xff]  }
 0x159   :  { %2852 = vmatprep.subr.bf16.mxu0 %v3359_v47  ;;  %2874 = vmatprep.subr.bf16.mxu1 %v3360_v48  ;;  %v3381_v47 = vld [vmem:[#allocation8 + $0x30] sm:$0xff]   ;;  %v3382_v48 = vld [vmem:[#allocation8 + $0x38] sm:$0xff]  }
 0x15c   :  { %2853 = vmatpush3.bf16.msra.mxu0 %v3361_v50  ;;  %2875 = vmatpush3.bf16.msra.mxu1 %v3362_v51 }
 0x15d   :  { %2854 = vmatprep.subr.bf16.mxu0 %v3363_v52  ;;  %2876 = vmatprep.subr.bf16.mxu1 %v3364_v53  ;;  %v2801_v52 = vld [vmem:[%s3686_s4] ss:$0 sm:$0xff] }
 0x160   :  { %2855 = vmatpush3.bf16.msra.mxu0 %v3365_v54  ;;  %2877 = vmatpush3.bf16.msra.mxu1 %v3366_v55 }
 0x161   :  { %2856 = vmatprep.subr.bf16.mxu0 %v3367_v56  ;;  %2878 = vmatprep.subr.bf16.mxu1 %v3368_v57 }
 0x164   :  { %2857 = vmatpush3.bf16.msra.mxu0 %v3369_v58  ;;  %2879 = vmatpush3.bf16.msra.mxu1 %v3370_v59 }
 0x165   :  { %2858 = vmatprep.subr.bf16.mxu0 %v3371_v60  ;;  %2880 = vmatprep.subr.bf16.mxu1 %v3372_v61 }
 0x168   :  { %2859 = vmatpush3.bf16.msra.mxu0 %v3373_v62  ;;  %2881 = vmatpush3.bf16.msra.mxu1 %v3374_v63 }
 0x169   :  { %2897 = vmatprep.subr.bf16.mxu0 %v3534_v40 }
 0x21e   :  { %v1850_v10 = vpop.f32.mrb[0].mxu0  ;;  %v2014_v11 = vpop.f32.mrb[0].mxu1 }
 0x21f   :  { %v2917_v12 = vadd.f32 %v1850_v10, %v396_v5  ;;  %v2919_v13 = vadd.f32 %v2014_v11, %v404_v6  ;;  %v1852_v14 = vpop.f32.mrb[1].mxu0  ;;  %v2016_v15 = vpop.f32.mrb[1].mxu1 }
 0x220   :  { %v2918_v16 = vadd.f32 %v1852_v14, %v400_v7  ;;  %v2920_v17 = vadd.f32 %v2016_v15, %v408_v8  ;;  %v1854_v18 = vpop.f32.mrb[2].mxu0  ;;  %v2018_v19 = vpop.f32.mrb[2].mxu1 }
 0x221   :  { %v2797_v20 = vmul.f32 -1.442695, %v2917_v12  ;;  %v2799_v21 = vmul.f32 -1.442695, %v2919_v13  ;;  %v1855_v22 = vpop.f32.mrb[3].mxu0  ;;  %v2019_v24 = vpop.f32.mrb[3].mxu1 }
 0x222   :  { %v2798_v25 = vmul.f32 -1.442695, %v2918_v16  ;;  %v2800_v43 = vmul.f32 -1.442695, %v2920_v17 }
 0x223   :  { %3383 = vpow2.f32 %v2797_v20 }
 0x224   :  { %3385 = vpow2.f32 %v2799_v21 }
 0x225   :  { %3387 = vpow2.f32 %v2798_v25 }
 0x226   :  { %3389 = vpow2.f32 %v2800_v43 }
 0x22d   :  { %v3384_v27 = vpop.eup %3383 }
 0x22e   :  { %v3386_v28 = vpop.eup %3385  ;;  %v2033_v29 = vadd.f32 1.0, %v3384_v27 }
 0x22f   :  { %v3388_v30 = vpop.eup %3387  ;;  %v2035_v31 = vadd.f32 1.0, %v3386_v28 }
 0x230   :  { %v3390_v23 = vpop.eup %3389  ;;  %3391 = vrcp.f32 %v2033_v29  ;;  %v2034_v32 = vadd.f32 1.0, %v3388_v30 }
 0x231   :  { %3393 = vrcp.f32 %v2035_v31  ;;  %v2036_v33 = vadd.f32 1.0, %v3390_v23 }
 0x232   :  { %3395 = vrcp.f32 %v2034_v32 }
 0x233   :  { %3397 = vrcp.f32 %v2036_v33 }
 0x23a   :  { %v3392_v34 = vpop.eup %3391 }
 0x23b   :  { %v3394_v49 = vpop.eup %3393  ;;  %v2045_v26 = vpack.c.bf16 %v3392_v34, %v3392_v34 }
 0x23c   :  { %v3396_v35 = vpop.eup %3395  ;;  %v2047_v9 = vpack.c.bf16 %v3394_v49, %v3394_v49 }
 0x23d   :  { %v3398_v36 = vpop.eup %3397  ;;  %v2046_v37 = vpack.c.bf16 %v3396_v35, %v3396_v35 }
 0x23e   :  { %v2048_v38 = vpack.c.bf16 %v3398_v36, %v3398_v36 }
 0x23f   :  { %2344 = vmatprep.mubr.bf16.mxu0 %v2046_v37 }
 0x240   :  { %2384 = vmatprep.mubr.bf16.mxu1 %v2048_v38  ;;  %2345 = vmatmul.mubr.bf16.vlgmr.msra.gmra.mrb[4].mxu0 %v2045_v26 }
 0x241   :  { %2385 = vmatmul.mubr.bf16.vlgmr.msra.gmra.mrb[4].mxu1 %v2047_v9  ;;  %2898 = vmatpush3.bf16.msra.mxu0 %v3375_v39 }
 0x242   :  { %2899 = vmatprep.subr.bf16.mxu0 %v3534_v40  ;;  %2913 = vmatprep.mubr.msk.bf16.mxu0 %vm3535_vm0, %v3534_v40 }
 0x245   :  { %2900 = vmatpush3.bf16.msra.mxu0 %v3376_v41 }
 0x246   :  { %2901 = vmatprep.subr.bf16.mxu0 %v3534_v40 }
 0x249   :  { %2902 = vmatpush3.bf16.msra.mxu0 %v3377_v42 }
 0x24a   :  { %2903 = vmatprep.subr.bf16.mxu0 %v3534_v40 }
 0x24d   :  { %2904 = vmatpush3.bf16.msra.mxu0 %v3378_v44 }
 0x24e   :  { %2905 = vmatprep.subr.bf16.mxu0 %v3534_v40 }
 0x251   :  { %2906 = vmatpush3.bf16.msra.mxu0 %v3379_v45 }
 0x252   :  { %2907 = vmatprep.subr.bf16.mxu0 %v3534_v40 }
 0x255   :  { %2908 = vmatpush3.bf16.msra.mxu0 %v3380_v46 }
 0x256   :  { %2909 = vmatprep.subr.bf16.mxu0 %v3534_v40 }
 0x259   :  { %2910 = vmatpush3.bf16.msra.mxu0 %v3381_v47 }
 0x25a   :  { %2911 = vmatprep.subr.bf16.mxu0 %v3534_v40 }
 0x25d   :  { %2912 = vmatpush3.bf16.msra.mxu0 %v3382_v48 }
 0x313   :  { %v2860_v50 = vpop.f32.mrb[4].mxu0 }
 0x314   :  { %v2882_v51 = vpop.f32.mrb[4].mxu1  ;;  %v2861_v53 = vpop.f32.mrb[5].mxu0 }
 0x315   :  { %v2862_v54 = vadd.f32 %v2861_v53, %v2860_v50  ;;  %v2883_v55 = vpop.f32.mrb[5].mxu1  ;;  %v2863_v56 = vpop.f32.mrb[6].mxu0 }
 0x316   :  { %v2884_v57 = vadd.f32 %v2883_v55, %v2882_v51  ;;  %v2885_v58 = vpop.f32.mrb[6].mxu1  ;;  %v2864_v59 = vpop.f32.mrb[7].mxu0 }
 0x317   :  { %v2347_v60 = vadd.f32 %v2862_v54, %v2801_v52  ;;  %v2886_v61 = vpop.f32.mrb[7].mxu1 }
 0x319   :  { %v2387_v62 = vadd.f32 %v2884_v57, %v2347_v60 }
 0x31b   :  { %v2834_v63 = vmul.f32 -1.442695, %v2387_v62 }
 0x31d   :  { %3399 = vpow2.f32 %v2834_v63 }
 0x327   :  { %v3400_v0 = vpop.eup %3399 }
 0x328   :  { %v2395_v1 = vadd.f32 1.0, %v3400_v0 }
 0x32a   :  { %3401 = vrcp.f32 %v2395_v1 }
 0x334   :  { %v3402_v2 = vpop.eup %3401 }
 0x335   :  { %v2398_v3 = vpack.c.bf16 %v3402_v2, %v3402_v2 }
 0x337   :  { %2914 = vmatmul.mubr.bf16.vlgmr.msra.gmra.mrb[8].mxu0 %v2398_v3 }
 0x40a   :  { %v2504_v5 = vpop.f32.mrb[8].mxu0 }
 0x40b   :  { %v2505_v6 = vadd.f32 %v2835_v4, %v2504_v5  ;;  %v2915_v7 = vpop.f32.mrb[9].mxu0 }
 0x40c   :  { %v2507_v8 = vpop.f32.mrb[10].mxu0 }
 0x40d   :  { %v2916_v10 = vpop.f32.mrb[11].mxu0  ;;  %v2511_v11 = vsel %vm2510_vm1, %v2505_v6, -inf }
 0x40e   :  { %2512 = vmax.xlane.f32.xlu0 %v2511_v11 }
 0x49b   :  { %v2513_v12 = vpop.xlane.xlu0 %2512 }
 0x49c   :  { %v2514_v13 = vsub.f32 %v2505_v6, %v2513_v12 }
 0x49e   :  { %v2515_v14 = vmul.f32 1.442695, %v2514_v13 }
 0x4a0   :  { %3403 = vpow2.f32 %v2515_v14 }
 0x4aa   :  { %v3404_v15 = vpop.eup %3403 }
 0x4ab   :  { %v2517_v16 = vsel %vm2510_vm1, %v3404_v15, 0.0 }
 0x4ac   :  { %2518 = vadd.xlane.f32.xlu0 %v2517_v16 }
 0x539   :  { %v2519_v17 = vpop.xlane.xlu0 %2518 }
 0x53a   :  { %3405 = vlog2.f32 %v2519_v17 }
 0x544   :  { %v3406_v18 = vpop.eup %3405 }
 0x545   :  { %v2521_v19 = vmul.f32 0.6931472, %v3406_v18 }
 0x547   :  { %v2522_v20 = vsub.f32 %v2514_v13, %v2521_v19 }
 0x549   :  { %2523 = vst [vmem:[#allocation10] sm:$0x3] %v2522_v20 }
 0x54a   :  { %3506 = shalt.err (!%p3503_p8)
}
 0x54b   :  { %s3507_s10 = scalar_lea.hbm %s3689_s7, 32 }
 0x54c   :  { %p3508_p9 = scmp.ne.s32.totalorder %s3689_s7, %s3507_s10  ;;  %p3511_p10 = scmp.lt.u32.totalorder %s3507_s10, %s3689_s7 }
 0x54e   :  { %p3513_p11 = pnand %p3511_p10, %p3508_p9 }
 0x550   :  { %3516 = shalt.err (!%p3513_p11)
}
 0x551   :  { %2533 = dma.vmem_to_hbm [thread:$0]  %s2531_s6, 32, %s3689_s7, [#allocation4]  }
 0x552   :  { %3523 = dma.done.wait [#allocation4], 32  }
 0x553   :  { %3524 = vsyncadd [#allocation4], 4294967264 }
 0x554   :  { %2537 = vsyncpa [#allocation3], 1 }
 0x555   :  { %2538 = vsyncpa [#allocation6], 1 }
 0x556   :  { %2539 = vsyncpa [#allocation9], 1 }
 0x557   :  { %2540 = vsyncpa [#allocation4], 1 }

// kernel: tpu_custom_call.1
= control target key start
LH: loop header
LB: loop body
LE: loop exit
PB: predicated region body
PF: predicated region fallthrough
CT: control target
= control target key end

     0   :  { %12 = vsyncpa [#allocation3], 0  ;;  %s3682_s0 = inlined_call_operand.hbm [shape: f32[2,1024], index: 0, kind: input, shape index: {}]   ;;  %s3683_s1 = inlined_call_operand.hbm [shape: bf16[1024,512], index: 1, kind: input, shape index: {}]   ;;  %s3684_s2 = inlined_call_operand.vmem [shape: f32[1,512], index: 2, kind: input, shape index: {}]   ;;  %s3685_s3 = inlined_call_operand.hbm [shape: bf16[512,128], index: 3, kind: input, shape index: {}]   ;;  %s3686_s4 = inlined_call_operand.vmem [shape: f32[1,128], index: 4, kind: input, shape index: {}]   ;;  %s3687_s5 = inlined_call_operand.hbm [shape: bf16[128,128], index: 5, kind: input, shape index: {}]   ;;  %s3688_s6 = inlined_call_operand.vmem [shape: f32[1,128], index: 6, kind: input, shape index: {}]   ;;  %s3689_s7 = inlined_call_operand.hbm [shape: f32[2,128], index: 7, kind: output, shape index: {}]  }
   0x1   :  { %13 = vsyncpa [#allocation6], 0 }
   0x2   :  { %14 = vsyncpa [#allocation9], 0 }
   0x3   :  { %15 = vsyncpa [#allocation4], 0  ;;  %s3525_s24 = smov [#allocation5]   ;;  %s3407_s28 = scalar_lea.hbm %s3683_s1, 32768 }
   0x4   :  { %s31_s25 = sshll.u32 %s3525_s24, 4  ;;  %p3408_p0 = scmp.ne.s32.totalorder %s3683_s1, %s3407_s28  ;;  %s32_s25 = int_to_ptr.vmem [resolvable:$true] %s31_s25 }
   0x5   :  { %p3411_p1 = scmp.lt.u32.totalorder %s3407_s28, %s3683_s1 }
   0x7   :  { %p3413_p2 = pnand %p3411_p1, %p3408_p0 }
   0x9   :  { %3416 = shalt.err (!%p3413_p2)
}
   0xa   :  { %s3417_s10 = scalar_lea.vmem %s32_s25, 32768  ;;  %p3422_p4 = scmp.lt.s32.totalorder %s32_s25, %s32_s25 }
   0xb   :  { %p3418_p3 = scmp.ne.s32.totalorder %s32_s25, %s3417_s10  ;;  %p3423_p5 = scmp.lt.s32.totalorder %s3417_s10, %s3417_s10 }
   0xd   :  { %p3424_p6 = por %p3423_p5, %p3422_p4 }
   0xf   :  { %p3425_p7 = pnand %p3424_p6, %p3418_p3 }
  0x11   :  { %3428 = shalt.err (!%p3425_p7)
}
  0x12   :  { %s3526_s11 = smov 256   ;;  %s3527_s12 = smov 16  }
  0x13   :  { %37 = dma.hbm_to_vmem [thread:$0]  %s3683_s1, 32768, %s32_s25, [#allocation6], %s3526_s11, %s3526_s11, %s3527_s12  }
  0x14   :  { %s3528_s15 = smov [#allocation2]   ;;  %s3529_s17 = smov [#allocation7]  }
  0x15   :  { %s22_s16 = sshll.u32 %s3528_s15, 4  ;;  %s45_s18 = sshll.u32 %s3529_s17, 4  ;;  %s23_s16 = int_to_ptr.vmem [resolvable:$true] %s22_s16  ;;  %s46_s18 = int_to_ptr.vmem [resolvable:$true] %s45_s18 }
  0x16   :  { %s3429_s21 = scalar_lea.hbm %s3682_s0, 256 }
  0x17   :  { %p3430_p8 = scmp.ne.s32.totalorder %s3682_s0, %s3429_s21  ;;  %p3433_p9 = scmp.lt.u32.totalorder %s3429_s21, %s3682_s0 }
  0x19   :  { %p3435_p10 = pnand %p3433_p9, %p3430_p8 }
  0x1b   :  { %3438 = shalt.err (!%p3435_p10)
}
  0x1c   :  { %s3439_s1 = scalar_lea.vmem %s23_s16, 256  ;;  %p3444_p12 = scmp.lt.s32.totalorder %s23_s16, %s23_s16 }
  0x1d   :  { %p3440_p11 = scmp.ne.s32.totalorder %s23_s16, %s3439_s1  ;;  %p3445_p13 = scmp.lt.s32.totalorder %s3439_s1, %s3439_s1 }
  0x1f   :  { %p3446_p0 = por %p3445_p13, %p3444_p12 }
  0x21   :  { %p3447_p1 = pnand %p3446_p0, %p3440_p11 }
  0x23   :  { %3450 = shalt.err (!%p3447_p1)
}
  0x24   :  { %25 = dma.hbm_to_vmem [thread:$0]  %s3682_s0, 256, %s23_s16, [#allocation3]  }
  0x25   :  { %s3451_s30 = scalar_lea.hbm %s3685_s3, 4096 }
  0x26   :  { %p3452_p2 = scmp.ne.s32.totalorder %s3685_s3, %s3451_s30  ;;  %p3455_p3 = scmp.lt.u32.totalorder %s3451_s30, %s3685_s3 }
  0x28   :  { %p3457_p4 = pnand %p3455_p3, %p3452_p2 }
  0x2a   :  { %3460 = shalt.err (!%p3457_p4)
}
  0x2b   :  { %s3461_s12 = scalar_lea.vmem %s46_s18, 4096  ;;  %p3466_p6 = scmp.lt.s32.totalorder %s46_s18, %s46_s18 }
  0x2c   :  { %p3462_p5 = scmp.ne.s32.totalorder %s46_s18, %s3461_s12  ;;  %p3467_p7 = scmp.lt.s32.totalorder %s3461_s12, %s3461_s12 }
  0x2e   :  { %p3468_p8 = por %p3467_p7, %p3466_p6 }
  0x30   :  { %p3469_p9 = pnand %p3468_p8, %p3462_p5 }
  0x32   :  { %3472 = shalt.err (!%p3469_p9)
}
  0x33   :  { %s3530_s0 = smov 64   ;;  %s3531_s13 = smov 4  }
  0x34   :  { %51 = dma.hbm_to_vmem [thread:$0]  %s3685_s3, 4096, %s46_s18, [#allocation6], %s3530_s0, %s3530_s0, %s3531_s13  }
  0x35   :  { %s3532_s16 = smov [#allocation8]   ;;  %s3473_s21 = scalar_lea.hbm %s3687_s5, 1024 }
  0x36   :  { %s59_s17 = sshll.u32 %s3532_s16, 4  ;;  %p3474_p10 = scmp.ne.s32.totalorder %s3687_s5, %s3473_s21  ;;  %s60_s17 = int_to_ptr.vmem [resolvable:$true] %s59_s17 }
  0x37   :  { %p3477_p11 = scmp.lt.u32.totalorder %s3473_s21, %s3687_s5 }
  0x39   :  { %p3479_p12 = pnand %p3477_p11, %p3474_p10 }
  0x3b   :  { %3482 = shalt.err (!%p3479_p12)
}
  0x3c   :  { %s3483_s1 = scalar_lea.vmem %s60_s17, 1024  ;;  %p3488_p0 = scmp.lt.s32.totalorder %s60_s17, %s60_s17 }
  0x3d   :  { %p3484_p13 = scmp.ne.s32.totalorder %s60_s17, %s3483_s1  ;;  %p3489_p1 = scmp.lt.s32.totalorder %s3483_s1, %s3483_s1 }
  0x3f   :  { %p3490_p2 = por %p3489_p1, %p3488_p0 }
  0x41   :  { %p3491_p3 = pnand %p3490_p2, %p3484_p13 }
  0x43   :  { %3494 = shalt.err (!%p3491_p3)
}
  0x44   :  { %65 = dma.hbm_to_vmem [thread:$0]  %s3687_s5, 1024, %s60_s17, [#allocation9], %s3530_s0, %s3530_s0, %s3531_s13  }
  0x45   :  { %3517 = dma.done.wait [#allocation3], 256  }
  0x46   :  { %3518 = vsyncadd [#allocation3], 4294967040 }
  0x47   :  { %3519 = dma.done.wait [#allocation6], 36864  }
  0x48   :  { %3520 = vsyncadd [#allocation6], 4294930432 }
  0x49   :  { %3521 = dma.done.wait [#allocation9], 1024  }
  0x4a   :  { %3522 = vsyncadd [#allocation9], 4294966272  ;;  %v2957_v0 = vld [vmem:[#allocation5 + $0x4] ss:$16 sps:$4 sm:$0xff]   ;;  %v2959_v1 = vld [vmem:[#allocation5 + $0xc] ss:$16 sps:$4 sm:$0xff]   ;;  %v89_v38 = vlaneseq }
  0x4b   :  { %1693 = vmatprep.subr.bf16.mxu0 %v2957_v0  ;;  %v2961_v2 = vld [vmem:[#allocation5] ss:$16 sps:$4 sm:$0xff]   ;;  %v2962_v3 = vld [vmem:[#allocation5 + $0x8] ss:$16 sps:$4 sm:$0xff]   ;;  %1857 = vmatprep.subr.bf16.mxu1 %v2959_v1  ;;  %v2963_v4 = vld [vmem:[#allocation5 + $0x24] ss:$16 sps:$4 sm:$0xff]  }
  0x4c   :  { %1694 = vmatpush1.bf16.msra.mxu0 %v2961_v2  ;;  %1858 = vmatpush1.bf16.msra.mxu1 %v2962_v3  ;;  %v2965_v5 = vld [vmem:[#allocation5 + $0x2c] ss:$16 sps:$4 sm:$0xff]   ;;  %v2967_v6 = vld [vmem:[#allocation5 + $0x20] ss:$16 sps:$4 sm:$0xff]   ;;  %v2968_v7 = vld [vmem:[#allocation5 + $0x28] ss:$16 sps:$4 sm:$0xff]  }
  0x4d   :  { %1695 = vmatprep.subr.bf16.mxu0 %v2963_v4  ;;  %1859 = vmatprep.subr.bf16.mxu1 %v2965_v5  ;;  %v2969_v8 = vld [vmem:[#allocation5 + $0x44] ss:$16 sps:$4 sm:$0xff]   ;;  %v2971_v9 = vld [vmem:[#allocation5 + $0x4c] ss:$16 sps:$4 sm:$0xff]   ;;  %v2973_v10 = vld [vmem:[#allocation5 + $0x40] ss:$16 sps:$4 sm:$0xff]  }
  0x4e   :  { %v2974_v11 = vld [vmem:[#allocation5 + $0x48] ss:$16 sps:$4 sm:$0xff]   ;;  %v2975_v12 = vld [vmem:[#allocation5 + $0x64] ss:$16 sps:$4 sm:$0xff]   ;;  %v2977_v13 = vld [vmem:[#allocation5 + $0x6c] ss:$16 sps:$4 sm:$0xff]  }
  0x4f   :  { %v2979_v14 = vld [vmem:[#allocation5 + $0x60] ss:$16 sps:$4 sm:$0xff]   ;;  %v2980_v15 = vld [vmem:[#allocation5 + $0x68] ss:$16 sps:$4 sm:$0xff]   ;;  %v2981_v16 = vld [vmem:[#allocation5 + $0x84] ss:$16 sps:$4 sm:$0xff]  }
  0x50   :  { %1696 = vmatpush1.bf16.msra.mxu0 %v2967_v6  ;;  %1860 = vmatpush1.bf16.msra.mxu1 %v2968_v7  ;;  %v2983_v17 = vld [vmem:[#allocation5 + $0x8c] ss:$16 sps:$4 sm:$0xff]   ;;  %v2985_v18 = vld [vmem:[#allocation5 + $0x80] ss:$16 sps:$4 sm:$0xff]   ;;  %v2986_v19 = vld [vmem:[#allocation5 + $0x88] ss:$16 sps:$4 sm:$0xff]  }
  0x51   :  { %1697 = vmatprep.subr.bf16.mxu0 %v2969_v8  ;;  %1861 = vmatprep.subr.bf16.mxu1 %v2971_v9  ;;  %v2987_v20 = vld [vmem:[#allocation5 + $0xa4] ss:$16 sps:$4 sm:$0xff]   ;;  %v2989_v21 = vld [vmem:[#allocation5 + $0xac] ss:$16 sps:$4 sm:$0xff]   ;;  %v2991_v22 = vld [vmem:[#allocation5 + $0xa0] ss:$16 sps:$4 sm:$0xff]  }
  0x52   :  { %v2992_v23 = vld [vmem:[#allocation5 + $0xa8] ss:$16 sps:$4 sm:$0xff]   ;;  %v2993_v24 = vld [vmem:[#allocation5 + $0xc4] ss:$16 sps:$4 sm:$0xff]   ;;  %v2995_v25 = vld [vmem:[#allocation5 + $0xcc] ss:$16 sps:$4 sm:$0xff]  }
  0x53   :  { %v2997_v26 = vld [vmem:[#allocation5 + $0xc0] ss:$16 sps:$4 sm:$0xff]   ;;  %v2998_v27 = vld [vmem:[#allocation5 + $0xc8] ss:$16 sps:$4 sm:$0xff]   ;;  %v2999_v28 = vld [vmem:[#allocation5 + $0xe4] ss:$16 sps:$4 sm:$0xff]  }
  0x54   :  { %1698 = vmatpush1.bf16.msra.mxu0 %v2973_v10  ;;  %1862 = vmatpush1.bf16.msra.mxu1 %v2974_v11  ;;  %v3001_v29 = vld [vmem:[#allocation5 + $0xec] ss:$16 sps:$4 sm:$0xff]   ;;  %v3003_v30 = vld [vmem:[#allocation5 + $0xe0] ss:$16 sps:$4 sm:$0xff]   ;;  %v3004_v31 = vld [vmem:[#allocation5 + $0xe8] ss:$16 sps:$4 sm:$0xff]  }
  0x55   :  { %1699 = vmatprep.subr.bf16.mxu0 %v2975_v12  ;;  %1863 = vmatprep.subr.bf16.mxu1 %v2977_v13  ;;  %v3005_v32 = vld [vmem:[#allocation5 + $0x104] ss:$16 sps:$4 sm:$0xff]   ;;  %v3007_v33 = vld [vmem:[#allocation5 + $0x10c] ss:$16 sps:$4 sm:$0xff]   ;;  %v3009_v34 = vld [vmem:[#allocation5 + $0x100] ss:$16 sps:$4 sm:$0xff]  }
  0x56   :  { %v3010_v35 = vld [vmem:[#allocation5 + $0x108] ss:$16 sps:$4 sm:$0xff]   ;;  %v3533_v36 = vmov 1983009808   ;;  %v3011_v39 = vld [vmem:[#allocation5 + $0x124] ss:$16 sps:$4 sm:$0xff]  }
  0x57   :  { %v87_v37 = vunpack.c.l.s4 %v3533_v36  ;;  %v3013_v40 = vld [vmem:[#allocation5 + $0x12c] ss:$16 sps:$4 sm:$0xff]   ;;  %v3015_v41 = vld [vmem:[#allocation5 + $0x120] ss:$16 sps:$4 sm:$0xff]   ;;  %v3625_v43 = vshrl.u32 %v89_v38, 7  ;;  %vm3535_vm0 = vmmov 0  }
  0x58   :  { %1700 = vmatpush1.bf16.msra.mxu0 %v2979_v14  ;;  %1864 = vmatpush1.bf16.msra.mxu1 %v2980_v15  ;;  %v3016_v44 = vld [vmem:[#allocation5 + $0x128] ss:$16 sps:$4 sm:$0xff]   ;;  %v3017_v45 = vld [vmem:[#allocation5 + $0x144] ss:$16 sps:$4 sm:$0xff]   ;;  %v3019_v46 = vld [vmem:[#allocation5 + $0x14c] ss:$16 sps:$4 sm:$0xff]  }
  0x59   :  { %1701 = vmatprep.subr.bf16.mxu0 %v2981_v16  ;;  %1865 = vmatprep.subr.bf16.mxu1 %v2983_v17  ;;  %v88_v42 = vunpack.c.0.s8 %v87_v37  ;;  %v3021_v47 = vld [vmem:[#allocation5 + $0x140] ss:$16 sps:$4 sm:$0xff]   ;;  %v3022_v48 = vld [vmem:[#allocation5 + $0x148] ss:$16 sps:$4 sm:$0xff]   ;;  %v3023_v50 = vld [vmem:[#allocation5 + $0x164] ss:$16 sps:$4 sm:$0xff]  }
  0x5a   :  { %v3025_v51 = vld [vmem:[#allocation5 + $0x16c] ss:$16 sps:$4 sm:$0xff]   ;;  %v81_v52 = vld [vmem:[#allocation2] sm:$0xff]  ;;  %v3028_v55 = vld [vmem:[#allocation5 + $0x168] ss:$16 sps:$4 sm:$0xff]   ;;  %vm2510_vm1 = vcmask 1041408  }
  0x5b   :  { %v3628_v49 = vsub.s32 %v88_v42, %v3625_v43  ;;  %v3027_v53 = vld [vmem:[#allocation5 + $0x160] ss:$16 sps:$4 sm:$0xff]   ;;  %v3029_v56 = vld [vmem:[#allocation5 + $0x184] ss:$16 sps:$4 sm:$0xff]   ;;  %v3031_v57 = vld [vmem:[#allocation5 + $0x18c] ss:$16 sps:$4 sm:$0xff]   ;;  %v85_v4 = vcombine.high %v81_v52, %v81_v52 }
  0x5c   :  { %1702 = vmatpush1.bf16.msra.mxu0 %v2985_v18  ;;  %1866 = vmatpush1.bf16.msra.mxu1 %v2986_v19  ;;  %v3033_v59 = vld [vmem:[#allocation5 + $0x180] ss:$16 sps:$4 sm:$0xff]   ;;  %v3034_v61 = vld [vmem:[#allocation5 + $0x188] ss:$16 sps:$4 sm:$0xff]   ;;  %v3035_v62 = vld [vmem:[#allocation5 + $0x1a4] ss:$16 sps:$4 sm:$0xff]  }
  0x5d   :  { %1703 = vmatprep.subr.bf16.mxu0 %v2987_v20  ;;  %1867 = vmatprep.subr.bf16.mxu1 %v2989_v21  ;;  %v92_v54 = vrot.slane %v81_v52, %v3628_v49  ;;  %v3037_v63 = vld [vmem:[#allocation5 + $0x1ac] ss:$16 sps:$4 sm:$0xff]   ;;  %v3039_v0 = vld [vmem:[#allocation5 + $0x1a0] ss:$16 sps:$4 sm:$0xff]   ;;  %v3040_v1 = vld [vmem:[#allocation5 + $0x1a8] ss:$16 sps:$4 sm:$0xff]   ;;  %v3632_v9 = vrot.slane %v85_v4, %v3628_v49 }
  0x5e   :  { %v3041_v2 = vld [vmem:[#allocation5 + $0x1c4] ss:$16 sps:$4 sm:$0xff]   ;;  %v3043_v3 = vld [vmem:[#allocation5 + $0x1cc] ss:$16 sps:$4 sm:$0xff]   ;;  %v3045_v5 = vld [vmem:[#allocation5 + $0x1c0] ss:$16 sps:$4 sm:$0xff]  }
  0x5f   :  { %v100_v58 = vcombine.high %v92_v54, %v92_v54  ;;  %v3046_v6 = vld [vmem:[#allocation5 + $0x1c8] ss:$16 sps:$4 sm:$0xff]   ;;  %v3047_v7 = vld [vmem:[#allocation5 + $0x1e4] ss:$16 sps:$4 sm:$0xff]   ;;  %v3049_v8 = vld [vmem:[#allocation5 + $0x1ec] ss:$16 sps:$4 sm:$0xff]   ;;  %v101_v14 = vcombine.high %v3632_v9, %v3632_v9  ;;  %v127_v16 = vpack.c.bf16 %v92_v54, %v92_v54 }
  0x60   :  { %1704 = vmatpush1.bf16.msra.mxu0 %v2991_v22  ;;  %1868 = vmatpush1.bf16.msra.mxu1 %v2992_v23  ;;  %v3051_v10 = vld [vmem:[#allocation5 + $0x1e0] ss:$16 sps:$4 sm:$0xff]   ;;  %v3052_v11 = vld [vmem:[#allocation5 + $0x1e8] ss:$16 sps:$4 sm:$0xff]   ;;  %v3056_v12 = vld [vmem:[#allocation5 + $0x204] ss:$16 sps:$4 sm:$0xff]  }
  0x61   :  { %1705 = vmatprep.subr.bf16.mxu0 %v2993_v24  ;;  %1869 = vmatprep.subr.bf16.mxu1 %v2995_v25  ;;  %v128_v60 = vpack.c.bf16 %v100_v58, %v100_v58  ;;  %v3059_v13 = vld [vmem:[#allocation5 + $0x20c] ss:$16 sps:$4 sm:$0xff]   ;;  %v3054_v15 = vld [vmem:[#allocation5 + $0x200] ss:$16 sps:$4 sm:$0xff]   ;;  %v3057_v17 = vld [vmem:[#allocation5 + $0x208] ss:$16 sps:$4 sm:$0xff]   ;;  %v130_v20 = vpack.c.bf16 %v101_v14, %v101_v14 }
  0x62   :  { %v3062_v18 = vld [vmem:[#allocation5 + $0x224] ss:$16 sps:$4 sm:$0xff]   ;;  %v3065_v19 = vld [vmem:[#allocation5 + $0x22c] ss:$16 sps:$4 sm:$0xff]   ;;  %v3060_v21 = vld [vmem:[#allocation5 + $0x220] ss:$16 sps:$4 sm:$0xff]  }
  0x63   :  { %1725 = vmatprep.mubr.bf16.mxu0 %v128_v60  ;;  %1889 = vmatprep.mubr.bf16.mxu1 %v128_v60  ;;  %v3063_v22 = vld [vmem:[#allocation5 + $0x228] ss:$16 sps:$4 sm:$0xff]   ;;  %v3068_v23 = vld [vmem:[#allocation5 + $0x244] ss:$16 sps:$4 sm:$0xff]   ;;  %v3071_v24 = vld [vmem:[#allocation5 + $0x24c] ss:$16 sps:$4 sm:$0xff]  }
  0x64   :  { %1706 = vmatpush1.bf16.msra.mxu0 %v2997_v26  ;;  %1870 = vmatpush1.bf16.msra.mxu1 %v2998_v27  ;;  %v3066_v25 = vld [vmem:[#allocation5 + $0x240] ss:$16 sps:$4 sm:$0xff]   ;;  %v3069_v26 = vld [vmem:[#allocation5 + $0x248] ss:$16 sps:$4 sm:$0xff]   ;;  %v3074_v27 = vld [vmem:[#allocation5 + $0x264] ss:$16 sps:$4 sm:$0xff]  }
  0x65   :  { %1707 = vmatprep.subr.bf16.mxu0 %v2999_v28  ;;  %1871 = vmatprep.subr.bf16.mxu1 %v3001_v29  ;;  %v3077_v28 = vld [vmem:[#allocation5 + $0x26c] ss:$16 sps:$4 sm:$0xff]   ;;  %v3072_v29 = vld [vmem:[#allocation5 + $0x260] ss:$16 sps:$4 sm:$0xff]   ;;  %v3087_v38 = vld [vmem:[#allocation5 + $0x2a8] ss:$16 sps:$4 sm:$0xff]  }
  0x66   :  { %v3089_v36 = vld [vmem:[#allocation5 + $0x2ac] ss:$16 sps:$4 sm:$0xff]   ;;  %v3084_v37 = vld [vmem:[#allocation5 + $0x2a0] ss:$16 sps:$4 sm:$0xff]   ;;  %v3093_v42 = vld [vmem:[#allocation5 + $0x2c8] ss:$16 sps:$4 sm:$0xff]  }
  0x67   :  { %v3105_v52 = vld [vmem:[#allocation5 + $0x308] ss:$16 sps:$4 sm:$0xff]   ;;  %v3113_v54 = vld [vmem:[#allocation5 + $0x32c] ss:$16 sps:$4 sm:$0xff]   ;;  %v3146_v14 = vld [vmem:[#allocation5 + $0x3e4] ss:$16 sps:$4 sm:$0xff]  }
  0x68   :  { %1708 = vmatpush1.bf16.msra.mxu0 %v3003_v30  ;;  %1872 = vmatpush1.bf16.msra.mxu1 %v3004_v31  ;;  %v3075_v30 = vld [vmem:[#allocation5 + $0x268] ss:$16 sps:$4 sm:$0xff]   ;;  %v3080_v31 = vld [vmem:[#allocation5 + $0x284] ss:$16 sps:$4 sm:$0xff]   ;;  %v3119_v58 = vld [vmem:[#allocation5 + $0x34c] ss:$16 sps:$4 sm:$0xff]  }
  0x69   :  { %1709 = vmatprep.subr.bf16.mxu0 %v3005_v32  ;;  %1873 = vmatprep.subr.bf16.mxu1 %v3007_v33  ;;  %v3083_v32 = vld [vmem:[#allocation5 + $0x28c] ss:$16 sps:$4 sm:$0xff]   ;;  %v3078_v33 = vld [vmem:[#allocation5 + $0x280] ss:$16 sps:$4 sm:$0xff]   ;;  %v3117_v60 = vld [vmem:[#allocation5 + $0x348] ss:$16 sps:$4 sm:$0xff]  }
  0x6a   :  { %v3129_v4 = vld [vmem:[#allocation5 + $0x388] ss:$16 sps:$4 sm:$0xff]   ;;  %s3536_s29 = smov [#allocation10]  }
  0x6c   :  { %1710 = vmatpush1.bf16.msra.mxu0 %v3009_v34  ;;  %1874 = vmatpush1.bf16.msra.mxu1 %v3010_v35  ;;  %v3081_v34 = vld [vmem:[#allocation5 + $0x288] ss:$16 sps:$4 sm:$0xff]   ;;  %v3086_v35 = vld [vmem:[#allocation5 + $0x2a4] ss:$16 sps:$4 sm:$0xff]  }
  0x6d   :  { %1711 = vmatprep.subr.bf16.mxu0 %v3011_v39  ;;  %1875 = vmatprep.subr.bf16.mxu1 %v3013_v40  ;;  %v3092_v39 = vld [vmem:[#allocation5 + $0x2c4] ss:$16 sps:$4 sm:$0xff]   ;;  %v3095_v40 = vld [vmem:[#allocation5 + $0x2cc] ss:$16 sps:$4 sm:$0xff]  }
  0x70   :  { %1712 = vmatpush1.bf16.msra.mxu0 %v3015_v41  ;;  %1876 = vmatpush1.bf16.msra.mxu1 %v3016_v44  ;;  %v3090_v41 = vld [vmem:[#allocation5 + $0x2c0] ss:$16 sps:$4 sm:$0xff]   ;;  %v3098_v44 = vld [vmem:[#allocation5 + $0x2e4] ss:$16 sps:$4 sm:$0xff]  }
  0x71   :  { %1713 = vmatprep.subr.bf16.mxu0 %v3017_v45  ;;  %1877 = vmatprep.subr.bf16.mxu1 %v3019_v46  ;;  %v3101_v45 = vld [vmem:[#allocation5 + $0x2ec] ss:$16 sps:$4 sm:$0xff]   ;;  %v3096_v46 = vld [vmem:[#allocation5 + $0x2e0] ss:$16 sps:$4 sm:$0xff]  }
  0x74   :  { %1714 = vmatpush1.bf16.msra.mxu0 %v3021_v47  ;;  %1878 = vmatpush1.bf16.msra.mxu1 %v3022_v48  ;;  %v3099_v47 = vld [vmem:[#allocation5 + $0x2e8] ss:$16 sps:$4 sm:$0xff]   ;;  %v3104_v48 = vld [vmem:[#allocation5 + $0x304] ss:$16 sps:$4 sm:$0xff]  }
  0x75   :  { %1715 = vmatprep.subr.bf16.mxu0 %v3023_v50  ;;  %1879 = vmatprep.subr.bf16.mxu1 %v3025_v51  ;;  %v3107_v50 = vld [vmem:[#allocation5 + $0x30c] ss:$16 sps:$4 sm:$0xff]   ;;  %v3102_v51 = vld [vmem:[#allocation5 + $0x300] ss:$16 sps:$4 sm:$0xff]  }
  0x78   :  { %1716 = vmatpush1.bf16.msra.mxu0 %v3027_v53  ;;  %1880 = vmatpush1.bf16.msra.mxu1 %v3028_v55  ;;  %v3110_v53 = vld [vmem:[#allocation5 + $0x324] ss:$16 sps:$4 sm:$0xff]   ;;  %v3108_v55 = vld [vmem:[#allocation5 + $0x320] ss:$16 sps:$4 sm:$0xff]  }
  0x79   :  { %1717 = vmatprep.subr.bf16.mxu0 %v3029_v56  ;;  %1881 = vmatprep.subr.bf16.mxu1 %v3031_v57  ;;  %v3111_v56 = vld [vmem:[#allocation5 + $0x328] ss:$16 sps:$4 sm:$0xff]   ;;  %v3116_v57 = vld [vmem:[#allocation5 + $0x344] ss:$16 sps:$4 sm:$0xff]  }
  0x7c   :  { %1718 = vmatpush1.bf16.msra.mxu0 %v3033_v59  ;;  %1882 = vmatpush1.bf16.msra.mxu1 %v3034_v61  ;;  %v3114_v59 = vld [vmem:[#allocation5 + $0x340] ss:$16 sps:$4 sm:$0xff]   ;;  %v3122_v61 = vld [vmem:[#allocation5 + $0x364] ss:$16 sps:$4 sm:$0xff]  }
  0x7d   :  { %1719 = vmatprep.subr.bf16.mxu0 %v3035_v62  ;;  %1883 = vmatprep.subr.bf16.mxu1 %v3037_v63  ;;  %v3125_v62 = vld [vmem:[#allocation5 + $0x36c] ss:$16 sps:$4 sm:$0xff]   ;;  %v3120_v63 = vld [vmem:[#allocation5 + $0x360] ss:$16 sps:$4 sm:$0xff]  }
  0x80   :  { %1720 = vmatpush1.bf16.msra.mxu0 %v3039_v0  ;;  %1884 = vmatpush1.bf16.msra.mxu1 %v3040_v1  ;;  %v3123_v0 = vld [vmem:[#allocation5 + $0x368] ss:$16 sps:$4 sm:$0xff]   ;;  %v3128_v1 = vld [vmem:[#allocation5 + $0x384] ss:$16 sps:$4 sm:$0xff]  }
  0x81   :  { %1721 = vmatprep.subr.bf16.mxu0 %v3041_v2  ;;  %1885 = vmatprep.subr.bf16.mxu1 %v3043_v3  ;;  %v3131_v2 = vld [vmem:[#allocation5 + $0x38c] ss:$16 sps:$4 sm:$0xff]   ;;  %v3126_v3 = vld [vmem:[#allocation5 + $0x380] ss:$16 sps:$4 sm:$0xff]  }
  0x84   :  { %1722 = vmatpush1.bf16.msra.mxu0 %v3045_v5  ;;  %1886 = vmatpush1.bf16.msra.mxu1 %v3046_v6  ;;  %v3134_v5 = vld [vmem:[#allocation5 + $0x3a4] ss:$16 sps:$4 sm:$0xff]   ;;  %v3137_v6 = vld [vmem:[#allocation5 + $0x3ac] ss:$16 sps:$4 sm:$0xff]  }
  0x85   :  { %1723 = vmatprep.subr.bf16.mxu0 %v3047_v7  ;;  %1887 = vmatprep.subr.bf16.mxu1 %v3049_v8  ;;  %v3132_v7 = vld [vmem:[#allocation5 + $0x3a0] ss:$16 sps:$4 sm:$0xff]   ;;  %v3135_v8 = vld [vmem:[#allocation5 + $0x3a8] ss:$16 sps:$4 sm:$0xff]  }
  0x88   :  { %1724 = vmatpush1.bf16.msra.mxu0 %v3051_v10  ;;  %1888 = vmatpush1.bf16.msra.mxu1 %v3052_v11  ;;  %v3140_v10 = vld [vmem:[#allocation5 + $0x3c4] ss:$16 sps:$4 sm:$0xff]   ;;  %v3143_v11 = vld [vmem:[#allocation5 + $0x3cc] ss:$16 sps:$4 sm:$0xff]  }
  0x89   :  { %1734 = vmatprep.subr.bf16.mxu0 %v3056_v12  ;;  %1898 = vmatprep.subr.bf16.mxu1 %v3059_v13  ;;  %v3138_v12 = vld [vmem:[#allocation5 + $0x3c0] ss:$16 sps:$4 sm:$0xff]   ;;  %v3141_v13 = vld [vmem:[#allocation5 + $0x3c8] ss:$16 sps:$4 sm:$0xff]  }
  0x8b   :  { %1726 = vmatmul.mubr.bf16.vlgmr.msra.gmra.mrb[0].mxu0 %v127_v16  ;;  %1890 = vmatmul.mubr.bf16.vlgmr.msra.gmra.mrb[0].mxu1 %v127_v16  ;;  %v3144_v16 = vld [vmem:[#allocation5 + $0x3e0] ss:$16 sps:$4 sm:$0xff]  }
  0x8c   :  { %1735 = vmatpush1.bf16.msra.mxu0 %v3054_v15  ;;  %1899 = vmatpush1.bf16.msra.mxu1 %v3057_v17  ;;  %v3149_v15 = vld [vmem:[#allocation5 + $0x3ec] ss:$16 sps:$4 sm:$0xff]   ;;  %v3147_v17 = vld [vmem:[#allocation5 + $0x3e8] ss:$16 sps:$4 sm:$0xff]  }
  0x8d   :  { %1736 = vmatprep.subr.bf16.mxu0 %v3062_v18  ;;  %1900 = vmatprep.subr.bf16.mxu1 %v3065_v19  ;;  %v3152_v18 = vld [vmem:[#allocation5 + $0x404] ss:$16 sps:$4 sm:$0xff]   ;;  %v3155_v19 = vld [vmem:[#allocation5 + $0x40c] ss:$16 sps:$4 sm:$0xff]  }
  0x8e   :  { %1766 = vmatprep.mubr.bf16.mxu0 %v130_v20  ;;  %1930 = vmatprep.mubr.bf16.mxu1 %v130_v20  ;;  %v3150_v20 = vld [vmem:[#allocation5 + $0x400] ss:$16 sps:$4 sm:$0xff]  }
  0x90   :  { %1737 = vmatpush1.bf16.msra.mxu0 %v3060_v21  ;;  %1901 = vmatpush1.bf16.msra.mxu1 %v3063_v22  ;;  %v129_v21 = vpack.c.bf16 %v3632_v9, %v3632_v9  ;;  %v3153_v22 = vld [vmem:[#allocation5 + $0x408] ss:$16 sps:$4 sm:$0xff]   ;;  %v3156_v9 = vld [vmem:[#allocation5 + $0x420] ss:$16 sps:$4 sm:$0xff]  }
  0x91   :  { %1738 = vmatprep.subr.bf16.mxu0 %v3068_v23  ;;  %1902 = vmatprep.subr.bf16.mxu1 %v3071_v24  ;;  %v3638_v23 = vld [vmem:[#allocation2 + $0x8] sm:$0xff]  ;;  %v3158_v24 = vld [vmem:[#allocation5 + $0x424] ss:$16 sps:$4 sm:$0xff]  }
  0x94   :  { %1739 = vmatpush1.bf16.msra.mxu0 %v3066_v25  ;;  %1903 = vmatpush1.bf16.msra.mxu1 %v3069_v26  ;;  %v3161_v25 = vld [vmem:[#allocation5 + $0x42c] ss:$16 sps:$4 sm:$0xff]   ;;  %v3642_v26 = vrot.slane %v3638_v23, %v3628_v49 }
  0x95   :  { %1740 = vmatprep.subr.bf16.mxu0 %v3074_v27  ;;  %1904 = vmatprep.subr.bf16.mxu1 %v3077_v28  ;;  %v3159_v28 = vld [vmem:[#allocation5 + $0x428] ss:$16 sps:$4 sm:$0xff]  }
  0x96   :  { %v117_v27 = vcombine.high %v3642_v26, %v3642_v26 }
  0x98   :  { %1741 = vmatpush1.bf16.msra.mxu0 %v3072_v29  ;;  %1905 = vmatpush1.bf16.msra.mxu1 %v3075_v30  ;;  %v3164_v29 = vld [vmem:[#allocation5 + $0x444] ss:$16 sps:$4 sm:$0xff]   ;;  %v3167_v30 = vld [vmem:[#allocation5 + $0x44c] ss:$16 sps:$4 sm:$0xff]  }
  0x99   :  { %1742 = vmatprep.subr.bf16.mxu0 %v3080_v31  ;;  %1906 = vmatprep.subr.bf16.mxu1 %v3083_v32  ;;  %v132_v31 = vpack.c.bf16 %v117_v27, %v117_v27  ;;  %v3162_v32 = vld [vmem:[#allocation5 + $0x440] ss:$16 sps:$4 sm:$0xff]   ;;  %v3243_v27 = vld [vmem:[#allocation5 + $0x5e8] ss:$16 sps:$4 sm:$0xff]  }
  0x9c   :  { %1743 = vmatpush1.bf16.msra.mxu0 %v3078_v33  ;;  %1907 = vmatpush1.bf16.msra.mxu1 %v3081_v34  ;;  %v3165_v33 = vld [vmem:[#allocation5 + $0x448] ss:$16 sps:$4 sm:$0xff]   ;;  %v3170_v34 = vld [vmem:[#allocation5 + $0x464] ss:$16 sps:$4 sm:$0xff]  }
  0x9d   :  { %1744 = vmatprep.subr.bf16.mxu0 %v3086_v35  ;;  %1908 = vmatprep.subr.bf16.mxu1 %v3089_v36  ;;  %v3173_v35 = vld [vmem:[#allocation5 + $0x46c] ss:$16 sps:$4 sm:$0xff]   ;;  %v3168_v36 = vld [vmem:[#allocation5 + $0x460] ss:$16 sps:$4 sm:$0xff]  }
  0xa0   :  { %1745 = vmatpush1.bf16.msra.mxu0 %v3084_v37  ;;  %1909 = vmatpush1.bf16.msra.mxu1 %v3087_v38  ;;  %v3171_v37 = vld [vmem:[#allocation5 + $0x468] ss:$16 sps:$4 sm:$0xff]   ;;  %v3176_v38 = vld [vmem:[#allocation5 + $0x484] ss:$16 sps:$4 sm:$0xff]  }
  0xa1   :  { %1746 = vmatprep.subr.bf16.mxu0 %v3092_v39  ;;  %1910 = vmatprep.subr.bf16.mxu1 %v3095_v40  ;;  %v3179_v39 = vld [vmem:[#allocation5 + $0x48c] ss:$16 sps:$4 sm:$0xff]   ;;  %v3174_v40 = vld [vmem:[#allocation5 + $0x480] ss:$16 sps:$4 sm:$0xff]  }
  0xa4   :  { %1747 = vmatpush1.bf16.msra.mxu0 %v3090_v41  ;;  %1911 = vmatpush1.bf16.msra.mxu1 %v3093_v42  ;;  %v3177_v41 = vld [vmem:[#allocation5 + $0x488] ss:$16 sps:$4 sm:$0xff]   ;;  %v3182_v42 = vld [vmem:[#allocation5 + $0x4a4] ss:$16 sps:$4 sm:$0xff]  }
  0xa5   :  { %1748 = vmatprep.subr.bf16.mxu0 %v3098_v44  ;;  %1912 = vmatprep.subr.bf16.mxu1 %v3101_v45  ;;  %v3185_v44 = vld [vmem:[#allocation5 + $0x4ac] ss:$16 sps:$4 sm:$0xff]   ;;  %v3180_v45 = vld [vmem:[#allocation5 + $0x4a0] ss:$16 sps:$4 sm:$0xff]  }
  0xa8   :  { %1749 = vmatpush1.bf16.msra.mxu0 %v3096_v46  ;;  %1913 = vmatpush1.bf16.msra.mxu1 %v3099_v47  ;;  %v3183_v46 = vld [vmem:[#allocation5 + $0x4a8] ss:$16 sps:$4 sm:$0xff]   ;;  %v3188_v47 = vld [vmem:[#allocation5 + $0x4c4] ss:$16 sps:$4 sm:$0xff]  }
  0xa9   :  { %1750 = vmatprep.subr.bf16.mxu0 %v3104_v48  ;;  %1914 = vmatprep.subr.bf16.mxu1 %v3107_v50  ;;  %v3191_v48 = vld [vmem:[#allocation5 + $0x4cc] ss:$16 sps:$4 sm:$0xff]   ;;  %v3186_v50 = vld [vmem:[#allocation5 + $0x4c0] ss:$16 sps:$4 sm:$0xff]  }
  0xac   :  { %1751 = vmatpush1.bf16.msra.mxu0 %v3102_v51  ;;  %1915 = vmatpush1.bf16.msra.mxu1 %v3105_v52  ;;  %v3189_v51 = vld [vmem:[#allocation5 + $0x4c8] ss:$16 sps:$4 sm:$0xff]   ;;  %v3194_v52 = vld [vmem:[#allocation5 + $0x4e4] ss:$16 sps:$4 sm:$0xff]  }
  0xad   :  { %1752 = vmatprep.subr.bf16.mxu0 %v3110_v53  ;;  %1916 = vmatprep.subr.bf16.mxu1 %v3113_v54  ;;  %v3197_v53 = vld [vmem:[#allocation5 + $0x4ec] ss:$16 sps:$4 sm:$0xff]   ;;  %v3192_v54 = vld [vmem:[#allocation5 + $0x4e0] ss:$16 sps:$4 sm:$0xff]  }
  0xb0   :  { %1753 = vmatpush1.bf16.msra.mxu0 %v3108_v55  ;;  %1917 = vmatpush1.bf16.msra.mxu1 %v3111_v56  ;;  %v3195_v55 = vld [vmem:[#allocation5 + $0x4e8] ss:$16 sps:$4 sm:$0xff]   ;;  %v3200_v56 = vld [vmem:[#allocation5 + $0x504] ss:$16 sps:$4 sm:$0xff]  }
  0xb1   :  { %1754 = vmatprep.subr.bf16.mxu0 %v3116_v57  ;;  %1918 = vmatprep.subr.bf16.mxu1 %v3119_v58  ;;  %v3203_v57 = vld [vmem:[#allocation5 + $0x50c] ss:$16 sps:$4 sm:$0xff]   ;;  %v3198_v58 = vld [vmem:[#allocation5 + $0x500] ss:$16 sps:$4 sm:$0xff]  }
  0xb4   :  { %1755 = vmatpush1.bf16.msra.mxu0 %v3114_v59  ;;  %1919 = vmatpush1.bf16.msra.mxu1 %v3117_v60  ;;  %v3201_v59 = vld [vmem:[#allocation5 + $0x508] ss:$16 sps:$4 sm:$0xff]   ;;  %v3206_v60 = vld [vmem:[#allocation5 + $0x524] ss:$16 sps:$4 sm:$0xff]  }
  0xb5   :  { %1756 = vmatprep.subr.bf16.mxu0 %v3122_v61  ;;  %1920 = vmatprep.subr.bf16.mxu1 %v3125_v62  ;;  %v3209_v61 = vld [vmem:[#allocation5 + $0x52c] ss:$16 sps:$4 sm:$0xff]   ;;  %v3204_v62 = vld [vmem:[#allocation5 + $0x520] ss:$16 sps:$4 sm:$0xff]  }
  0xb8   :  { %1757 = vmatpush1.bf16.msra.mxu0 %v3120_v63  ;;  %1921 = vmatpush1.bf16.msra.mxu1 %v3123_v0  ;;  %v3207_v63 = vld [vmem:[#allocation5 + $0x528] ss:$16 sps:$4 sm:$0xff]   ;;  %v3212_v0 = vld [vmem:[#allocation5 + $0x544] ss:$16 sps:$4 sm:$0xff]  }
  0xb9   :  { %1758 = vmatprep.subr.bf16.mxu0 %v3128_v1  ;;  %1922 = vmatprep.subr.bf16.mxu1 %v3131_v2  ;;  %v3215_v1 = vld [vmem:[#allocation5 + $0x54c] ss:$16 sps:$4 sm:$0xff]   ;;  %v3210_v2 = vld [vmem:[#allocation5 + $0x540] ss:$16 sps:$4 sm:$0xff]  }
  0xbc   :  { %1759 = vmatpush1.bf16.msra.mxu0 %v3126_v3  ;;  %1923 = vmatpush1.bf16.msra.mxu1 %v3129_v4  ;;  %v3213_v3 = vld [vmem:[#allocation5 + $0x548] ss:$16 sps:$4 sm:$0xff]   ;;  %v3218_v4 = vld [vmem:[#allocation5 + $0x564] ss:$16 sps:$4 sm:$0xff]  }
  0xbd   :  { %1760 = vmatprep.subr.bf16.mxu0 %v3134_v5  ;;  %1924 = vmatprep.subr.bf16.mxu1 %v3137_v6  ;;  %v3221_v5 = vld [vmem:[#allocation5 + $0x56c] ss:$16 sps:$4 sm:$0xff]   ;;  %v3216_v6 = vld [vmem:[#allocation5 + $0x560] ss:$16 sps:$4 sm:$0xff]  }
  0xc0   :  { %1761 = vmatpush1.bf16.msra.mxu0 %v3132_v7  ;;  %1925 = vmatpush1.bf16.msra.mxu1 %v3135_v8  ;;  %v3219_v7 = vld [vmem:[#allocation5 + $0x568] ss:$16 sps:$4 sm:$0xff]   ;;  %v3224_v8 = vld [vmem:[#allocation5 + $0x584] ss:$16 sps:$4 sm:$0xff]  }
  0xc1   :  { %1762 = vmatprep.subr.bf16.mxu0 %v3140_v10  ;;  %1926 = vmatprep.subr.bf16.mxu1 %v3143_v11  ;;  %v3227_v10 = vld [vmem:[#allocation5 + $0x58c] ss:$16 sps:$4 sm:$0xff]   ;;  %v3222_v11 = vld [vmem:[#allocation5 + $0x580] ss:$16 sps:$4 sm:$0xff]  }
  0xc4   :  { %1763 = vmatpush1.bf16.msra.mxu0 %v3138_v12  ;;  %1927 = vmatpush1.bf16.msra.mxu1 %v3141_v13  ;;  %v3225_v12 = vld [vmem:[#allocation5 + $0x588] ss:$16 sps:$4 sm:$0xff]   ;;  %v3230_v13 = vld [vmem:[#allocation5 + $0x5a4] ss:$16 sps:$4 sm:$0xff]  }
  0xc5   :  { %1764 = vmatprep.subr.bf16.mxu0 %v3146_v14  ;;  %1928 = vmatprep.subr.bf16.mxu1 %v3149_v15  ;;  %v3233_v14 = vld [vmem:[#allocation5 + $0x5ac] ss:$16 sps:$4 sm:$0xff]   ;;  %v3228_v15 = vld [vmem:[#allocation5 + $0x5a0] ss:$16 sps:$4 sm:$0xff]  }
  0xc8   :  { %1765 = vmatpush1.bf16.msra.mxu0 %v3144_v16  ;;  %1929 = vmatpush1.bf16.msra.mxu1 %v3147_v17  ;;  %v3231_v16 = vld [vmem:[#allocation5 + $0x5a8] ss:$16 sps:$4 sm:$0xff]   ;;  %v3236_v17 = vld [vmem:[#allocation5 + $0x5c4] ss:$16 sps:$4 sm:$0xff]  }
  0xc9   :  { %1775 = vmatprep.subr.bf16.mxu0 %v3152_v18  ;;  %1939 = vmatprep.subr.bf16.mxu1 %v3155_v19  ;;  %v3239_v18 = vld [vmem:[#allocation5 + $0x5cc] ss:$16 sps:$4 sm:$0xff]   ;;  %v3234_v19 = vld [vmem:[#allocation5 + $0x5c0] ss:$16 sps:$4 sm:$0xff]  }
  0xcb   :  { %1767 = vmatmul.mubr.bf16.vlgmr.msra.gmra.mrb[0].mxu0 %v129_v21  ;;  %1931 = vmatmul.mubr.bf16.vlgmr.msra.gmra.mrb[0].mxu1 %v129_v21  ;;  %v102_v21 = vcombine.high %v3638_v23, %v3638_v23 }
  0xcc   :  { %1776 = vmatpush1.bf16.msra.mxu0 %v3150_v20  ;;  %1940 = vmatpush1.bf16.msra.mxu1 %v3153_v22  ;;  %v3237_v20 = vld [vmem:[#allocation5 + $0x5c8] ss:$16 sps:$4 sm:$0xff]   ;;  %v3242_v22 = vld [vmem:[#allocation5 + $0x5e4] ss:$16 sps:$4 sm:$0xff]  }
  0xcd   :  { %1777 = vmatprep.subr.bf16.mxu0 %v3158_v24  ;;  %1941 = vmatprep.subr.bf16.mxu1 %v3161_v25  ;;  %v3245_v24 = vld [vmem:[#allocation5 + $0x5ec] ss:$16 sps:$4 sm:$0xff]   ;;  %v3240_v25 = vld [vmem:[#allocation5 + $0x5e0] ss:$16 sps:$4 sm:$0xff]  }
  0xce   :  { %1807 = vmatprep.mubr.bf16.mxu0 %v132_v31  ;;  %1971 = vmatprep.mubr.bf16.mxu1 %v132_v31  ;;  %v3249_v31 = vld [vmem:[#allocation5 + $0x608] ss:$16 sps:$4 sm:$0xff]  }
  0xd0   :  { %1778 = vmatpush1.bf16.msra.mxu0 %v3156_v9  ;;  %1942 = vmatpush1.bf16.msra.mxu1 %v3159_v28  ;;  %v3649_v9 = vrot.slane %v102_v21, %v3628_v49  ;;  %v3248_v28 = vld [vmem:[#allocation5 + $0x604] ss:$16 sps:$4 sm:$0xff]   ;;  %v3252_v49 = vld [vmem:[#allocation5 + $0x620] ss:$16 sps:$4 sm:$0xff]  }
  0xd1   :  { %1779 = vmatprep.subr.bf16.mxu0 %v3164_v29  ;;  %1943 = vmatprep.subr.bf16.mxu1 %v3167_v30  ;;  %v3251_v29 = vld [vmem:[#allocation5 + $0x60c] ss:$16 sps:$4 sm:$0xff]   ;;  %v3246_v30 = vld [vmem:[#allocation5 + $0x600] ss:$16 sps:$4 sm:$0xff]  }
  0xd2   :  { %v118_v23 = vcombine.high %v3649_v9, %v3649_v9  ;;  %v3324_v21 = vld [vmem:[#allocation5 + $0x7a0] ss:$16 sps:$4 sm:$0xff]  }
  0xd4   :  { %1780 = vmatpush1.bf16.msra.mxu0 %v3162_v32  ;;  %1944 = vmatpush1.bf16.msra.mxu1 %v3165_v33  ;;  %v131_v32 = vpack.c.bf16 %v3642_v26, %v3642_v26  ;;  %v3254_v33 = vld [vmem:[#allocation5 + $0x624] ss:$16 sps:$4 sm:$0xff]   ;;  %v3258_v26 = vld [vmem:[#allocation5 + $0x640] ss:$16 sps:$4 sm:$0xff]  }
  0xd5   :  { %1781 = vmatprep.subr.bf16.mxu0 %v3170_v34  ;;  %1945 = vmatprep.subr.bf16.mxu1 %v3173_v35  ;;  %v3257_v34 = vld [vmem:[#allocation5 + $0x62c] ss:$16 sps:$4 sm:$0xff]   ;;  %v3255_v35 = vld [vmem:[#allocation5 + $0x628] ss:$16 sps:$4 sm:$0xff]  }
  0xd8   :  { %1782 = vmatpush1.bf16.msra.mxu0 %v3168_v36  ;;  %1946 = vmatpush1.bf16.msra.mxu1 %v3171_v37  ;;  %v134_v36 = vpack.c.bf16 %v118_v23, %v118_v23  ;;  %v3260_v37 = vld [vmem:[#allocation5 + $0x644] ss:$16 sps:$4 sm:$0xff]   ;;  %v3339_v23 = vld [vmem:[#allocation5 + $0x7e8] ss:$16 sps:$4 sm:$0xff]  }
  0xd9   :  { %1783 = vmatprep.subr.bf16.mxu0 %v3176_v38  ;;  %1947 = vmatprep.subr.bf16.mxu1 %v3179_v39  ;;  %v3263_v38 = vld [vmem:[#allocation5 + $0x64c] ss:$16 sps:$4 sm:$0xff]   ;;  %v3261_v39 = vld [vmem:[#allocation5 + $0x648] ss:$16 sps:$4 sm:$0xff]  }
  0xdc   :  { %1784 = vmatpush1.bf16.msra.mxu0 %v3174_v40  ;;  %1948 = vmatpush1.bf16.msra.mxu1 %v3177_v41  ;;  %v3266_v40 = vld [vmem:[#allocation5 + $0x664] ss:$16 sps:$4 sm:$0xff]   ;;  %v3269_v41 = vld [vmem:[#allocation5 + $0x66c] ss:$16 sps:$4 sm:$0xff]  }
  0xdd   :  { %1785 = vmatprep.subr.bf16.mxu0 %v3182_v42  ;;  %1949 = vmatprep.subr.bf16.mxu1 %v3185_v44  ;;  %v3264_v42 = vld [vmem:[#allocation5 + $0x660] ss:$16 sps:$4 sm:$0xff]   ;;  %v3267_v44 = vld [vmem:[#allocation5 + $0x668] ss:$16 sps:$4 sm:$0xff]  }
  0xe0   :  { %1786 = vmatpush1.bf16.msra.mxu0 %v3180_v45  ;;  %1950 = vmatpush1.bf16.msra.mxu1 %v3183_v46  ;;  %v3272_v45 = vld [vmem:[#allocation5 + $0x684] ss:$16 sps:$4 sm:$0xff]   ;;  %v3275_v46 = vld [vmem:[#allocation5 + $0x68c] ss:$16 sps:$4 sm:$0xff]  }
  0xe1   :  { %1787 = vmatprep.subr.bf16.mxu0 %v3188_v47  ;;  %1951 = vmatprep.subr.bf16.mxu1 %v3191_v48  ;;  %v3270_v47 = vld [vmem:[#allocation5 + $0x680] ss:$16 sps:$4 sm:$0xff]   ;;  %v3273_v48 = vld [vmem:[#allocation5 + $0x688] ss:$16 sps:$4 sm:$0xff]  }
  0xe4   :  { %1788 = vmatpush1.bf16.msra.mxu0 %v3186_v50  ;;  %1952 = vmatpush1.bf16.msra.mxu1 %v3189_v51  ;;  %v3278_v50 = vld [vmem:[#allocation5 + $0x6a4] ss:$16 sps:$4 sm:$0xff]   ;;  %v3281_v51 = vld [vmem:[#allocation5 + $0x6ac] ss:$16 sps:$4 sm:$0xff]  }
  0xe5   :  { %1789 = vmatprep.subr.bf16.mxu0 %v3194_v52  ;;  %1953 = vmatprep.subr.bf16.mxu1 %v3197_v53  ;;  %v3276_v52 = vld [vmem:[#allocation5 + $0x6a0] ss:$16 sps:$4 sm:$0xff]   ;;  %v3279_v53 = vld [vmem:[#allocation5 + $0x6a8] ss:$16 sps:$4 sm:$0xff]  }
  0xe8   :  { %1790 = vmatpush1.bf16.msra.mxu0 %v3192_v54  ;;  %1954 = vmatpush1.bf16.msra.mxu1 %v3195_v55  ;;  %v3284_v54 = vld [vmem:[#allocation5 + $0x6c4] ss:$16 sps:$4 sm:$0xff]   ;;  %v3287_v55 = vld [vmem:[#allocation5 + $0x6cc] ss:$16 sps:$4 sm:$0xff]  }
  0xe9   :  { %1791 = vmatprep.subr.bf16.mxu0 %v3200_v56  ;;  %1955 = vmatprep.subr.bf16.mxu1 %v3203_v57  ;;  %v3282_v56 = vld [vmem:[#allocation5 + $0x6c0] ss:$16 sps:$4 sm:$0xff]   ;;  %v3285_v57 = vld [vmem:[#allocation5 + $0x6c8] ss:$16 sps:$4 sm:$0xff]  }
  0xec   :  { %1792 = vmatpush1.bf16.msra.mxu0 %v3198_v58  ;;  %1956 = vmatpush1.bf16.msra.mxu1 %v3201_v59  ;;  %v3290_v58 = vld [vmem:[#allocation5 + $0x6e4] ss:$16 sps:$4 sm:$0xff]   ;;  %v3293_v59 = vld [vmem:[#allocation5 + $0x6ec] ss:$16 sps:$4 sm:$0xff]  }
  0xed   :  { %1793 = vmatprep.subr.bf16.mxu0 %v3206_v60  ;;  %1957 = vmatprep.subr.bf16.mxu1 %v3209_v61  ;;  %v3288_v60 = vld [vmem:[#allocation5 + $0x6e0] ss:$16 sps:$4 sm:$0xff]   ;;  %v3291_v61 = vld [vmem:[#allocation5 + $0x6e8] ss:$16 sps:$4 sm:$0xff]  }
  0xf0   :  { %1794 = vmatpush1.bf16.msra.mxu0 %v3204_v62  ;;  %1958 = vmatpush1.bf16.msra.mxu1 %v3207_v63  ;;  %v3296_v62 = vld [vmem:[#allocation5 + $0x704] ss:$16 sps:$4 sm:$0xff]   ;;  %v3299_v63 = vld [vmem:[#allocation5 + $0x70c] ss:$16 sps:$4 sm:$0xff]  }
  0xf1   :  { %1795 = vmatprep.subr.bf16.mxu0 %v3212_v0  ;;  %1959 = vmatprep.subr.bf16.mxu1 %v3215_v1  ;;  %v3294_v0 = vld [vmem:[#allocation5 + $0x700] ss:$16 sps:$4 sm:$0xff]   ;;  %v3297_v1 = vld [vmem:[#allocation5 + $0x708] ss:$16 sps:$4 sm:$0xff]  }
  0xf4   :  { %1796 = vmatpush1.bf16.msra.mxu0 %v3210_v2  ;;  %1960 = vmatpush1.bf16.msra.mxu1 %v3213_v3  ;;  %v3302_v2 = vld [vmem:[#allocation5 + $0x724] ss:$16 sps:$4 sm:$0xff]   ;;  %v3305_v3 = vld [vmem:[#allocation5 + $0x72c] ss:$16 sps:$4 sm:$0xff]  }
  0xf5   :  { %1797 = vmatprep.subr.bf16.mxu0 %v3218_v4  ;;  %1961 = vmatprep.subr.bf16.mxu1 %v3221_v5  ;;  %v3300_v4 = vld [vmem:[#allocation5 + $0x720] ss:$16 sps:$4 sm:$0xff]   ;;  %v3303_v5 = vld [vmem:[#allocation5 + $0x728] ss:$16 sps:$4 sm:$0xff]  }
  0xf8   :  { %1798 = vmatpush1.bf16.msra.mxu0 %v3216_v6  ;;  %1962 = vmatpush1.bf16.msra.mxu1 %v3219_v7  ;;  %v3308_v6 = vld [vmem:[#allocation5 + $0x744] ss:$16 sps:$4 sm:$0xff]   ;;  %v3311_v7 = vld [vmem:[#allocation5 + $0x74c] ss:$16 sps:$4 sm:$0xff]  }
  0xf9   :  { %1799 = vmatprep.subr.bf16.mxu0 %v3224_v8  ;;  %1963 = vmatprep.subr.bf16.mxu1 %v3227_v10  ;;  %v3306_v8 = vld [vmem:[#allocation5 + $0x740] ss:$16 sps:$4 sm:$0xff]   ;;  %v3309_v10 = vld [vmem:[#allocation5 + $0x748] ss:$16 sps:$4 sm:$0xff]  }
  0xfc   :  { %1800 = vmatpush1.bf16.msra.mxu0 %v3222_v11  ;;  %1964 = vmatpush1.bf16.msra.mxu1 %v3225_v12  ;;  %v3314_v11 = vld [vmem:[#allocation5 + $0x764] ss:$16 sps:$4 sm:$0xff]   ;;  %v3317_v12 = vld [vmem:[#allocation5 + $0x76c] ss:$16 sps:$4 sm:$0xff]  }
  0xfd   :  { %1801 = vmatprep.subr.bf16.mxu0 %v3230_v13  ;;  %1965 = vmatprep.subr.bf16.mxu1 %v3233_v14  ;;  %v3312_v13 = vld [vmem:[#allocation5 + $0x760] ss:$16 sps:$4 sm:$0xff]   ;;  %v3315_v14 = vld [vmem:[#allocation5 + $0x768] ss:$16 sps:$4 sm:$0xff]  }
 0x100   :  { %1802 = vmatpush1.bf16.msra.mxu0 %v3228_v15  ;;  %1966 = vmatpush1.bf16.msra.mxu1 %v3231_v16  ;;  %v3320_v15 = vld [vmem:[#allocation5 + $0x784] ss:$16 sps:$4 sm:$0xff]   ;;  %v3323_v16 = vld [vmem:[#allocation5 + $0x78c] ss:$16 sps:$4 sm:$0xff]  }
 0x101   :  { %1803 = vmatprep.subr.bf16.mxu0 %v3236_v17  ;;  %1967 = vmatprep.subr.bf16.mxu1 %v3239_v18  ;;  %v3318_v17 = vld [vmem:[#allocation5 + $0x780] ss:$16 sps:$4 sm:$0xff]   ;;  %v3321_v18 = vld [vmem:[#allocation5 + $0x788] ss:$16 sps:$4 sm:$0xff]  }
 0x104   :  { %1804 = vmatpush1.bf16.msra.mxu0 %v3234_v19  ;;  %1968 = vmatpush1.bf16.msra.mxu1 %v3237_v20  ;;  %v3326_v19 = vld [vmem:[#allocation5 + $0x7a4] ss:$16 sps:$4 sm:$0xff]   ;;  %v3329_v20 = vld [vmem:[#allocation5 + $0x7ac] ss:$16 sps:$4 sm:$0xff]  }
 0x105   :  { %1805 = vmatprep.subr.bf16.mxu0 %v3242_v22  ;;  %1969 = vmatprep.subr.bf16.mxu1 %v3245_v24  ;;  %v3327_v22 = vld [vmem:[#allocation5 + $0x7a8] ss:$16 sps:$4 sm:$0xff]   ;;  %v3332_v24 = vld [vmem:[#allocation5 + $0x7c4] ss:$16 sps:$4 sm:$0xff]  }
 0x108   :  { %1806 = vmatpush1.bf16.msra.mxu0 %v3240_v25  ;;  %1970 = vmatpush1.bf16.msra.mxu1 %v3243_v27  ;;  %v3335_v25 = vld [vmem:[#allocation5 + $0x7cc] ss:$16 sps:$4 sm:$0xff]   ;;  %v3330_v27 = vld [vmem:[#allocation5 + $0x7c0] ss:$16 sps:$4 sm:$0xff]  }
 0x109   :  { %1816 = vmatprep.subr.bf16.mxu0 %v3248_v28  ;;  %1980 = vmatprep.subr.bf16.mxu1 %v3251_v29  ;;  %v3333_v28 = vld [vmem:[#allocation5 + $0x7c8] ss:$16 sps:$4 sm:$0xff]   ;;  %v3338_v29 = vld [vmem:[#allocation5 + $0x7e4] ss:$16 sps:$4 sm:$0xff]  }
 0x10b   :  { %1808 = vmatmul.mubr.bf16.vlgmr.msra.gmra.mrb[0].mxu0 %v131_v32  ;;  %1972 = vmatmul.mubr.bf16.vlgmr.msra.gmra.mrb[0].mxu1 %v131_v32  ;;  %v133_v32 = vpack.c.bf16 %v3649_v9, %v3649_v9  ;;  %v3351_v9 = vld [vmem:[#allocation7 + $0x50] sm:$0xff]  }
 0x10c   :  { %1817 = vmatpush1.bf16.msra.mxu0 %v3246_v30  ;;  %1981 = vmatpush1.bf16.msra.mxu1 %v3249_v31  ;;  %v3341_v30 = vld [vmem:[#allocation5 + $0x7ec] ss:$16 sps:$4 sm:$0xff]   ;;  %v3336_v31 = vld [vmem:[#allocation5 + $0x7e0] ss:$16 sps:$4 sm:$0xff]  }
 0x10d   :  { %1818 = vmatprep.subr.bf16.mxu0 %v3254_v33  ;;  %1982 = vmatprep.subr.bf16.mxu1 %v3257_v34  ;;  %v3343_v33 = vld [vmem:[#allocation7 + $0x40] sm:$0xff]  }
 0x10e   :  { %1848 = vmatprep.mubr.bf16.mxu0 %v134_v36  ;;  %2012 = vmatprep.mubr.bf16.mxu1 %v134_v36  ;;  %v3344_v34 = vld [vmem:[#allocation7 + $0xc0] sm:$0xff]   ;;  %v3347_v36 = vld [vmem:[#allocation7 + $0x48] sm:$0xff]  }
 0x110   :  { %1819 = vmatpush1.bf16.msra.mxu0 %v3252_v49  ;;  %1983 = vmatpush1.bf16.msra.mxu1 %v3255_v35  ;;  %v3345_v49 = vld [vmem:[#allocation7] sm:$0xff]  }
 0x111   :  { %1820 = vmatprep.subr.bf16.mxu0 %v3260_v37  ;;  %1984 = vmatprep.subr.bf16.mxu1 %v3263_v38  ;;  %v3346_v35 = vld [vmem:[#allocation7 + $0x80] sm:$0xff]   ;;  %v3348_v37 = vld [vmem:[#allocation7 + $0xc8] sm:$0xff]  }
 0x112   :  { %v3349_v38 = vld [vmem:[#allocation7 + $0x8] sm:$0xff]  }
 0x114   :  { %1821 = vmatpush1.bf16.msra.mxu0 %v3258_v26  ;;  %1985 = vmatpush1.bf16.msra.mxu1 %v3261_v39  ;;  %v3350_v26 = vld [vmem:[#allocation7 + $0x88] sm:$0xff]   ;;  %v3352_v39 = vld [vmem:[#allocation7 + $0xd0] sm:$0xff]  }
 0x115   :  { %1822 = vmatprep.subr.bf16.mxu0 %v3266_v40  ;;  %1986 = vmatprep.subr.bf16.mxu1 %v3269_v41  ;;  %v3353_v40 = vld [vmem:[#allocation7 + $0x10] sm:$0xff]  }
 0x116   :  { %v3354_v41 = vld [vmem:[#allocation7 + $0x90] sm:$0xff]  }
 0x118   :  { %1823 = vmatpush1.bf16.msra.mxu0 %v3264_v42  ;;  %1987 = vmatpush1.bf16.msra.mxu1 %v3267_v44  ;;  %v3355_v42 = vld [vmem:[#allocation7 + $0x58] sm:$0xff]  }
 0x119   :  { %1824 = vmatprep.subr.bf16.mxu0 %v3272_v45  ;;  %1988 = vmatprep.subr.bf16.mxu1 %v3275_v46  ;;  %v3356_v44 = vld [vmem:[#allocation7 + $0xd8] sm:$0xff]  }
 0x11a   :  { %v3357_v45 = vld [vmem:[#allocation7 + $0x18] sm:$0xff]  }
 0x11b   :  { %v3358_v46 = vld [vmem:[#allocation7 + $0x98] sm:$0xff]  }
 0x11c   :  { %1825 = vmatpush1.bf16.msra.mxu0 %v3270_v47  ;;  %1989 = vmatpush1.bf16.msra.mxu1 %v3273_v48  ;;  %v3359_v47 = vld [vmem:[#allocation7 + $0x60] sm:$0xff]  }
 0x11d   :  { %1826 = vmatprep.subr.bf16.mxu0 %v3278_v50  ;;  %1990 = vmatprep.subr.bf16.mxu1 %v3281_v51  ;;  %v3360_v48 = vld [vmem:[#allocation7 + $0xe0] sm:$0xff]  }
 0x11e   :  { %v3361_v50 = vld [vmem:[#allocation7 + $0x20] sm:$0xff]  }
 0x11f   :  { %v3362_v51 = vld [vmem:[#allocation7 + $0xa0] sm:$0xff]  }
 0x120   :  { %1827 = vmatpush1.bf16.msra.mxu0 %v3276_v52  ;;  %1991 = vmatpush1.bf16.msra.mxu1 %v3279_v53  ;;  %v3363_v52 = vld [vmem:[#allocation7 + $0x68] sm:$0xff]  }
 0x121   :  { %1828 = vmatprep.subr.bf16.mxu0 %v3284_v54  ;;  %1992 = vmatprep.subr.bf16.mxu1 %v3287_v55  ;;  %v3364_v53 = vld [vmem:[#allocation7 + $0xe8] sm:$0xff]  }
 0x122   :  { %v3365_v54 = vld [vmem:[#allocation7 + $0x28] sm:$0xff]  }
 0x123   :  { %v3366_v55 = vld [vmem:[#allocation7 + $0xa8] sm:$0xff]  }
 0x124   :  { %1829 = vmatpush1.bf16.msra.mxu0 %v3282_v56  ;;  %1993 = vmatpush1.bf16.msra.mxu1 %v3285_v57  ;;  %v3367_v56 = vld [vmem:[#allocation7 + $0x70] sm:$0xff]  }
 0x125   :  { %1830 = vmatprep.subr.bf16.mxu0 %v3290_v58  ;;  %1994 = vmatprep.subr.bf16.mxu1 %v3293_v59  ;;  %v3368_v57 = vld [vmem:[#allocation7 + $0xf0] sm:$0xff]  }
 0x126   :  { %v3369_v58 = vld [vmem:[#allocation7 + $0x30] sm:$0xff]  }
 0x127   :  { %v3370_v59 = vld [vmem:[#allocation7 + $0xb0] sm:$0xff]  }
 0x128   :  { %1831 = vmatpush1.bf16.msra.mxu0 %v3288_v60  ;;  %1995 = vmatpush1.bf16.msra.mxu1 %v3291_v61  ;;  %v3371_v60 = vld [vmem:[#allocation7 + $0x78] sm:$0xff]  }
 0x129   :  { %1832 = vmatprep.subr.bf16.mxu0 %v3296_v62  ;;  %1996 = vmatprep.subr.bf16.mxu1 %v3299_v63  ;;  %v3372_v61 = vld [vmem:[#allocation7 + $0xf8] sm:$0xff]  }
 0x12a   :  { %v3373_v62 = vld [vmem:[#allocation7 + $0x38] sm:$0xff]  }
 0x12b   :  { %v3374_v63 = vld [vmem:[#allocation7 + $0xb8] sm:$0xff]  }
 0x12c   :  { %1833 = vmatpush1.bf16.msra.mxu0 %v3294_v0  ;;  %1997 = vmatpush1.bf16.msra.mxu1 %v3297_v1  ;;  %v395_v0 = vsub.s32 0, %v3625_v43  ;;  %v403_v1 = vsub.s32 2, %v3625_v43 }
 0x12d   :  { %1834 = vmatprep.subr.bf16.mxu0 %v3302_v2  ;;  %1998 = vmatprep.subr.bf16.mxu1 %v3305_v3  ;;  %v391_v2 = vld [vmem:[%s3684_s2] sm:$0xf]  ;;  %v399_v3 = vsub.s32 1, %v3625_v43 }
 0x130   :  { %1835 = vmatpush1.bf16.msra.mxu0 %v3300_v4  ;;  %1999 = vmatpush1.bf16.msra.mxu1 %v3303_v5  ;;  %v407_v4 = vsub.s32 3, %v3625_v43  ;;  %v396_v5 = vrot.slane %v391_v2, %v395_v0 }
 0x131   :  { %1836 = vmatprep.subr.bf16.mxu0 %v3308_v6  ;;  %2000 = vmatprep.subr.bf16.mxu1 %v3311_v7  ;;  %v404_v6 = vrot.slane %v391_v2, %v403_v1  ;;  %v400_v7 = vrot.slane %v391_v2, %v399_v3 }
 0x134   :  { %1837 = vmatpush1.bf16.msra.mxu0 %v3306_v8  ;;  %2001 = vmatpush1.bf16.msra.mxu1 %v3309_v10  ;;  %v408_v8 = vrot.slane %v391_v2, %v407_v4  ;;  %v2835_v4 = vld [vmem:[%s3688_s6] ss:$0 sm:$0xff]  ;;  %s2530_s6 = sshll.u32 %s3536_s29, 4  ;;  %s2531_s6 = int_to_ptr.vmem [resolvable:$true] %s2530_s6 }
 0x135   :  { %1838 = vmatprep.subr.bf16.mxu0 %v3314_v11  ;;  %2002 = vmatprep.subr.bf16.mxu1 %v3317_v12  ;;  %s3495_s30 = scalar_lea.vmem %s2531_s6, 32  ;;  %p3500_p5 = scmp.lt.s32.totalorder %s2531_s6, %s2531_s6 }
 0x136   :  { %p3496_p4 = scmp.ne.s32.totalorder %s2531_s6, %s3495_s30  ;;  %p3501_p6 = scmp.lt.s32.totalorder %s3495_s30, %s3495_s30 }
 0x138   :  { %1839 = vmatpush1.bf16.msra.mxu0 %v3312_v13  ;;  %2003 = vmatpush1.bf16.msra.mxu1 %v3315_v14  ;;  %p3502_p7 = por %p3501_p6, %p3500_p5 }
 0x139   :  { %1840 = vmatprep.subr.bf16.mxu0 %v3320_v15  ;;  %2004 = vmatprep.subr.bf16.mxu1 %v3323_v16 }
 0x13a   :  { %p3503_p8 = pnand %p3502_p7, %p3496_p4 }
 0x13c   :  { %1841 = vmatpush1.bf16.msra.mxu0 %v3318_v17  ;;  %2005 = vmatpush1.bf16.msra.mxu1 %v3321_v18 }
 0x13d   :  { %1842 = vmatprep.subr.bf16.mxu0 %v3326_v19  ;;  %2006 = vmatprep.subr.bf16.mxu1 %v3329_v20 }
 0x140   :  { %1843 = vmatpush1.bf16.msra.mxu0 %v3324_v21  ;;  %2007 = vmatpush1.bf16.msra.mxu1 %v3327_v22 }
 0x141   :  { %1844 = vmatprep.subr.bf16.mxu0 %v3332_v24  ;;  %2008 = vmatprep.subr.bf16.mxu1 %v3335_v25 }
 0x144   :  { %1845 = vmatpush1.bf16.msra.mxu0 %v3330_v27  ;;  %2009 = vmatpush1.bf16.msra.mxu1 %v3333_v28 }
 0x145   :  { %1846 = vmatprep.subr.bf16.mxu0 %v3338_v29  ;;  %2010 = vmatprep.subr.bf16.mxu1 %v3341_v30 }
 0x148   :  { %1847 = vmatpush1.bf16.msra.mxu0 %v3336_v31  ;;  %2011 = vmatpush1.bf16.msra.mxu1 %v3339_v23 }
 0x149   :  { %2844 = vmatprep.subr.bf16.mxu0 %v3343_v33  ;;  %2866 = vmatprep.subr.bf16.mxu1 %v3344_v34 }
 0x14b   :  { %1849 = vmatmul.mubr.bf16.vlgmr.msra.gmra.mrb[0].mxu0 %v133_v32  ;;  %2013 = vmatmul.mubr.bf16.vlgmr.msra.gmra.mrb[0].mxu1 %v133_v32 }
 0x14c   :  { %2845 = vmatpush3.bf16.msra.mxu0 %v3345_v49  ;;  %2867 = vmatpush3.bf16.msra.mxu1 %v3346_v35 }
 0x14d   :  { %2846 = vmatprep.subr.bf16.mxu0 %v3347_v36  ;;  %2868 = vmatprep.subr.bf16.mxu1 %v3348_v37 }
 0x150   :  { %2847 = vmatpush3.bf16.msra.mxu0 %v3349_v38  ;;  %2869 = vmatpush3.bf16.msra.mxu1 %v3350_v26 }
 0x151   :  { %2848 = vmatprep.subr.bf16.mxu0 %v3351_v9  ;;  %2870 = vmatprep.subr.bf16.mxu1 %v3352_v39  ;;  %v3375_v39 = vld [vmem:[#allocation8] sm:$0xff]  }
 0x154   :  { %2849 = vmatpush3.bf16.msra.mxu0 %v3353_v40  ;;  %2871 = vmatpush3.bf16.msra.mxu1 %v3354_v41  ;;  %v3534_v40 = vmov 0.0   ;;  %v3376_v41 = vld [vmem:[#allocation8 + $0x8] sm:$0xff]  }
 0x155   :  { %2850 = vmatprep.subr.bf16.mxu0 %v3355_v42  ;;  %2872 = vmatprep.subr.bf16.mxu1 %v3356_v44  ;;  %v3377_v42 = vld [vmem:[#allocation8 + $0x10] sm:$0xff]   ;;  %v3378_v44 = vld [vmem:[#allocation8 + $0x18] sm:$0xff]  }
 0x158   :  { %2851 = vmatpush3.bf16.msra.mxu0 %v3357_v45  ;;  %2873 = vmatpush3.bf16.msra.mxu1 %v3358_v46  ;;  %v3379_v45 = vld [vmem:[#allocation8 + $0x20] sm:$0xff]   ;;  %v3380_v46 = vld [vmem:[#allocation8 + $0x28] sm:$0xff]  }
 0x159   :  { %2852 = vmatprep.subr.bf16.mxu0 %v3359_v47  ;;  %2874 = vmatprep.subr.bf16.mxu1 %v3360_v48  ;;  %v3381_v47 = vld [vmem:[#allocation8 + $0x30] sm:$0xff]   ;;  %v3382_v48 = vld [vmem:[#allocation8 + $0x38] sm:$0xff]  }
 0x15c   :  { %2853 = vmatpush3.bf16.msra.mxu0 %v3361_v50  ;;  %2875 = vmatpush3.bf16.msra.mxu1 %v3362_v51 }
 0x15d   :  { %2854 = vmatprep.subr.bf16.mxu0 %v3363_v52  ;;  %2876 = vmatprep.subr.bf16.mxu1 %v3364_v53  ;;  %v2801_v52 = vld [vmem:[%s3686_s4] ss:$0 sm:$0xff] }
 0x160   :  { %2855 = vmatpush3.bf16.msra.mxu0 %v3365_v54  ;;  %2877 = vmatpush3.bf16.msra.mxu1 %v3366_v55 }
 0x161   :  { %2856 = vmatprep.subr.bf16.mxu0 %v3367_v56  ;;  %2878 = vmatprep.subr.bf16.mxu1 %v3368_v57 }
 0x164   :  { %2857 = vmatpush3.bf16.msra.mxu0 %v3369_v58  ;;  %2879 = vmatpush3.bf16.msra.mxu1 %v3370_v59 }
 0x165   :  { %2858 = vmatprep.subr.bf16.mxu0 %v3371_v60  ;;  %2880 = vmatprep.subr.bf16.mxu1 %v3372_v61 }
 0x168   :  { %2859 = vmatpush3.bf16.msra.mxu0 %v3373_v62  ;;  %2881 = vmatpush3.bf16.msra.mxu1 %v3374_v63 }
 0x169   :  { %2897 = vmatprep.subr.bf16.mxu0 %v3534_v40 }
 0x21e   :  { %v1850_v10 = vpop.f32.mrb[0].mxu0  ;;  %v2014_v11 = vpop.f32.mrb[0].mxu1 }
 0x21f   :  { %v2917_v12 = vadd.f32 %v1850_v10, %v396_v5  ;;  %v2919_v13 = vadd.f32 %v2014_v11, %v404_v6  ;;  %v1852_v14 = vpop.f32.mrb[1].mxu0  ;;  %v2016_v15 = vpop.f32.mrb[1].mxu1 }
 0x220   :  { %v2918_v16 = vadd.f32 %v1852_v14, %v400_v7  ;;  %v2920_v17 = vadd.f32 %v2016_v15, %v408_v8  ;;  %v1854_v18 = vpop.f32.mrb[2].mxu0  ;;  %v2018_v19 = vpop.f32.mrb[2].mxu1 }
 0x221   :  { %v2797_v20 = vmul.f32 -1.442695, %v2917_v12  ;;  %v2799_v21 = vmul.f32 -1.442695, %v2919_v13  ;;  %v1855_v22 = vpop.f32.mrb[3].mxu0  ;;  %v2019_v24 = vpop.f32.mrb[3].mxu1 }
 0x222   :  { %v2798_v25 = vmul.f32 -1.442695, %v2918_v16  ;;  %v2800_v43 = vmul.f32 -1.442695, %v2920_v17 }
 0x223   :  { %3383 = vpow2.f32 %v2797_v20 }
 0x224   :  { %3385 = vpow2.f32 %v2799_v21 }
 0x225   :  { %3387 = vpow2.f32 %v2798_v25 }
 0x226   :  { %3389 = vpow2.f32 %v2800_v43 }
 0x22d   :  { %v3384_v27 = vpop.eup %3383 }
 0x22e   :  { %v3386_v28 = vpop.eup %3385  ;;  %v2033_v29 = vadd.f32 1.0, %v3384_v27 }
 0x22f   :  { %v3388_v30 = vpop.eup %3387  ;;  %v2035_v31 = vadd.f32 1.0, %v3386_v28 }
 0x230   :  { %v3390_v23 = vpop.eup %3389  ;;  %3391 = vrcp.f32 %v2033_v29  ;;  %v2034_v32 = vadd.f32 1.0, %v3388_v30 }
 0x231   :  { %3393 = vrcp.f32 %v2035_v31  ;;  %v2036_v33 = vadd.f32 1.0, %v3390_v23 }
 0x232   :  { %3395 = vrcp.f32 %v2034_v32 }
 0x233   :  { %3397 = vrcp.f32 %v2036_v33 }
 0x23a   :  { %v3392_v34 = vpop.eup %3391 }
 0x23b   :  { %v3394_v49 = vpop.eup %3393  ;;  %v2045_v26 = vpack.c.bf16 %v3392_v34, %v3392_v34 }
 0x23c   :  { %v3396_v35 = vpop.eup %3395  ;;  %v2047_v9 = vpack.c.bf16 %v3394_v49, %v3394_v49 }
 0x23d   :  { %v3398_v36 = vpop.eup %3397  ;;  %v2046_v37 = vpack.c.bf16 %v3396_v35, %v3396_v35 }
 0x23e   :  { %v2048_v38 = vpack.c.bf16 %v3398_v36, %v3398_v36 }
 0x23f   :  { %2344 = vmatprep.mubr.bf16.mxu0 %v2046_v37 }
 0x240   :  { %2384 = vmatprep.mubr.bf16.mxu1 %v2048_v38  ;;  %2345 = vmatmul.mubr.bf16.vlgmr.msra.gmra.mrb[4].mxu0 %v2045_v26 }
 0x241   :  { %2385 = vmatmul.mubr.bf16.vlgmr.msra.gmra.mrb[4].mxu1 %v2047_v9  ;;  %2898 = vmatpush3.bf16.msra.mxu0 %v3375_v39 }
 0x242   :  { %2899 = vmatprep.subr.bf16.mxu0 %v3534_v40  ;;  %2913 = vmatprep.mubr.msk.bf16.mxu0 %vm3535_vm0, %v3534_v40 }
 0x245   :  { %2900 = vmatpush3.bf16.msra.mxu0 %v3376_v41 }
 0x246   :  { %2901 = vmatprep.subr.bf16.mxu0 %v3534_v40 }
 0x249   :  { %2902 = vmatpush3.bf16.msra.mxu0 %v3377_v42 }
 0x24a   :  { %2903 = vmatprep.subr.bf16.mxu0 %v3534_v40 }
 0x24d   :  { %2904 = vmatpush3.bf16.msra.mxu0 %v3378_v44 }
 0x24e   :  { %2905 = vmatprep.subr.bf16.mxu0 %v3534_v40 }
 0x251   :  { %2906 = vmatpush3.bf16.msra.mxu0 %v3379_v45 }
 0x252   :  { %2907 = vmatprep.subr.bf16.mxu0 %v3534_v40 }
 0x255   :  { %2908 = vmatpush3.bf16.msra.mxu0 %v3380_v46 }
 0x256   :  { %2909 = vmatprep.subr.bf16.mxu0 %v3534_v40 }
 0x259   :  { %2910 = vmatpush3.bf16.msra.mxu0 %v3381_v47 }
 0x25a   :  { %2911 = vmatprep.subr.bf16.mxu0 %v3534_v40 }
 0x25d   :  { %2912 = vmatpush3.bf16.msra.mxu0 %v3382_v48 }
 0x313   :  { %v2860_v50 = vpop.f32.mrb[4].mxu0 }
 0x314   :  { %v2882_v51 = vpop.f32.mrb[4].mxu1  ;;  %v2861_v53 = vpop.f32.mrb[5].mxu0 }
 0x315   :  { %v2862_v54 = vadd.f32 %v2861_v53, %v2860_v50  ;;  %v2883_v55 = vpop.f32.mrb[5].mxu1  ;;  %v2863_v56 = vpop.f32.mrb[6].mxu0 }
 0x316   :  { %v2884_v57 = vadd.f32 %v2883_v55, %v2882_v51  ;;  %v2885_v58 = vpop.f32.mrb[6].mxu1  ;;  %v2864_v59 = vpop.f32.mrb[7].mxu0 }
 0x317   :  { %v2347_v60 = vadd.f32 %v2862_v54, %v2801_v52  ;;  %v2886_v61 = vpop.f32.mrb[7].mxu1 }
 0x319   :  { %v2387_v62 = vadd.f32 %v2884_v57, %v2347_v60 }
 0x31b   :  { %v2834_v63 = vmul.f32 -1.442695, %v2387_v62 }
 0x31d   :  { %3399 = vpow2.f32 %v2834_v63 }
 0x327   :  { %v3400_v0 = vpop.eup %3399 }
 0x328   :  { %v2395_v1 = vadd.f32 1.0, %v3400_v0 }
 0x32a   :  { %3401 = vrcp.f32 %v2395_v1 }
 0x334   :  { %v3402_v2 = vpop.eup %3401 }
 0x335   :  { %v2398_v3 = vpack.c.bf16 %v3402_v2, %v3402_v2 }
 0x337   :  { %2914 = vmatmul.mubr.bf16.vlgmr.msra.gmra.mrb[8].mxu0 %v2398_v3 }
 0x40a   :  { %v2504_v5 = vpop.f32.mrb[8].mxu0 }
 0x40b   :  { %v2505_v6 = vadd.f32 %v2835_v4, %v2504_v5  ;;  %v2915_v7 = vpop.f32.mrb[9].mxu0 }
 0x40c   :  { %v2507_v8 = vpop.f32.mrb[10].mxu0 }
 0x40d   :  { %v2916_v10 = vpop.f32.mrb[11].mxu0  ;;  %v2511_v11 = vsel %vm2510_vm1, %v2505_v6, -inf }
 0x40e   :  { %2512 = vmax.xlane.f32.xlu0 %v2511_v11 }
 0x49b   :  { %v2513_v12 = vpop.xlane.xlu0 %2512 }
 0x49c   :  { %v2514_v13 = vsub.f32 %v2505_v6, %v2513_v12 }
 0x49e   :  { %v2515_v14 = vmul.f32 1.442695, %v2514_v13 }
 0x4a0   :  { %3403 = vpow2.f32 %v2515_v14 }
 0x4aa   :  { %v3404_v15 = vpop.eup %3403 }
 0x4ab   :  { %v2517_v16 = vsel %vm2510_vm1, %v3404_v15, 0.0 }
 0x4ac   :  { %2518 = vadd.xlane.f32.xlu0 %v2517_v16 }
 0x539   :  { %v2519_v17 = vpop.xlane.xlu0 %2518 }
 0x53a   :  { %3405 = vlog2.f32 %v2519_v17 }
 0x544   :  { %v3406_v18 = vpop.eup %3405 }
 0x545   :  { %v2521_v19 = vmul.f32 0.6931472, %v3406_v18 }
 0x547   :  { %v2522_v20 = vsub.f32 %v2514_v13, %v2521_v19 }
 0x549   :  { %2523 = vst [vmem:[#allocation10] sm:$0x3] %v2522_v20 }
 0x54a   :  { %3506 = shalt.err (!%p3503_p8)
}
 0x54b   :  { %s3507_s10 = scalar_lea.hbm %s3689_s7, 32 }
 0x54c   :  { %p3508_p9 = scmp.ne.s32.totalorder %s3689_s7, %s3507_s10  ;;  %p3511_p10 = scmp.lt.u32.totalorder %s3507_s10, %s3689_s7 }
 0x54e   :  { %p3513_p11 = pnand %p3511_p10, %p3508_p9 }
 0x550   :  { %3516 = shalt.err (!%p3513_p11)
}
 0x551   :  { %2533 = dma.vmem_to_hbm [thread:$0]  %s2531_s6, 32, %s3689_s7, [#allocation4]  }
 0x552   :  { %3523 = dma.done.wait [#allocation4], 32  }
 0x553   :  { %3524 = vsyncadd [#allocation4], 4294967264 }
 0x554   :  { %2537 = vsyncpa [#allocation3], 1 }
 0x555   :  { %2538 = vsyncpa [#allocation6], 1 }
 0x556   :  { %2539 = vsyncpa [#allocation9], 1 }
 0x557   :  { %2540 = vsyncpa [#allocation4], 1 }

</bundles_post_ra>
